<compile_context>
chip_gen: v7x
topology: tpu7x:2x2x1
jax: 0.10.0
libtpu: 0.0.40
codegen_flags: <defaults>
</compile_context>

<pallas_src>
import math
import functools

import jax
import jax.numpy as jnp
from jax.experimental import pallas as pl
from jax.experimental.pallas import tpu as pltpu


_LN_EPS = 1e-6          # reference: LayerNorm(embedding_dim, eps=1e-06)
_NEG_INF = -1e30        # large finite negative -> no NaN on fully-masked rows
_VMEM_LIMIT = 64 * 1024 * 1024   # explicit scoped-VMEM budget (fits v7x too)


# ----------------------------------------------------------------------------
# in-kernel helpers
# ----------------------------------------------------------------------------

def _layernorm(x, g, b):
    mean = jnp.mean(x, axis=-1, keepdims=True)
    xc = x - mean
    var = jnp.mean(xc * xc, axis=-1, keepdims=True)
    return xc * jax.lax.rsqrt(var + _LN_EPS) * g + b


def _pick_tile(n, cap, quantum):
    """Largest tile <= cap that divides n and is a multiple of `quantum`
    (falls back to the full extent, which satisfies the full-dim exception of
    the (8,128) block rule; may over-allocate VMEM for awkward n)."""
    if n <= cap:
        return n
    t = (cap // quantum) * quantum
    while t >= quantum:
        if n % t == 0:
            return t
        t -= quantum
    return n


def _mha_core(x, q_in, kv_in, mask_i8, wq, bq, wk, bk, wv, bv, wo, bo, h):
    """x: (T, D) residual input (f32); q_in: (T, D) f32; kv_in: (Tk, D) f32;
    mask_i8: (Tq|1, Tk) int8 (nonzero == masked); weights are bf16, biases f32.
    """
    T, D = q_in.shape
    dk = D // h
    scale = 1.0 / math.sqrt(dk)

    q_bf = q_in.astype(jnp.bfloat16)
    kv_bf = kv_in.astype(jnp.bfloat16)

    # fold 1/sqrt(dk) into Q (scales a (T, D) tile, not (T, Tk) scores)
    q = (jnp.dot(q_bf, wq, preferred_element_type=jnp.float32) + bq) * scale
    k = jnp.dot(kv_bf, wk, preferred_element_type=jnp.float32) + bk
    v = jnp.dot(kv_bf, wv, preferred_element_type=jnp.float32) + bv

    q16 = q.astype(jnp.bfloat16)
    k16 = k.astype(jnp.bfloat16)
    v16 = v.astype(jnp.bfloat16)

    masked = mask_i8 != 0                     # broadcasts (1,Tk) -> (T,Tk)

    heads = []
    for hd in range(h):                       # h is small & static: unrolled
        lo = hd * dk
        s = jnp.dot(q16[:, lo:lo + dk], k16[:, lo:lo + dk].T,
                    preferred_element_type=jnp.float32)          # (T, Tk) f32
        s = jnp.where(masked, _NEG_INF, s)
        m = jnp.max(s, axis=-1, keepdims=True)
        e = jnp.exp(s - m)
        p = e * pl.reciprocal(jnp.sum(e, axis=-1, keepdims=True), approx=True)
        heads.append(jnp.dot(p.astype(jnp.bfloat16), v16[:, lo:lo + dk],
                             preferred_element_type=jnp.float32))  # (T, dk)

    # single full-K output projection (head-concat @ Wo), f32 accumulation
    concat = jnp.concatenate(heads, axis=-1).astype(jnp.bfloat16)  # (T, D)
    out = jnp.dot(concat, wo, preferred_element_type=jnp.float32) + bo
    return x + out


# ----------------------------------------------------------------------------
# fused sublayer kernels
# ----------------------------------------------------------------------------

def _self_attn_sublayer_kernel(x_ref, mask_ref, g_ref, bln_ref,
                               wq_ref, bq_ref, wk_ref, bk_ref,
                               wv_ref, bv_ref, wo_ref, bo_ref,
                               o_ref, *, h):
    x = x_ref[0].astype(jnp.float32)                      # (T, D)
    xn = _layernorm(x, g_ref[...], bln_ref[...])
    y = _mha_core(x, xn, xn, mask_ref[0],
                  wq_ref[...], bq_ref[...], wk_ref[...], bk_ref[...],
                  wv_ref[...], bv_ref[...], wo_ref[...], bo_ref[...], h)
    o_ref[0] = y.astype(o_ref.dtype)


def _src_attn_sublayer_kernel(x_ref, mem_ref, mask_ref, g_ref, bln_ref,
                              wq_ref, bq_ref, wk_ref, bk_ref,
                              wv_ref, bv_ref, wo_ref, bo_ref,
                              o_ref, *, h):
    x = x_ref[0].astype(jnp.float32)                      # (T, D)
    xn = _layernorm(x, g_ref[...], bln_ref[...])
    kv = mem_ref[0].astype(jnp.float32)                   # (S, D), no LN
    y = _mha_core(x, xn, kv, mask_ref[0],
                  wq_ref[...], bq_ref[...], wk_ref[...], bk_ref[...],
                  wv_ref[...], bv_ref[...], wo_ref[...], bo_ref[...], h)
    o_ref[0] = y.astype(o_ref.dtype)


def _ffn_sublayer_kernel(x_ref, g_ref, bln_ref, w1_ref, b1_ref, w2_ref, b2_ref,
                         o_ref, xn_sc, acc_sc):
    # grid = (row_tiles, Dh_tiles); hidden-dim axis is the (arbitrary) reduction
    kt = pl.program_id(1)

    @pl.when(kt == 0)
    def _():
        x = x_ref[...].astype(jnp.float32)
        xn_sc[...] = _layernorm(x, g_ref[...], bln_ref[...]).astype(jnp.bfloat16)
        acc_sc[...] = jnp.zeros_like(acc_sc)

    xn = xn_sc[...]                                              # (tm, D) bf16
    h1 = jnp.dot(xn, w1_ref[...], preferred_element_type=jnp.float32) + b1_ref[...]
    h1 = jnp.maximum(h1, 0.0)
    acc_sc[...] += jnp.dot(h1.astype(jnp.bfloat16), w2_ref[...],
                           preferred_element_type=jnp.float32)   # (tm, D)

    @pl.when(kt == pl.num_programs(1) - 1)
    def _():
        x = x_ref[...].astype(jnp.float32)
        o_ref[...] = (x + acc_sc[...] + b2_ref[...]).astype(o_ref.dtype)


def _gen_logits_kernel(x_ref, g_ref, bln_ref, w_ref, bv_ref,
                       z_ref, lse_ref, xn_sc, m_sc, l_sc, *, inv_temp):
    # grid = (row_tiles, vocab_tiles); vocab axis is the (arbitrary) reduction
    j = pl.program_id(1)

    @pl.when(j == 0)
    def _():
        x = x_ref[...].astype(jnp.float32)
        # hoist LayerNorm out of the vocab loop
        xn_sc[...] = _layernorm(x, g_ref[...], bln_ref[...]).astype(jnp.bfloat16)
        m_sc[...] = jnp.full(m_sc.shape, _NEG_INF, m_sc.dtype)
        l_sc[...] = jnp.zeros(l_sc.shape, l_sc.dtype)

    # temperature applied in-kernel as a static scalar (free VPU work)
    z = (jnp.dot(xn_sc[...], w_ref[...], preferred_element_type=jnp.float32)
         + bv_ref[...]) * inv_temp
    z_ref[...] = z.astype(z_ref.dtype)          # bf16 intermediate -> HBM

    # online (max, sum-exp) across vocab tiles, in f32
    m_prev = m_sc[...]
    m_new = jnp.maximum(m_prev, jnp.max(z, axis=-1, keepdims=True))
    l_sc[...] = (l_sc[...] * jnp.exp(m_prev - m_new)
                 + jnp.sum(jnp.exp(z - m_new), axis=-1, keepdims=True))
    m_sc[...] = m_new

    @pl.when(j == pl.num_programs(1) - 1)
    def _():
        lse_ref[...] = m_sc[...] + jnp.log(l_sc[...])


def _gen_normalize_kernel(z_ref, lse_ref, o_ref):
    o_ref[...] = (z_ref[...].astype(jnp.float32) - lse_ref[...]).astype(o_ref.dtype)


# ----------------------------------------------------------------------------
# pallas_call wrappers
# ----------------------------------------------------------------------------

def _prep_mask(mask, batch):
    """Collapse a torch-style broadcastable mask to (B, Tq|1, Tk) int8 without
    replicating over heads or the query dim."""
    m = jnp.asarray(mask)
    if m.ndim == 4:                       # (B|1, 1, Tq|1, Tk) -> drop head dim
        m = m[:, 0]
    elif m.ndim == 2:                     # (Tq|1, Tk)
        m = m[None]
    if m.shape[0] != batch:
        m = jnp.broadcast_to(m, (batch,) + m.shape[1:])
    return m.astype(jnp.int8)


def pallas_attn_sublayer(x, memory, mask, ln_g, ln_b, ap, h):
    """Fused pre-LN attention sublayer: x + MHA(LN(x), kv, kv, mask)."""
    B, T, D = x.shape
    is_self = memory is None
    kv_len = T if is_self else memory.shape[1]

    mask_i8 = _prep_mask(mask, B)                        # (B, Tq|1, Tk) int8
    tq_m = mask_i8.shape[1]

    bt_spec = pl.BlockSpec((1, T, D), lambda b: (b, 0, 0))
    mask_spec = pl.BlockSpec((1, tq_m, kv_len), lambda b: (b, 0, 0))
    w_spec = pl.BlockSpec((D, D), lambda b: (0, 0))
    v_spec = pl.BlockSpec((1, D), lambda b: (0, 0))

    param_specs = [v_spec, v_spec,
                   w_spec, v_spec, w_spec, v_spec, w_spec, v_spec, w_spec, v_spec]
    param_args = (ln_g.reshape(1, D), ln_b.reshape(1, D),
                  ap["wq"].astype(jnp.bfloat16), ap["bq"].reshape(1, D),
                  ap["wk"].astype(jnp.bfloat16), ap["bk"].reshape(1, D),
                  ap["wv"].astype(jnp.bfloat16), ap["bv"].reshape(1, D),
                  ap["wo"].astype(jnp.bfloat16), ap["bo"].reshape(1, D))

    if is_self:
        kernel = functools.partial(_self_attn_sublayer_kernel, h=h)
        in_specs = [bt_spec, mask_spec] + param_specs
        args = (x, mask_i8) + param_args
    else:
        kernel = functools.partial(_src_attn_sublayer_kernel, h=h)
        mem_spec = pl.BlockSpec((1, kv_len, D), lambda b: (b, 0, 0))
        in_specs = [bt_spec, mem_spec, mask_spec] + param_specs
        args = (x, memory, mask_i8) + param_args

    return pl.pallas_call(
        kernel,
        out_shape=jax.ShapeDtypeStruct((B, T, D), x.dtype),
        grid=(B,),
        in_specs=in_specs,
        out_specs=bt_spec,
        compiler_params=pltpu.CompilerParams(
            dimension_semantics=("parallel",),
            vmem_limit_bytes=_VMEM_LIMIT),
    )(*args)


def pallas_ffn_sublayer(x, ln_g, ln_b, w1, b1, w2, b2, row_cap=512, hid_cap=512):
    """Fused pre-LN FFN sublayer: x + W2 @ relu(W1 @ LN(x)).
    Row-tiled over (B*T) and Dh-tiled (reduction) with an f32 accumulator."""
    B, T, D = x.shape
    Dh = w1.shape[1]
    N = B * T
    tm = _pick_tile(N, row_cap, 8)
    tdh = _pick_tile(Dh, hid_cap, 128)
    x2 = x.reshape(N, D)

    out = pl.pallas_call(
        _ffn_sublayer_kernel,
        out_shape=jax.ShapeDtypeStruct((N, D), x.dtype),
        grid=(N // tm, Dh // tdh),
        in_specs=[
            pl.BlockSpec((tm, D), lambda i, kt: (i, 0)),
            pl.BlockSpec((1, D), lambda i, kt: (0, 0)),
            pl.BlockSpec((1, D), lambda i, kt: (0, 0)),
            pl.BlockSpec((D, tdh), lambda i, kt: (0, kt)),
            pl.BlockSpec((1, tdh), lambda i, kt: (0, kt)),
            pl.BlockSpec((tdh, D), lambda i, kt: (kt, 0)),
            pl.BlockSpec((1, D), lambda i, kt: (0, 0)),
        ],
        out_specs=pl.BlockSpec((tm, D), lambda i, kt: (i, 0)),
        scratch_shapes=[pltpu.VMEM((tm, D), jnp.bfloat16),    # hoisted LN(x)
                        pltpu.VMEM((tm, D), jnp.float32)],    # accumulator
        compiler_params=pltpu.CompilerParams(
            dimension_semantics=("parallel", "arbitrary"),
            vmem_limit_bytes=_VMEM_LIMIT),
    )(x2, ln_g.reshape(1, D), ln_b.reshape(1, D),
      w1.astype(jnp.bfloat16), b1.reshape(1, Dh),
      w2.astype(jnp.bfloat16), b2.reshape(1, D))
    return out.reshape(B, T, D)


def pallas_generator(x, norm_g, norm_b, gen_w, gen_b, temperature,
                     row_cap=1024, vocab_cap=1024):
    """Fused final LayerNorm + vocab-tiled projection + log-softmax.
    Pass 1 produces bf16 scaled logits + online logsumexp; pass 2 normalizes."""
    B, T, D = x.shape
    V = gen_w.shape[1]
    N = B * T
    x2 = x.reshape(N, D)

    inv_temp = 1.0 / float(temperature)        # static scalar, applied in-kernel
    w16 = gen_w.astype(jnp.bfloat16)
    bv = gen_b.reshape(1, V)                   # bias stays f32 (tiny)

    tm = _pick_tile(N, row_cap, 8)
    tv = _pick_tile(V, vocab_cap, 128)
    grid = (N // tm, V // tv)

    # pass 1: scaled logits (bf16) + online logsumexp stats per row
    z, lse = pl.pallas_call(
        functools.partial(_gen_logits_kernel, inv_temp=inv_temp),
        out_shape=(jax.ShapeDtypeStruct((N, V), jnp.bfloat16),
                   jax.ShapeDtypeStruct((N, 1), jnp.float32)),
        grid=grid,
        in_specs=[
            pl.BlockSpec((tm, D), lambda i, j: (i, 0)),
            pl.BlockSpec((1, D), lambda i, j: (0, 0)),
            pl.BlockSpec((1, D), lambda i, j: (0, 0)),
            pl.BlockSpec((D, tv), lambda i, j: (0, j)),
            pl.BlockSpec((1, tv), lambda i, j: (0, j)),
        ],
        out_specs=(pl.BlockSpec((tm, tv), lambda i, j: (i, j)),
                   pl.BlockSpec((tm, 1), lambda i, j: (i, 0))),
        scratch_shapes=[pltpu.VMEM((tm, D), jnp.bfloat16),   # hoisted LN(x)
                        pltpu.VMEM((tm, 1), jnp.float32),    # running max
                        pltpu.VMEM((tm, 1), jnp.float32)],   # running sum-exp
        compiler_params=pltpu.CompilerParams(
            dimension_semantics=("parallel", "arbitrary"),
            vmem_limit_bytes=_VMEM_LIMIT),
    )(x2, norm_g.reshape(1, D), norm_b.reshape(1, D), w16, bv)

    # pass 2: subtract per-row logsumexp (f32 math, output in x.dtype)
    logp = pl.pallas_call(
        _gen_normalize_kernel,
        out_shape=jax.ShapeDtypeStruct((N, V), x.dtype),
        grid=grid,
        in_specs=[pl.BlockSpec((tm, tv), lambda i, j: (i, j)),
                  pl.BlockSpec((tm, 1), lambda i, j: (i, 0))],
        out_specs=pl.BlockSpec((tm, tv), lambda i, j: (i, j)),
        compiler_params=pltpu.CompilerParams(
            dimension_semantics=("parallel", "parallel"),
            vmem_limit_bytes=_VMEM_LIMIT),
    )(z, lse)
    return logp.reshape(B, T, V)


# ----------------------------------------------------------------------------
# Model glue
# ----------------------------------------------------------------------------

def decoder_layer(p, x, memory, src_mask, tgt_mask, h):
    x = pallas_attn_sublayer(x, None, tgt_mask, p["ln0_g"], p["ln0_b"],
                             p["self_attn"], h)
    x = pallas_attn_sublayer(x, memory, src_mask, p["ln1_g"], p["ln1_b"],
                             p["src_attn"], h)
    x = pallas_ffn_sublayer(x, p["ln2_g"], p["ln2_b"],
                            p["ffn_w1"], p["ffn_b1"], p["ffn_w2"], p["ffn_b2"])
    return x


def decoder_forward(params, x, memory, src_mask, tgt_mask, *, temperature, h):
    assert x.shape[1] == tgt_mask.shape[-1]
    y = x
    for lp in params["layers"]:
        y = decoder_layer(lp, y, memory, src_mask, tgt_mask, h)
    return pallas_generator(y, params["norm_g"], params["norm_b"],
                            params["gen_w"], params["gen_b"], temperature)


# ----------------------------------------------------------------------------
# Deterministic parameter init (synthetic; no checkpoint loading)
# ----------------------------------------------------------------------------

def _init_linear(key, din, dout):
    w = jax.random.normal(key, (din, dout), jnp.float32) / math.sqrt(din)
    b = jnp.zeros((dout,), jnp.float32)
    return w, b


def _init_mha(key, d_model):
    ks = jax.random.split(key, 4)
    wq, bq = _init_linear(ks[0], d_model, d_model)
    wk, bk = _init_linear(ks[1], d_model, d_model)
    wv, bv = _init_linear(ks[2], d_model, d_model)
    wo, bo = _init_linear(ks[3], d_model, d_model)
    return dict(wq=wq, bq=bq, wk=wk, bk=bk, wv=wv, bv=bv, wo=wo, bo=bo)


def _init_decoder_layer(key, d_model):
    ks = jax.random.split(key, 4)
    p = dict(self_attn=_init_mha(ks[0], d_model),
             src_attn=_init_mha(ks[1], d_model))
    p["ffn_w1"], p["ffn_b1"] = _init_linear(ks[2], d_model, 4 * d_model)
    p["ffn_w2"], p["ffn_b2"] = _init_linear(ks[3], 4 * d_model, d_model)
    for i in range(3):
        p[f"ln{i}_g"] = jnp.ones((d_model,), jnp.float32)
        p[f"ln{i}_b"] = jnp.zeros((d_model,), jnp.float32)
    return p


def init_decoder_params(key, num_layers, d_embed, d_model, vocab_size):
    # first layer operates on d_embed, rest on d_model (d_embed == d_model here)
    ks = jax.random.split(key, num_layers + 1)
    layers = [_init_decoder_layer(ks[0], d_embed)]
    layers += [_init_decoder_layer(ks[i], d_model) for i in range(1, num_layers)]
    gen_w, gen_b = _init_linear(ks[num_layers], d_model, vocab_size)
    return dict(layers=layers,
                norm_g=jnp.ones((d_model,), jnp.float32),
                norm_b=jnp.zeros((d_model,), jnp.float32),
                gen_w=gen_w, gen_b=gen_b)


# ----------------------------------------------------------------------------
# Pure-JAX f32 reference (for on-device validation of the Pallas path)
# ----------------------------------------------------------------------------

def reference_forward(params, x, memory, src_mask, tgt_mask, temperature, h):
    def ln(t, g, b):
        mu = jnp.mean(t, -1, keepdims=True)
        tc = t - mu
        var = jnp.mean(tc * tc, -1, keepdims=True)
        return tc * jax.lax.rsqrt(var + _LN_EPS) * g + b

    def mha(ap, q_in, k_in, v_in, mask):
        Bq, Tq, D = q_in.shape
        dk = D // h

        def proj(t, w, b):
            return (t @ w + b).reshape(Bq, -1, h, dk).transpose(0, 2, 1, 3)

        q = proj(q_in, ap["wq"], ap["bq"])
        k = proj(k_in, ap["wk"], ap["bk"])
        v = proj(v_in, ap["wv"], ap["bv"])
        s = (q @ jnp.swapaxes(k, -1, -2)) / math.sqrt(dk)
        s = jnp.where(mask, _NEG_INF, s)
        p = jax.nn.softmax(s, axis=-1)
        a = jnp.swapaxes(p @ v, 1, 2).reshape(Bq, Tq, D)
        return a @ ap["wo"] + ap["bo"]

    y = x
    for lp in params["layers"]:
        yn = ln(y, lp["ln0_g"], lp["ln0_b"])
        y = y + mha(lp["self_attn"], yn, yn, yn, tgt_mask)
        yn = ln(y, lp["ln1_g"], lp["ln1_b"])
        y = y + mha(lp["src_attn"], yn, memory, memory, src_mask)
        yn = ln(y, lp["ln2_g"], lp["ln2_b"])
        hid = jnp.maximum(yn @ lp["ffn_w1"] + lp["ffn_b1"], 0.0)
        y = y + (hid @ lp["ffn_w2"] + lp["ffn_b2"])
    yn = ln(y, params["norm_g"], params["norm_b"])
    logits = (yn @ params["gen_w"] + params["gen_b"]) / temperature
    return jax.nn.log_softmax(logits, axis=-1)


# ----------------------------------------------------------------------------
# Main
# ----------------------------------------------------------------------------

if __name__ == "__main__":
    num_layers = 2
    d_embed = d_model = 32
    vocab_size = 64
    h = 4
    B, T, S = 2, 8, 8
    temperature = 1.0

    root = jax.random.PRNGKey(0)
    k_param, k_x, k_mem = jax.random.split(root, 3)

    params = init_decoder_params(k_param, num_layers, d_embed, d_model, vocab_size)

    x = jax.random.normal(k_x, (B, T, d_model), jnp.float32)
    memory = jax.random.normal(k_mem, (B, S, d_model), jnp.float32)

    # causal target mask (True == masked), shape (B, 1, T, T)
    causal = jnp.triu(jnp.ones((T, T), jnp.bool_), k=1)
    tgt_mask = jnp.broadcast_to(causal, (B, 1, T, T))

    # source padding mask (True == masked), shape (B, 1, 1, S); lengths [8, 6]
    src_lens = jnp.array([8, 6], jnp.int32)
    key_pos = jnp.arange(S)[None, :]
    src_mask = (key_pos >= src_lens[:, None]).reshape(B, 1, 1, S)

    fwd = jax.jit(functools.partial(decoder_forward, temperature=temperature, h=h))
    out = jax.block_until_ready(fwd(params, x, memory, src_mask, tgt_mask))

    assert out.shape == (B, T, vocab_size)
    # log-softmax rows sum (in prob space) to ~1 (bf16 logit storage => loose atol)
    prob_sums = jnp.sum(jnp.exp(out), axis=-1)
    assert bool(jnp.allclose(prob_sums, 1.0, atol=2e-2)), \
        f"prob sums off: {prob_sums}"
    # cross-check the fused Pallas (bf16-MXU) path against the plain-JAX f32 ref
    ref = reference_forward(params, x, memory, src_mask, tgt_mask, temperature, h)
    err = jnp.abs(out - ref)
    max_err = float(jnp.max(err))
    mean_err = float(jnp.mean(err))
    assert max_err < 1e-1, f"max abs err vs reference = {max_err}"
    assert mean_err < 2e-2, f"mean abs err vs reference = {mean_err}"
    print("KERNEL_OK")
</pallas_src>

<mosaic_0001>
module attributes {stable_mosaic.version = 11 : i64} {
  func.func @_self_attn_sublayer_kernel(%arg0: i32, %arg1: memref<1x8x32xf32, #tpu.memory_space<vmem>>, %arg2: memref<1x8x8xi8, #tpu.memory_space<vmem>>, %arg3: memref<1x32xf32, #tpu.memory_space<vmem>>, %arg4: memref<1x32xf32, #tpu.memory_space<vmem>>, %arg5: memref<32x32xbf16, #tpu.memory_space<vmem>>, %arg6: memref<1x32xf32, #tpu.memory_space<vmem>>, %arg7: memref<32x32xbf16, #tpu.memory_space<vmem>>, %arg8: memref<1x32xf32, #tpu.memory_space<vmem>>, %arg9: memref<32x32xbf16, #tpu.memory_space<vmem>>, %arg10: memref<1x32xf32, #tpu.memory_space<vmem>>, %arg11: memref<32x32xbf16, #tpu.memory_space<vmem>>, %arg12: memref<1x32xf32, #tpu.memory_space<vmem>>, %arg13: memref<1x8x32xf32, #tpu.memory_space<vmem>>) attributes {dimension_semantics = [#tpu.dimension_semantics<parallel>], iteration_bounds = array<i64: 2>, scalar_prefetch = 0 : i64, scratch_operands = 0 : i64, tpu.core_type = #tpu.core_type<tc>, window_params = [{transform_indices = @transform_0, window_bounds = array<i64: 1, 8, 32>}, {transform_indices = @transform_1, window_bounds = array<i64: 1, 8, 8>}, {pipeline_mode = #tpu.pipeline_mode<synchronous>, transform_indices = @transform_2, window_bounds = array<i64: 1, 32>}, {pipeline_mode = #tpu.pipeline_mode<synchronous>, transform_indices = @transform_3, window_bounds = array<i64: 1, 32>}, {pipeline_mode = #tpu.pipeline_mode<synchronous>, transform_indices = @transform_4, window_bounds = array<i64: 32, 32>}, {pipeline_mode = #tpu.pipeline_mode<synchronous>, transform_indices = @transform_5, window_bounds = array<i64: 1, 32>}, {pipeline_mode = #tpu.pipeline_mode<synchronous>, transform_indices = @transform_6, window_bounds = array<i64: 32, 32>}, {pipeline_mode = #tpu.pipeline_mode<synchronous>, transform_indices = @transform_7, window_bounds = array<i64: 1, 32>}, {pipeline_mode = #tpu.pipeline_mode<synchronous>, transform_indices = @transform_8, window_bounds = array<i64: 32, 32>}, {pipeline_mode = #tpu.pipeline_mode<synchronous>, transform_indices = @transform_9, window_bounds = array<i64: 1, 32>}, {pipeline_mode = #tpu.pipeline_mode<synchronous>, transform_indices = @transform_10, window_bounds = array<i64: 32, 32>}, {pipeline_mode = #tpu.pipeline_mode<synchronous>, transform_indices = @transform_11, window_bounds = array<i64: 1, 32>}, {transform_indices = @transform_12, window_bounds = array<i64: 1, 8, 32>}]} {
    %c0 = arith.constant 0 : index
    %c0_0 = arith.constant 0 : index
    %c0_1 = arith.constant 0 : index
    %0 = vector.load %arg1[%c0, %c0_0, %c0_1] : memref<1x8x32xf32, #tpu.memory_space<vmem>>, vector<1x8x32xf32>
    %1 = vector.shape_cast %0 : vector<1x8x32xf32> to vector<8x32xf32>
    %c0_2 = arith.constant 0 : index
    %c0_3 = arith.constant 0 : index
    %2 = vector.load %arg3[%c0_2, %c0_3] : memref<1x32xf32, #tpu.memory_space<vmem>>, vector<1x32xf32>
    %c0_4 = arith.constant 0 : index
    %c0_5 = arith.constant 0 : index
    %3 = vector.load %arg4[%c0_4, %c0_5] : memref<1x32xf32, #tpu.memory_space<vmem>>, vector<1x32xf32>
    %cst = arith.constant dense<0.000000e+00> : vector<8xf32>
    %4 = vector.multi_reduction <add>, %1, %cst [1] : vector<8x32xf32> to vector<8xf32>
    %5 = vector.shape_cast %4 : vector<8xf32> to vector<8x1xf32>
    %cst_6 = arith.constant 3.200000e+01 : f32
    %6 = vector.broadcast %cst_6 : f32 to vector<8x1xf32>
    %7 = arith.divf %5, %6 : vector<8x1xf32>
    %8 = vector.broadcast %7 : vector<8x1xf32> to vector<8x32xf32>
    %9 = arith.subf %1, %8 : vector<8x32xf32>
    %10 = arith.mulf %9, %9 : vector<8x32xf32>
    %cst_7 = arith.constant dense<0.000000e+00> : vector<8xf32>
    %11 = vector.multi_reduction <add>, %10, %cst_7 [1] : vector<8x32xf32> to vector<8xf32>
    %12 = vector.shape_cast %11 : vector<8xf32> to vector<8x1xf32>
    %cst_8 = arith.constant 3.200000e+01 : f32
    %13 = vector.broadcast %cst_8 : f32 to vector<8x1xf32>
    %14 = arith.divf %12, %13 : vector<8x1xf32>
    %cst_9 = arith.constant 9.99999997E-7 : f32
    %15 = vector.broadcast %cst_9 : f32 to vector<8x1xf32>
    %16 = arith.addf %14, %15 : vector<8x1xf32>
    %17 = math.rsqrt %16 : vector<8x1xf32>
    %18 = vector.broadcast %17 : vector<8x1xf32> to vector<8x32xf32>
    %19 = arith.mulf %9, %18 : vector<8x32xf32>
    %20 = vector.broadcast %2 : vector<1x32xf32> to vector<8x32xf32>
    %21 = arith.mulf %19, %20 : vector<8x32xf32>
    %22 = vector.broadcast %3 : vector<1x32xf32> to vector<8x32xf32>
    %23 = arith.addf %21, %22 : vector<8x32xf32>
    %c0_10 = arith.constant 0 : index
    %c0_11 = arith.constant 0 : index
    %c0_12 = arith.constant 0 : index
    %24 = vector.load %arg2[%c0_10, %c0_11, %c0_12] : memref<1x8x8xi8, #tpu.memory_space<vmem>>, vector<1x8x8xi8>
    %25 = vector.shape_cast %24 : vector<1x8x8xi8> to vector<8x8xi8>
    %c0_13 = arith.constant 0 : index
    %c0_14 = arith.constant 0 : index
    %26 = vector.load %arg5[%c0_13, %c0_14] : memref<32x32xbf16, #tpu.memory_space<vmem>>, vector<32x32xbf16>
    %c0_15 = arith.constant 0 : index
    %c0_16 = arith.constant 0 : index
    %27 = vector.load %arg6[%c0_15, %c0_16] : memref<1x32xf32, #tpu.memory_space<vmem>>, vector<1x32xf32>
    %c0_17 = arith.constant 0 : index
    %c0_18 = arith.constant 0 : index
    %28 = vector.load %arg7[%c0_17, %c0_18] : memref<32x32xbf16, #tpu.memory_space<vmem>>, vector<32x32xbf16>
    %c0_19 = arith.constant 0 : index
    %c0_20 = arith.constant 0 : index
    %29 = vector.load %arg8[%c0_19, %c0_20] : memref<1x32xf32, #tpu.memory_space<vmem>>, vector<1x32xf32>
    %c0_21 = arith.constant 0 : index
    %c0_22 = arith.constant 0 : index
    %30 = vector.load %arg9[%c0_21, %c0_22] : memref<32x32xbf16, #tpu.memory_space<vmem>>, vector<32x32xbf16>
    %c0_23 = arith.constant 0 : index
    %c0_24 = arith.constant 0 : index
    %31 = vector.load %arg10[%c0_23, %c0_24] : memref<1x32xf32, #tpu.memory_space<vmem>>, vector<1x32xf32>
    %c0_25 = arith.constant 0 : index
    %c0_26 = arith.constant 0 : index
    %32 = vector.load %arg11[%c0_25, %c0_26] : memref<32x32xbf16, #tpu.memory_space<vmem>>, vector<32x32xbf16>
    %c0_27 = arith.constant 0 : index
    %c0_28 = arith.constant 0 : index
    %33 = vector.load %arg12[%c0_27, %c0_28] : memref<1x32xf32, #tpu.memory_space<vmem>>, vector<1x32xf32>
    %34 = arith.truncf %23 : vector<8x32xf32> to vector<8x32xbf16>
    %35 = arith.truncf %23 : vector<8x32xf32> to vector<8x32xbf16>
    %cst_29 = arith.constant dense<0.000000e+00> : vector<8x32xf32>
    %36 = tpu.matmul %34, %26, %cst_29 {dimension_numbers = #tpu.dot_dimension_numbers<[1], [0], [0], [1], [0, 0, 1, 1], [], []>} : vector<8x32xbf16>, vector<32x32xbf16>, vector<8x32xf32> -> vector<8x32xf32>
    %37 = vector.broadcast %27 : vector<1x32xf32> to vector<8x32xf32>
    %38 = arith.addf %36, %37 : vector<8x32xf32>
    %cst_30 = arith.constant 0.353553385 : f32
    %39 = vector.broadcast %cst_30 : f32 to vector<8x32xf32>
    %40 = arith.mulf %38, %39 : vector<8x32xf32>
    %cst_31 = arith.constant dense<0.000000e+00> : vector<8x32xf32>
    %41 = tpu.matmul %35, %28, %cst_31 {dimension_numbers = #tpu.dot_dimension_numbers<[1], [0], [0], [1], [0, 0, 1, 1], [], []>} : vector<8x32xbf16>, vector<32x32xbf16>, vector<8x32xf32> -> vector<8x32xf32>
    %42 = vector.broadcast %29 : vector<1x32xf32> to vector<8x32xf32>
    %43 = arith.addf %41, %42 : vector<8x32xf32>
    %cst_32 = arith.constant dense<0.000000e+00> : vector<8x32xf32>
    %44 = tpu.matmul %35, %30, %cst_32 {dimension_numbers = #tpu.dot_dimension_numbers<[1], [0], [0], [1], [0, 0, 1, 1], [], []>} : vector<8x32xbf16>, vector<32x32xbf16>, vector<8x32xf32> -> vector<8x32xf32>
    %45 = vector.broadcast %31 : vector<1x32xf32> to vector<8x32xf32>
    %46 = arith.addf %44, %45 : vector<8x32xf32>
    %47 = arith.truncf %40 : vector<8x32xf32> to vector<8x32xbf16>
    %48 = arith.truncf %43 : vector<8x32xf32> to vector<8x32xbf16>
    %49 = arith.truncf %46 : vector<8x32xf32> to vector<8x32xbf16>
    %c0_i8 = arith.constant 0 : i8
    %50 = vector.broadcast %c0_i8 : i8 to vector<8x8xi8>
    %51 = arith.cmpi ne, %25, %50 : vector<8x8xi8>
    %52 = vector.extract_strided_slice %47 {offsets = [0, 0], sizes = [8, 8], strides = [1, 1]} : vector<8x32xbf16> to vector<8x8xbf16>
    %53 = vector.extract_strided_slice %48 {offsets = [0, 0], sizes = [8, 8], strides = [1, 1]} : vector<8x32xbf16> to vector<8x8xbf16>
    %54 = tpu.transpose %53, [1, 0] : vector<8x8xbf16> -> vector<8x8xbf16>
    %cst_33 = arith.constant dense<0.000000e+00> : vector<8x8xf32>
    %55 = tpu.matmul %52, %54, %cst_33 {dimension_numbers = #tpu.dot_dimension_numbers<[1], [0], [0], [1], [0, 0, 1, 1], [], []>} : vector<8x8xbf16>, vector<8x8xbf16>, vector<8x8xf32> -> vector<8x8xf32>
    %cst_34 = arith.constant -1.000000e+30 : f32
    %56 = vector.broadcast %cst_34 : f32 to vector<8x8xf32>
    %57 = arith.select %51, %56, %55 : vector<8x8xi1>, vector<8x8xf32>
    %cst_35 = arith.constant dense<0xFF800000> : vector<8xf32>
    %58 = vector.multi_reduction <maximumf>, %57, %cst_35 [1] : vector<8x8xf32> to vector<8xf32>
    %59 = vector.shape_cast %58 : vector<8xf32> to vector<8x1xf32>
    %60 = vector.broadcast %59 : vector<8x1xf32> to vector<8x8xf32>
    %61 = arith.subf %57, %60 : vector<8x8xf32>
    %62 = math.exp %61 : vector<8x8xf32>
    %cst_36 = arith.constant dense<0.000000e+00> : vector<8xf32>
    %63 = vector.multi_reduction <add>, %62, %cst_36 [1] : vector<8x8xf32> to vector<8xf32>
    %64 = vector.shape_cast %63 : vector<8xf32> to vector<8x1xf32>
    %65 = tpu.reciprocal %64 {approx = true} : vector<8x1xf32> -> vector<8x1xf32>
    %66 = vector.broadcast %65 : vector<8x1xf32> to vector<8x8xf32>
    %67 = arith.mulf %62, %66 : vector<8x8xf32>
    %68 = arith.truncf %67 : vector<8x8xf32> to vector<8x8xbf16>
    %69 = vector.extract_strided_slice %49 {offsets = [0, 0], sizes = [8, 8], strides = [1, 1]} : vector<8x32xbf16> to vector<8x8xbf16>
    %cst_37 = arith.constant dense<0.000000e+00> : vector<8x8xf32>
    %70 = tpu.matmul %68, %69, %cst_37 {dimension_numbers = #tpu.dot_dimension_numbers<[1], [0], [0], [1], [0, 0, 1, 1], [], []>} : vector<8x8xbf16>, vector<8x8xbf16>, vector<8x8xf32> -> vector<8x8xf32>
    %71 = vector.extract_strided_slice %47 {offsets = [0, 8], sizes = [8, 8], strides = [1, 1]} : vector<8x32xbf16> to vector<8x8xbf16>
    %72 = vector.extract_strided_slice %48 {offsets = [0, 8], sizes = [8, 8], strides = [1, 1]} : vector<8x32xbf16> to vector<8x8xbf16>
    %73 = tpu.transpose %72, [1, 0] : vector<8x8xbf16> -> vector<8x8xbf16>
    %cst_38 = arith.constant dense<0.000000e+00> : vector<8x8xf32>
    %74 = tpu.matmul %71, %73, %cst_38 {dimension_numbers = #tpu.dot_dimension_numbers<[1], [0], [0], [1], [0, 0, 1, 1], [], []>} : vector<8x8xbf16>, vector<8x8xbf16>, vector<8x8xf32> -> vector<8x8xf32>
    %cst_39 = arith.constant -1.000000e+30 : f32
    %75 = vector.broadcast %cst_39 : f32 to vector<8x8xf32>
    %76 = arith.select %51, %75, %74 : vector<8x8xi1>, vector<8x8xf32>
    %cst_40 = arith.constant dense<0xFF800000> : vector<8xf32>
    %77 = vector.multi_reduction <maximumf>, %76, %cst_40 [1] : vector<8x8xf32> to vector<8xf32>
    %78 = vector.shape_cast %77 : vector<8xf32> to vector<8x1xf32>
    %79 = vector.broadcast %78 : vector<8x1xf32> to vector<8x8xf32>
    %80 = arith.subf %76, %79 : vector<8x8xf32>
    %81 = math.exp %80 : vector<8x8xf32>
    %cst_41 = arith.constant dense<0.000000e+00> : vector<8xf32>
    %82 = vector.multi_reduction <add>, %81, %cst_41 [1] : vector<8x8xf32> to vector<8xf32>
    %83 = vector.shape_cast %82 : vector<8xf32> to vector<8x1xf32>
    %84 = tpu.reciprocal %83 {approx = true} : vector<8x1xf32> -> vector<8x1xf32>
    %85 = vector.broadcast %84 : vector<8x1xf32> to vector<8x8xf32>
    %86 = arith.mulf %81, %85 : vector<8x8xf32>
    %87 = arith.truncf %86 : vector<8x8xf32> to vector<8x8xbf16>
    %88 = vector.extract_strided_slice %49 {offsets = [0, 8], sizes = [8, 8], strides = [1, 1]} : vector<8x32xbf16> to vector<8x8xbf16>
    %cst_42 = arith.constant dense<0.000000e+00> : vector<8x8xf32>
    %89 = tpu.matmul %87, %88, %cst_42 {dimension_numbers = #tpu.dot_dimension_numbers<[1], [0], [0], [1], [0, 0, 1, 1], [], []>} : vector<8x8xbf16>, vector<8x8xbf16>, vector<8x8xf32> -> vector<8x8xf32>
    %90 = vector.extract_strided_slice %47 {offsets = [0, 16], sizes = [8, 8], strides = [1, 1]} : vector<8x32xbf16> to vector<8x8xbf16>
    %91 = vector.extract_strided_slice %48 {offsets = [0, 16], sizes = [8, 8], strides = [1, 1]} : vector<8x32xbf16> to vector<8x8xbf16>
    %92 = tpu.transpose %91, [1, 0] : vector<8x8xbf16> -> vector<8x8xbf16>
    %cst_43 = arith.constant dense<0.000000e+00> : vector<8x8xf32>
    %93 = tpu.matmul %90, %92, %cst_43 {dimension_numbers = #tpu.dot_dimension_numbers<[1], [0], [0], [1], [0, 0, 1, 1], [], []>} : vector<8x8xbf16>, vector<8x8xbf16>, vector<8x8xf32> -> vector<8x8xf32>
    %cst_44 = arith.constant -1.000000e+30 : f32
    %94 = vector.broadcast %cst_44 : f32 to vector<8x8xf32>
    %95 = arith.select %51, %94, %93 : vector<8x8xi1>, vector<8x8xf32>
    %cst_45 = arith.constant dense<0xFF800000> : vector<8xf32>
    %96 = vector.multi_reduction <maximumf>, %95, %cst_45 [1] : vector<8x8xf32> to vector<8xf32>
    %97 = vector.shape_cast %96 : vector<8xf32> to vector<8x1xf32>
    %98 = vector.broadcast %97 : vector<8x1xf32> to vector<8x8xf32>
    %99 = arith.subf %95, %98 : vector<8x8xf32>
    %100 = math.exp %99 : vector<8x8xf32>
    %cst_46 = arith.constant dense<0.000000e+00> : vector<8xf32>
    %101 = vector.multi_reduction <add>, %100, %cst_46 [1] : vector<8x8xf32> to vector<8xf32>
    %102 = vector.shape_cast %101 : vector<8xf32> to vector<8x1xf32>
    %103 = tpu.reciprocal %102 {approx = true} : vector<8x1xf32> -> vector<8x1xf32>
    %104 = vector.broadcast %103 : vector<8x1xf32> to vector<8x8xf32>
    %105 = arith.mulf %100, %104 : vector<8x8xf32>
    %106 = arith.truncf %105 : vector<8x8xf32> to vector<8x8xbf16>
    %107 = vector.extract_strided_slice %49 {offsets = [0, 16], sizes = [8, 8], strides = [1, 1]} : vector<8x32xbf16> to vector<8x8xbf16>
    %cst_47 = arith.constant dense<0.000000e+00> : vector<8x8xf32>
    %108 = tpu.matmul %106, %107, %cst_47 {dimension_numbers = #tpu.dot_dimension_numbers<[1], [0], [0], [1], [0, 0, 1, 1], [], []>} : vector<8x8xbf16>, vector<8x8xbf16>, vector<8x8xf32> -> vector<8x8xf32>
    %109 = vector.extract_strided_slice %47 {offsets = [0, 24], sizes = [8, 8], strides = [1, 1]} : vector<8x32xbf16> to vector<8x8xbf16>
    %110 = vector.extract_strided_slice %48 {offsets = [0, 24], sizes = [8, 8], strides = [1, 1]} : vector<8x32xbf16> to vector<8x8xbf16>
    %111 = tpu.transpose %110, [1, 0] : vector<8x8xbf16> -> vector<8x8xbf16>
    %cst_48 = arith.constant dense<0.000000e+00> : vector<8x8xf32>
    %112 = tpu.matmul %109, %111, %cst_48 {dimension_numbers = #tpu.dot_dimension_numbers<[1], [0], [0], [1], [0, 0, 1, 1], [], []>} : vector<8x8xbf16>, vector<8x8xbf16>, vector<8x8xf32> -> vector<8x8xf32>
    %cst_49 = arith.constant -1.000000e+30 : f32
    %113 = vector.broadcast %cst_49 : f32 to vector<8x8xf32>
    %114 = arith.select %51, %113, %112 : vector<8x8xi1>, vector<8x8xf32>
    %cst_50 = arith.constant dense<0xFF800000> : vector<8xf32>
    %115 = vector.multi_reduction <maximumf>, %114, %cst_50 [1] : vector<8x8xf32> to vector<8xf32>
    %116 = vector.shape_cast %115 : vector<8xf32> to vector<8x1xf32>
    %117 = vector.broadcast %116 : vector<8x1xf32> to vector<8x8xf32>
    %118 = arith.subf %114, %117 : vector<8x8xf32>
    %119 = math.exp %118 : vector<8x8xf32>
    %cst_51 = arith.constant dense<0.000000e+00> : vector<8xf32>
    %120 = vector.multi_reduction <add>, %119, %cst_51 [1] : vector<8x8xf32> to vector<8xf32>
    %121 = vector.shape_cast %120 : vector<8xf32> to vector<8x1xf32>
    %122 = tpu.reciprocal %121 {approx = true} : vector<8x1xf32> -> vector<8x1xf32>
    %123 = vector.broadcast %122 : vector<8x1xf32> to vector<8x8xf32>
    %124 = arith.mulf %119, %123 : vector<8x8xf32>
    %125 = arith.truncf %124 : vector<8x8xf32> to vector<8x8xbf16>
    %126 = vector.extract_strided_slice %49 {offsets = [0, 24], sizes = [8, 8], strides = [1, 1]} : vector<8x32xbf16> to vector<8x8xbf16>
    %cst_52 = arith.constant dense<0.000000e+00> : vector<8x8xf32>
    %127 = tpu.matmul %125, %126, %cst_52 {dimension_numbers = #tpu.dot_dimension_numbers<[1], [0], [0], [1], [0, 0, 1, 1], [], []>} : vector<8x8xbf16>, vector<8x8xbf16>, vector<8x8xf32> -> vector<8x8xf32>
    %128 = tpu.concatenate %70, %89, %108, %127 in 1 : vector<8x8xf32>, vector<8x8xf32>, vector<8x8xf32>, vector<8x8xf32> -> vector<8x32xf32>
    %129 = arith.truncf %128 : vector<8x32xf32> to vector<8x32xbf16>
    %cst_53 = arith.constant dense<0.000000e+00> : vector<8x32xf32>
    %130 = tpu.matmul %129, %32, %cst_53 {dimension_numbers = #tpu.dot_dimension_numbers<[1], [0], [0], [1], [0, 0, 1, 1], [], []>} : vector<8x32xbf16>, vector<32x32xbf16>, vector<8x32xf32> -> vector<8x32xf32>
    %131 = vector.broadcast %33 : vector<1x32xf32> to vector<8x32xf32>
    %132 = arith.addf %130, %131 : vector<8x32xf32>
    %133 = arith.addf %1, %132 : vector<8x32xf32>
    %c0_54 = arith.constant 0 : index
    %c0_55 = arith.constant 0 : index
    %c0_56 = arith.constant 0 : index
    %134 = vector.load %arg13[%c0_54, %c0_55, %c0_56] : memref<1x8x32xf32, #tpu.memory_space<vmem>>, vector<1x8x32xf32>
    %135 = vector.shape_cast %134 : vector<1x8x32xf32> to vector<8x32xf32>
    %136 = vector.shape_cast %133 : vector<8x32xf32> to vector<1x8x32xf32>
    tpu.vector_store %arg13[%c0_54, %c0_55, %c0_56], %136 {strides = array<i32>} : memref<1x8x32xf32, #tpu.memory_space<vmem>>, vector<1x8x32xf32>,
    return
  }
  func.func @transform_0(%arg0: i32) -> (i32, i32, i32) {
    %c0_i32 = arith.constant 0 : i32
    %c0_i32_0 = arith.constant 0 : i32
    %c0_i32_1 = arith.constant 0 : i32
    return %arg0, %c0_i32, %c0_i32_0 : i32, i32, i32
  }
  func.func @transform_1(%arg0: i32) -> (i32, i32, i32) {
    %c0_i32 = arith.constant 0 : i32
    %c0_i32_0 = arith.constant 0 : i32
    %c0_i32_1 = arith.constant 0 : i32
    return %arg0, %c0_i32, %c0_i32_0 : i32, i32, i32
  }
  func.func @transform_2(%arg0: i32) -> (i32, i32) {
    %c0_i32 = arith.constant 0 : i32
    %c0_i32_0 = arith.constant 0 : i32
    %c0_i32_1 = arith.constant 0 : i32
    return %c0_i32, %c0_i32_0 : i32, i32
  }
  func.func @transform_3(%arg0: i32) -> (i32, i32) {
    %c0_i32 = arith.constant 0 : i32
    %c0_i32_0 = arith.constant 0 : i32
    %c0_i32_1 = arith.constant 0 : i32
    return %c0_i32, %c0_i32_0 : i32, i32
  }
  func.func @transform_4(%arg0: i32) -> (i32, i32) {
    %c0_i32 = arith.constant 0 : i32
    %c0_i32_0 = arith.constant 0 : i32
    %c0_i32_1 = arith.constant 0 : i32
    return %c0_i32, %c0_i32_0 : i32, i32
  }
  func.func @transform_5(%arg0: i32) -> (i32, i32) {
    %c0_i32 = arith.constant 0 : i32
    %c0_i32_0 = arith.constant 0 : i32
    %c0_i32_1 = arith.constant 0 : i32
    return %c0_i32, %c0_i32_0 : i32, i32
  }
  func.func @transform_6(%arg0: i32) -> (i32, i32) {
    %c0_i32 = arith.constant 0 : i32
    %c0_i32_0 = arith.constant 0 : i32
    %c0_i32_1 = arith.constant 0 : i32
    return %c0_i32, %c0_i32_0 : i32, i32
  }
  func.func @transform_7(%arg0: i32) -> (i32, i32) {
    %c0_i32 = arith.constant 0 : i32
    %c0_i32_0 = arith.constant 0 : i32
    %c0_i32_1 = arith.constant 0 : i32
    return %c0_i32, %c0_i32_0 : i32, i32
  }
  func.func @transform_8(%arg0: i32) -> (i32, i32) {
    %c0_i32 = arith.constant 0 : i32
    %c0_i32_0 = arith.constant 0 : i32
    %c0_i32_1 = arith.constant 0 : i32
    return %c0_i32, %c0_i32_0 : i32, i32
  }
  func.func @transform_9(%arg0: i32) -> (i32, i32) {
    %c0_i32 = arith.constant 0 : i32
    %c0_i32_0 = arith.constant 0 : i32
    %c0_i32_1 = arith.constant 0 : i32
    return %c0_i32, %c0_i32_0 : i32, i32
  }
  func.func @transform_10(%arg0: i32) -> (i32, i32) {
    %c0_i32 = arith.constant 0 : i32
    %c0_i32_0 = arith.constant 0 : i32
    %c0_i32_1 = arith.constant 0 : i32
    return %c0_i32, %c0_i32_0 : i32, i32
  }
  func.func @transform_11(%arg0: i32) -> (i32, i32) {
    %c0_i32 = arith.constant 0 : i32
    %c0_i32_0 = arith.constant 0 : i32
    %c0_i32_1 = arith.constant 0 : i32
    return %c0_i32, %c0_i32_0 : i32, i32
  }
  func.func @transform_12(%arg0: i32) -> (i32, i32, i32) {
    %c0_i32 = arith.constant 0 : i32
    %c0_i32_0 = arith.constant 0 : i32
    %c0_i32_1 = arith.constant 0 : i32
    return %arg0, %c0_i32, %c0_i32_0 : i32, i32, i32
  }
}

module attributes {stable_mosaic.version = 11 : i64} {
  func.func @_ffn_sublayer_kernel(%arg0: i32, %arg1: i32, %arg2: memref<16x32xf32, #tpu.memory_space<vmem>>, %arg3: memref<1x32xf32, #tpu.memory_space<vmem>>, %arg4: memref<1x32xf32, #tpu.memory_space<vmem>>, %arg5: memref<32x128xbf16, #tpu.memory_space<vmem>>, %arg6: memref<1x128xf32, #tpu.memory_space<vmem>>, %arg7: memref<128x32xbf16, #tpu.memory_space<vmem>>, %arg8: memref<1x32xf32, #tpu.memory_space<vmem>>, %arg9: memref<16x32xf32, #tpu.memory_space<vmem>>, %arg10: memref<16x32xbf16, #tpu.memory_space<vmem>>, %arg11: memref<16x32xf32, #tpu.memory_space<vmem>>) attributes {dimension_semantics = [#tpu.dimension_semantics<parallel>, #tpu.dimension_semantics<arbitrary>], iteration_bounds = array<i64: 1, 1>, scalar_prefetch = 0 : i64, scratch_operands = 2 : i64, tpu.core_type = #tpu.core_type<tc>, window_params = [{transform_indices = @transform_0, window_bounds = array<i64: 16, 32>}, {pipeline_mode = #tpu.pipeline_mode<synchronous>, transform_indices = @transform_1, window_bounds = array<i64: 1, 32>}, {pipeline_mode = #tpu.pipeline_mode<synchronous>, transform_indices = @transform_2, window_bounds = array<i64: 1, 32>}, {transform_indices = @transform_3, window_bounds = array<i64: 32, 128>}, {transform_indices = @transform_4, window_bounds = array<i64: 1, 128>}, {transform_indices = @transform_5, window_bounds = array<i64: 128, 32>}, {pipeline_mode = #tpu.pipeline_mode<synchronous>, transform_indices = @transform_6, window_bounds = array<i64: 1, 32>}, {transform_indices = @transform_7, window_bounds = array<i64: 16, 32>}]} {
    %c0_i32 = arith.constant 0 : i32
    %0 = arith.cmpi eq, %arg1, %c0_i32 : i32
    %1 = arith.extui %0 : i1 to i32
    %c0_i32_0 = arith.constant 0 : i32
    %2 = arith.cmpi ne, %1, %c0_i32_0 : i32
    scf.if %2 {
      %c0_16 = arith.constant 0 : index
      %c0_17 = arith.constant 0 : index
      %20 = vector.load %arg2[%c0_16, %c0_17] : memref<16x32xf32, #tpu.memory_space<vmem>>, vector<16x32xf32>
      %c0_18 = arith.constant 0 : index
      %c0_19 = arith.constant 0 : index
      %21 = vector.load %arg3[%c0_18, %c0_19] : memref<1x32xf32, #tpu.memory_space<vmem>>, vector<1x32xf32>
      %c0_20 = arith.constant 0 : index
      %c0_21 = arith.constant 0 : index
      %22 = vector.load %arg4[%c0_20, %c0_21] : memref<1x32xf32, #tpu.memory_space<vmem>>, vector<1x32xf32>
      %cst_22 = arith.constant dense<0.000000e+00> : vector<16xf32>
      %23 = vector.multi_reduction <add>, %20, %cst_22 [1] : vector<16x32xf32> to vector<16xf32>
      %24 = vector.shape_cast %23 : vector<16xf32> to vector<16x1xf32>
      %cst_23 = arith.constant 3.200000e+01 : f32
      %25 = vector.broadcast %cst_23 : f32 to vector<16x1xf32>
      %26 = arith.divf %24, %25 : vector<16x1xf32>
      %27 = vector.broadcast %26 : vector<16x1xf32> to vector<16x32xf32>
      %28 = arith.subf %20, %27 : vector<16x32xf32>
      %29 = arith.mulf %28, %28 : vector<16x32xf32>
      %cst_24 = arith.constant dense<0.000000e+00> : vector<16xf32>
      %30 = vector.multi_reduction <add>, %29, %cst_24 [1] : vector<16x32xf32> to vector<16xf32>
      %31 = vector.shape_cast %30 : vector<16xf32> to vector<16x1xf32>
      %cst_25 = arith.constant 3.200000e+01 : f32
      %32 = vector.broadcast %cst_25 : f32 to vector<16x1xf32>
      %33 = arith.divf %31, %32 : vector<16x1xf32>
      %cst_26 = arith.constant 9.99999997E-7 : f32
      %34 = vector.broadcast %cst_26 : f32 to vector<16x1xf32>
      %35 = arith.addf %33, %34 : vector<16x1xf32>
      %36 = math.rsqrt %35 : vector<16x1xf32>
      %37 = vector.broadcast %36 : vector<16x1xf32> to vector<16x32xf32>
      %38 = arith.mulf %28, %37 : vector<16x32xf32>
      %39 = vector.broadcast %21 : vector<1x32xf32> to vector<16x32xf32>
      %40 = arith.mulf %38, %39 : vector<16x32xf32>
      %41 = vector.broadcast %22 : vector<1x32xf32> to vector<16x32xf32>
      %42 = arith.addf %40, %41 : vector<16x32xf32>
      %43 = arith.truncf %42 : vector<16x32xf32> to vector<16x32xbf16>
      %c0_27 = arith.constant 0 : index
      %c0_28 = arith.constant 0 : index
      %44 = vector.load %arg10[%c0_27, %c0_28] : memref<16x32xbf16, #tpu.memory_space<vmem>>, vector<16x32xbf16>
      tpu.vector_store %arg10[%c0_27, %c0_28], %43 {strides = array<i32>} : memref<16x32xbf16, #tpu.memory_space<vmem>>, vector<16x32xbf16>,
      %cst_29 = arith.constant 0.000000e+00 : f32
      %45 = vector.broadcast %cst_29 : f32 to vector<16x32xf32>
      %c0_30 = arith.constant 0 : index
      %c0_31 = arith.constant 0 : index
      %46 = vector.load %arg11[%c0_30, %c0_31] : memref<16x32xf32, #tpu.memory_space<vmem>>, vector<16x32xf32>
      tpu.vector_store %arg11[%c0_30, %c0_31], %45 {strides = array<i32>} : memref<16x32xf32, #tpu.memory_space<vmem>>, vector<16x32xf32>,
    } else {
    }
    %c0 = arith.constant 0 : index
    %c0_1 = arith.constant 0 : index
    %3 = vector.load %arg10[%c0, %c0_1] : memref<16x32xbf16, #tpu.memory_space<vmem>>, vector<16x32xbf16>
    %c0_2 = arith.constant 0 : index
    %c0_3 = arith.constant 0 : index
    %4 = vector.load %arg5[%c0_2, %c0_3] : memref<32x128xbf16, #tpu.memory_space<vmem>>, vector<32x128xbf16>
    %cst = arith.constant dense<0.000000e+00> : vector<16x128xf32>
    %5 = tpu.matmul %3, %4, %cst {dimension_numbers = #tpu.dot_dimension_numbers<[1], [0], [0], [1], [0, 0, 1, 1], [], []>} : vector<16x32xbf16>, vector<32x128xbf16>, vector<16x128xf32> -> vector<16x128xf32>
    %c0_4 = arith.constant 0 : index
    %c0_5 = arith.constant 0 : index
    %6 = vector.load %arg6[%c0_4, %c0_5] : memref<1x128xf32, #tpu.memory_space<vmem>>, vector<1x128xf32>
    %7 = vector.broadcast %6 : vector<1x128xf32> to vector<16x128xf32>
    %8 = arith.addf %5, %7 : vector<16x128xf32>
    %cst_6 = arith.constant 0.000000e+00 : f32
    %9 = vector.broadcast %cst_6 : f32 to vector<16x128xf32>
    %10 = arith.maximumf %8, %9 : vector<16x128xf32>
    %c0_7 = arith.constant 0 : index
    %c0_8 = arith.constant 0 : index
    %11 = vector.load %arg11[%c0_7, %c0_8] : memref<16x32xf32, #tpu.memory_space<vmem>>, vector<16x32xf32>
    %12 = arith.truncf %10 : vector<16x128xf32> to vector<16x128xbf16>
    %c0_9 = arith.constant 0 : index
    %c0_10 = arith.constant 0 : index
    %13 = vector.load %arg7[%c0_9, %c0_10] : memref<128x32xbf16, #tpu.memory_space<vmem>>, vector<128x32xbf16>
    %cst_11 = arith.constant dense<0.000000e+00> : vector<16x32xf32>
    %14 = tpu.matmul %12, %13, %cst_11 {dimension_numbers = #tpu.dot_dimension_numbers<[1], [0], [0], [1], [0, 0, 1, 1], [], []>} : vector<16x128xbf16>, vector<128x32xbf16>, vector<16x32xf32> -> vector<16x32xf32>
    %15 = arith.addf %11, %14 : vector<16x32xf32>
    %c0_12 = arith.constant 0 : index
    %c0_13 = arith.constant 0 : index
    %16 = vector.load %arg11[%c0_12, %c0_13] : memref<16x32xf32, #tpu.memory_space<vmem>>, vector<16x32xf32>
    tpu.vector_store %arg11[%c0_12, %c0_13], %15 {strides = array<i32>} : memref<16x32xf32, #tpu.memory_space<vmem>>, vector<16x32xf32>,
    %c0_i32_14 = arith.constant 0 : i32
    %17 = arith.cmpi eq, %arg1, %c0_i32_14 : i32
    %18 = arith.extui %17 : i1 to i32
    %c0_i32_15 = arith.constant 0 : i32
    %19 = arith.cmpi ne, %18, %c0_i32_15 : i32
    scf.if %19 {
      %c0_16 = arith.constant 0 : index
      %c0_17 = arith.constant 0 : index
      %20 = vector.load %arg2[%c0_16, %c0_17] : memref<16x32xf32, #tpu.memory_space<vmem>>, vector<16x32xf32>
      %c0_18 = arith.constant 0 : index
      %c0_19 = arith.constant 0 : index
      %21 = vector.load %arg11[%c0_18, %c0_19] : memref<16x32xf32, #tpu.memory_space<vmem>>, vector<16x32xf32>
      %22 = arith.addf %20, %21 : vector<16x32xf32>
      %c0_20 = arith.constant 0 : index
      %c0_21 = arith.constant 0 : index
      %23 = vector.load %arg8[%c0_20, %c0_21] : memref<1x32xf32, #tpu.memory_space<vmem>>, vector<1x32xf32>
      %24 = vector.broadcast %23 : vector<1x32xf32> to vector<16x32xf32>
      %25 = arith.addf %22, %24 : vector<16x32xf32>
      %c0_22 = arith.constant 0 : index
      %c0_23 = arith.constant 0 : index
      %26 = vector.load %arg9[%c0_22, %c0_23] : memref<16x32xf32, #tpu.memory_space<vmem>>, vector<16x32xf32>
      tpu.vector_store %arg9[%c0_22, %c0_23], %25 {strides = array<i32>} : memref<16x32xf32, #tpu.memory_space<vmem>>, vector<16x32xf32>,
    } else {
    }
    return
  }
  func.func @transform_0(%arg0: i32, %arg1: i32) -> (i32, i32) {
    %c0_i32 = arith.constant 0 : i32
    %c0_i32_0 = arith.constant 0 : i32
    return %arg0, %c0_i32 : i32, i32
  }
  func.func @transform_1(%arg0: i32, %arg1: i32) -> (i32, i32) {
    %c0_i32 = arith.constant 0 : i32
    %c0_i32_0 = arith.constant 0 : i32
    %c0_i32_1 = arith.constant 0 : i32
    return %c0_i32, %c0_i32_0 : i32, i32
  }
  func.func @transform_2(%arg0: i32, %arg1: i32) -> (i32, i32) {
    %c0_i32 = arith.constant 0 : i32
    %c0_i32_0 = arith.constant 0 : i32
    %c0_i32_1 = arith.constant 0 : i32
    return %c0_i32, %c0_i32_0 : i32, i32
  }
  func.func @transform_3(%arg0: i32, %arg1: i32) -> (i32, i32) {
    %c0_i32 = arith.constant 0 : i32
    %c0_i32_0 = arith.constant 0 : i32
    return %c0_i32, %arg1 : i32, i32
  }
  func.func @transform_4(%arg0: i32, %arg1: i32) -> (i32, i32) {
    %c0_i32 = arith.constant 0 : i32
    %c0_i32_0 = arith.constant 0 : i32
    return %c0_i32, %arg1 : i32, i32
  }
  func.func @transform_5(%arg0: i32, %arg1: i32) -> (i32, i32) {
    %c0_i32 = arith.constant 0 : i32
    %c0_i32_0 = arith.constant 0 : i32
    return %arg1, %c0_i32 : i32, i32
  }
  func.func @transform_6(%arg0: i32, %arg1: i32) -> (i32, i32) {
    %c0_i32 = arith.constant 0 : i32
    %c0_i32_0 = arith.constant 0 : i32
    %c0_i32_1 = arith.constant 0 : i32
    return %c0_i32, %c0_i32_0 : i32, i32
  }
  func.func @transform_7(%arg0: i32, %arg1: i32) -> (i32, i32) {
    %c0_i32 = arith.constant 0 : i32
    %c0_i32_0 = arith.constant 0 : i32
    return %arg0, %c0_i32 : i32, i32
  }
}

module attributes {stable_mosaic.version = 11 : i64} {
  func.func @_src_attn_sublayer_kernel(%arg0: i32, %arg1: memref<1x8x32xf32, #tpu.memory_space<vmem>>, %arg2: memref<1x8x32xf32, #tpu.memory_space<vmem>>, %arg3: memref<1x1x8xi8, #tpu.memory_space<vmem>>, %arg4: memref<1x32xf32, #tpu.memory_space<vmem>>, %arg5: memref<1x32xf32, #tpu.memory_space<vmem>>, %arg6: memref<32x32xbf16, #tpu.memory_space<vmem>>, %arg7: memref<1x32xf32, #tpu.memory_space<vmem>>, %arg8: memref<32x32xbf16, #tpu.memory_space<vmem>>, %arg9: memref<1x32xf32, #tpu.memory_space<vmem>>, %arg10: memref<32x32xbf16, #tpu.memory_space<vmem>>, %arg11: memref<1x32xf32, #tpu.memory_space<vmem>>, %arg12: memref<32x32xbf16, #tpu.memory_space<vmem>>, %arg13: memref<1x32xf32, #tpu.memory_space<vmem>>, %arg14: memref<1x8x32xf32, #tpu.memory_space<vmem>>) attributes {dimension_semantics = [#tpu.dimension_semantics<parallel>], iteration_bounds = array<i64: 2>, scalar_prefetch = 0 : i64, scratch_operands = 0 : i64, tpu.core_type = #tpu.core_type<tc>, window_params = [{transform_indices = @transform_0, window_bounds = array<i64: 1, 8, 32>}, {transform_indices = @transform_1, window_bounds = array<i64: 1, 8, 32>}, {transform_indices = @transform_2, window_bounds = array<i64: 1, 1, 8>}, {pipeline_mode = #tpu.pipeline_mode<synchronous>, transform_indices = @transform_3, window_bounds = array<i64: 1, 32>}, {pipeline_mode = #tpu.pipeline_mode<synchronous>, transform_indices = @transform_4, window_bounds = array<i64: 1, 32>}, {pipeline_mode = #tpu.pipeline_mode<synchronous>, transform_indices = @transform_5, window_bounds = array<i64: 32, 32>}, {pipeline_mode = #tpu.pipeline_mode<synchronous>, transform_indices = @transform_6, window_bounds = array<i64: 1, 32>}, {pipeline_mode = #tpu.pipeline_mode<synchronous>, transform_indices = @transform_7, window_bounds = array<i64: 32, 32>}, {pipeline_mode = #tpu.pipeline_mode<synchronous>, transform_indices = @transform_8, window_bounds = array<i64: 1, 32>}, {pipeline_mode = #tpu.pipeline_mode<synchronous>, transform_indices = @transform_9, window_bounds = array<i64: 32, 32>}, {pipeline_mode = #tpu.pipeline_mode<synchronous>, transform_indices = @transform_10, window_bounds = array<i64: 1, 32>}, {pipeline_mode = #tpu.pipeline_mode<synchronous>, transform_indices = @transform_11, window_bounds = array<i64: 32, 32>}, {pipeline_mode = #tpu.pipeline_mode<synchronous>, transform_indices = @transform_12, window_bounds = array<i64: 1, 32>}, {transform_indices = @transform_13, window_bounds = array<i64: 1, 8, 32>}]} {
    %c0 = arith.constant 0 : index
    %c0_0 = arith.constant 0 : index
    %c0_1 = arith.constant 0 : index
    %0 = vector.load %arg1[%c0, %c0_0, %c0_1] : memref<1x8x32xf32, #tpu.memory_space<vmem>>, vector<1x8x32xf32>
    %1 = vector.shape_cast %0 : vector<1x8x32xf32> to vector<8x32xf32>
    %c0_2 = arith.constant 0 : index
    %c0_3 = arith.constant 0 : index
    %2 = vector.load %arg4[%c0_2, %c0_3] : memref<1x32xf32, #tpu.memory_space<vmem>>, vector<1x32xf32>
    %c0_4 = arith.constant 0 : index
    %c0_5 = arith.constant 0 : index
    %3 = vector.load %arg5[%c0_4, %c0_5] : memref<1x32xf32, #tpu.memory_space<vmem>>, vector<1x32xf32>
    %cst = arith.constant dense<0.000000e+00> : vector<8xf32>
    %4 = vector.multi_reduction <add>, %1, %cst [1] : vector<8x32xf32> to vector<8xf32>
    %5 = vector.shape_cast %4 : vector<8xf32> to vector<8x1xf32>
    %cst_6 = arith.constant 3.200000e+01 : f32
    %6 = vector.broadcast %cst_6 : f32 to vector<8x1xf32>
    %7 = arith.divf %5, %6 : vector<8x1xf32>
    %8 = vector.broadcast %7 : vector<8x1xf32> to vector<8x32xf32>
    %9 = arith.subf %1, %8 : vector<8x32xf32>
    %10 = arith.mulf %9, %9 : vector<8x32xf32>
    %cst_7 = arith.constant dense<0.000000e+00> : vector<8xf32>
    %11 = vector.multi_reduction <add>, %10, %cst_7 [1] : vector<8x32xf32> to vector<8xf32>
    %12 = vector.shape_cast %11 : vector<8xf32> to vector<8x1xf32>
    %cst_8 = arith.constant 3.200000e+01 : f32
    %13 = vector.broadcast %cst_8 : f32 to vector<8x1xf32>
    %14 = arith.divf %12, %13 : vector<8x1xf32>
    %cst_9 = arith.constant 9.99999997E-7 : f32
    %15 = vector.broadcast %cst_9 : f32 to vector<8x1xf32>
    %16 = arith.addf %14, %15 : vector<8x1xf32>
    %17 = math.rsqrt %16 : vector<8x1xf32>
    %18 = vector.broadcast %17 : vector<8x1xf32> to vector<8x32xf32>
    %19 = arith.mulf %9, %18 : vector<8x32xf32>
    %20 = vector.broadcast %2 : vector<1x32xf32> to vector<8x32xf32>
    %21 = arith.mulf %19, %20 : vector<8x32xf32>
    %22 = vector.broadcast %3 : vector<1x32xf32> to vector<8x32xf32>
    %23 = arith.addf %21, %22 : vector<8x32xf32>
    %c0_10 = arith.constant 0 : index
    %c0_11 = arith.constant 0 : index
    %c0_12 = arith.constant 0 : index
    %24 = vector.load %arg2[%c0_10, %c0_11, %c0_12] : memref<1x8x32xf32, #tpu.memory_space<vmem>>, vector<1x8x32xf32>
    %25 = vector.shape_cast %24 : vector<1x8x32xf32> to vector<8x32xf32>
    %c0_13 = arith.constant 0 : index
    %c0_14 = arith.constant 0 : index
    %c0_15 = arith.constant 0 : index
    %26 = vector.load %arg3[%c0_13, %c0_14, %c0_15] : memref<1x1x8xi8, #tpu.memory_space<vmem>>, vector<1x1x8xi8>
    %27 = vector.shape_cast %26 : vector<1x1x8xi8> to vector<1x8xi8>
    %c0_16 = arith.constant 0 : index
    %c0_17 = arith.constant 0 : index
    %28 = vector.load %arg6[%c0_16, %c0_17] : memref<32x32xbf16, #tpu.memory_space<vmem>>, vector<32x32xbf16>
    %c0_18 = arith.constant 0 : index
    %c0_19 = arith.constant 0 : index
    %29 = vector.load %arg7[%c0_18, %c0_19] : memref<1x32xf32, #tpu.memory_space<vmem>>, vector<1x32xf32>
    %c0_20 = arith.constant 0 : index
    %c0_21 = arith.constant 0 : index
    %30 = vector.load %arg8[%c0_20, %c0_21] : memref<32x32xbf16, #tpu.memory_space<vmem>>, vector<32x32xbf16>
    %c0_22 = arith.constant 0 : index
    %c0_23 = arith.constant 0 : index
    %31 = vector.load %arg9[%c0_22, %c0_23] : memref<1x32xf32, #tpu.memory_space<vmem>>, vector<1x32xf32>
    %c0_24 = arith.constant 0 : index
    %c0_25 = arith.constant 0 : index
    %32 = vector.load %arg10[%c0_24, %c0_25] : memref<32x32xbf16, #tpu.memory_space<vmem>>, vector<32x32xbf16>
    %c0_26 = arith.constant 0 : index
    %c0_27 = arith.constant 0 : index
    %33 = vector.load %arg11[%c0_26, %c0_27] : memref<1x32xf32, #tpu.memory_space<vmem>>, vector<1x32xf32>
    %c0_28 = arith.constant 0 : index
    %c0_29 = arith.constant 0 : index
    %34 = vector.load %arg12[%c0_28, %c0_29] : memref<32x32xbf16, #tpu.memory_space<vmem>>, vector<32x32xbf16>
    %c0_30 = arith.constant 0 : index
    %c0_31 = arith.constant 0 : index
    %35 = vector.load %arg13[%c0_30, %c0_31] : memref<1x32xf32, #tpu.memory_space<vmem>>, vector<1x32xf32>
    %36 = arith.truncf %23 : vector<8x32xf32> to vector<8x32xbf16>
    %37 = arith.truncf %25 : vector<8x32xf32> to vector<8x32xbf16>
    %cst_32 = arith.constant dense<0.000000e+00> : vector<8x32xf32>
    %38 = tpu.matmul %36, %28, %cst_32 {dimension_numbers = #tpu.dot_dimension_numbers<[1], [0], [0], [1], [0, 0, 1, 1], [], []>} : vector<8x32xbf16>, vector<32x32xbf16>, vector<8x32xf32> -> vector<8x32xf32>
    %39 = vector.broadcast %29 : vector<1x32xf32> to vector<8x32xf32>
    %40 = arith.addf %38, %39 : vector<8x32xf32>
    %cst_33 = arith.constant 0.353553385 : f32
    %41 = vector.broadcast %cst_33 : f32 to vector<8x32xf32>
    %42 = arith.mulf %40, %41 : vector<8x32xf32>
    %cst_34 = arith.constant dense<0.000000e+00> : vector<8x32xf32>
    %43 = tpu.matmul %37, %30, %cst_34 {dimension_numbers = #tpu.dot_dimension_numbers<[1], [0], [0], [1], [0, 0, 1, 1], [], []>} : vector<8x32xbf16>, vector<32x32xbf16>, vector<8x32xf32> -> vector<8x32xf32>
    %44 = vector.broadcast %31 : vector<1x32xf32> to vector<8x32xf32>
    %45 = arith.addf %43, %44 : vector<8x32xf32>
    %cst_35 = arith.constant dense<0.000000e+00> : vector<8x32xf32>
    %46 = tpu.matmul %37, %32, %cst_35 {dimension_numbers = #tpu.dot_dimension_numbers<[1], [0], [0], [1], [0, 0, 1, 1], [], []>} : vector<8x32xbf16>, vector<32x32xbf16>, vector<8x32xf32> -> vector<8x32xf32>
    %47 = vector.broadcast %33 : vector<1x32xf32> to vector<8x32xf32>
    %48 = arith.addf %46, %47 : vector<8x32xf32>
    %49 = arith.truncf %42 : vector<8x32xf32> to vector<8x32xbf16>
    %50 = arith.truncf %45 : vector<8x32xf32> to vector<8x32xbf16>
    %51 = arith.truncf %48 : vector<8x32xf32> to vector<8x32xbf16>
    %c0_i8 = arith.constant 0 : i8
    %52 = vector.broadcast %c0_i8 : i8 to vector<1x8xi8>
    %53 = arith.cmpi ne, %27, %52 : vector<1x8xi8>
    %54 = vector.extract_strided_slice %49 {offsets = [0, 0], sizes = [8, 8], strides = [1, 1]} : vector<8x32xbf16> to vector<8x8xbf16>
    %55 = vector.extract_strided_slice %50 {offsets = [0, 0], sizes = [8, 8], strides = [1, 1]} : vector<8x32xbf16> to vector<8x8xbf16>
    %56 = tpu.transpose %55, [1, 0] : vector<8x8xbf16> -> vector<8x8xbf16>
    %cst_36 = arith.constant dense<0.000000e+00> : vector<8x8xf32>
    %57 = tpu.matmul %54, %56, %cst_36 {dimension_numbers = #tpu.dot_dimension_numbers<[1], [0], [0], [1], [0, 0, 1, 1], [], []>} : vector<8x8xbf16>, vector<8x8xbf16>, vector<8x8xf32> -> vector<8x8xf32>
    %cst_37 = arith.constant -1.000000e+30 : f32
    %58 = vector.shape_cast %53 : vector<1x8xi1> to vector<1x8xi1>
    %59 = vector.broadcast %58 : vector<1x8xi1> to vector<8x8xi1>
    %60 = vector.broadcast %cst_37 : f32 to vector<8x8xf32>
    %61 = arith.select %59, %60, %57 : vector<8x8xi1>, vector<8x8xf32>
    %cst_38 = arith.constant dense<0xFF800000> : vector<8xf32>
    %62 = vector.multi_reduction <maximumf>, %61, %cst_38 [1] : vector<8x8xf32> to vector<8xf32>
    %63 = vector.shape_cast %62 : vector<8xf32> to vector<8x1xf32>
    %64 = vector.broadcast %63 : vector<8x1xf32> to vector<8x8xf32>
    %65 = arith.subf %61, %64 : vector<8x8xf32>
    %66 = math.exp %65 : vector<8x8xf32>
    %cst_39 = arith.constant dense<0.000000e+00> : vector<8xf32>
    %67 = vector.multi_reduction <add>, %66, %cst_39 [1] : vector<8x8xf32> to vector<8xf32>
    %68 = vector.shape_cast %67 : vector<8xf32> to vector<8x1xf32>
    %69 = tpu.reciprocal %68 {approx = true} : vector<8x1xf32> -> vector<8x1xf32>
    %70 = vector.broadcast %69 : vector<8x1xf32> to vector<8x8xf32>
    %71 = arith.mulf %66, %70 : vector<8x8xf32>
    %72 = arith.truncf %71 : vector<8x8xf32> to vector<8x8xbf16>
    %73 = vector.extract_strided_slice %51 {offsets = [0, 0], sizes = [8, 8], strides = [1, 1]} : vector<8x32xbf16> to vector<8x8xbf16>
    %cst_40 = arith.constant dense<0.000000e+00> : vector<8x8xf32>
    %74 = tpu.matmul %72, %73, %cst_40 {dimension_numbers = #tpu.dot_dimension_numbers<[1], [0], [0], [1], [0, 0, 1, 1], [], []>} : vector<8x8xbf16>, vector<8x8xbf16>, vector<8x8xf32> -> vector<8x8xf32>
    %75 = vector.extract_strided_slice %49 {offsets = [0, 8], sizes = [8, 8], strides = [1, 1]} : vector<8x32xbf16> to vector<8x8xbf16>
    %76 = vector.extract_strided_slice %50 {offsets = [0, 8], sizes = [8, 8], strides = [1, 1]} : vector<8x32xbf16> to vector<8x8xbf16>
    %77 = tpu.transpose %76, [1, 0] : vector<8x8xbf16> -> vector<8x8xbf16>
    %cst_41 = arith.constant dense<0.000000e+00> : vector<8x8xf32>
    %78 = tpu.matmul %75, %77, %cst_41 {dimension_numbers = #tpu.dot_dimension_numbers<[1], [0], [0], [1], [0, 0, 1, 1], [], []>} : vector<8x8xbf16>, vector<8x8xbf16>, vector<8x8xf32> -> vector<8x8xf32>
    %cst_42 = arith.constant -1.000000e+30 : f32
    %79 = vector.shape_cast %53 : vector<1x8xi1> to vector<1x8xi1>
    %80 = vector.broadcast %79 : vector<1x8xi1> to vector<8x8xi1>
    %81 = vector.broadcast %cst_42 : f32 to vector<8x8xf32>
    %82 = arith.select %80, %81, %78 : vector<8x8xi1>, vector<8x8xf32>
    %cst_43 = arith.constant dense<0xFF800000> : vector<8xf32>
    %83 = vector.multi_reduction <maximumf>, %82, %cst_43 [1] : vector<8x8xf32> to vector<8xf32>
    %84 = vector.shape_cast %83 : vector<8xf32> to vector<8x1xf32>
    %85 = vector.broadcast %84 : vector<8x1xf32> to vector<8x8xf32>
    %86 = arith.subf %82, %85 : vector<8x8xf32>
    %87 = math.exp %86 : vector<8x8xf32>
    %cst_44 = arith.constant dense<0.000000e+00> : vector<8xf32>
    %88 = vector.multi_reduction <add>, %87, %cst_44 [1] : vector<8x8xf32> to vector<8xf32>
    %89 = vector.shape_cast %88 : vector<8xf32> to vector<8x1xf32>
    %90 = tpu.reciprocal %89 {approx = true} : vector<8x1xf32> -> vector<8x1xf32>
    %91 = vector.broadcast %90 : vector<8x1xf32> to vector<8x8xf32>
    %92 = arith.mulf %87, %91 : vector<8x8xf32>
    %93 = arith.truncf %92 : vector<8x8xf32> to vector<8x8xbf16>
    %94 = vector.extract_strided_slice %51 {offsets = [0, 8], sizes = [8, 8], strides = [1, 1]} : vector<8x32xbf16> to vector<8x8xbf16>
    %cst_45 = arith.constant dense<0.000000e+00> : vector<8x8xf32>
    %95 = tpu.matmul %93, %94, %cst_45 {dimension_numbers = #tpu.dot_dimension_numbers<[1], [0], [0], [1], [0, 0, 1, 1], [], []>} : vector<8x8xbf16>, vector<8x8xbf16>, vector<8x8xf32> -> vector<8x8xf32>
    %96 = vector.extract_strided_slice %49 {offsets = [0, 16], sizes = [8, 8], strides = [1, 1]} : vector<8x32xbf16> to vector<8x8xbf16>
    %97 = vector.extract_strided_slice %50 {offsets = [0, 16], sizes = [8, 8], strides = [1, 1]} : vector<8x32xbf16> to vector<8x8xbf16>
    %98 = tpu.transpose %97, [1, 0] : vector<8x8xbf16> -> vector<8x8xbf16>
    %cst_46 = arith.constant dense<0.000000e+00> : vector<8x8xf32>
    %99 = tpu.matmul %96, %98, %cst_46 {dimension_numbers = #tpu.dot_dimension_numbers<[1], [0], [0], [1], [0, 0, 1, 1], [], []>} : vector<8x8xbf16>, vector<8x8xbf16>, vector<8x8xf32> -> vector<8x8xf32>
    %cst_47 = arith.constant -1.000000e+30 : f32
    %100 = vector.shape_cast %53 : vector<1x8xi1> to vector<1x8xi1>
    %101 = vector.broadcast %100 : vector<1x8xi1> to vector<8x8xi1>
    %102 = vector.broadcast %cst_47 : f32 to vector<8x8xf32>
    %103 = arith.select %101, %102, %99 : vector<8x8xi1>, vector<8x8xf32>
    %cst_48 = arith.constant dense<0xFF800000> : vector<8xf32>
    %104 = vector.multi_reduction <maximumf>, %103, %cst_48 [1] : vector<8x8xf32> to vector<8xf32>
    %105 = vector.shape_cast %104 : vector<8xf32> to vector<8x1xf32>
    %106 = vector.broadcast %105 : vector<8x1xf32> to vector<8x8xf32>
    %107 = arith.subf %103, %106 : vector<8x8xf32>
    %108 = math.exp %107 : vector<8x8xf32>
    %cst_49 = arith.constant dense<0.000000e+00> : vector<8xf32>
    %109 = vector.multi_reduction <add>, %108, %cst_49 [1] : vector<8x8xf32> to vector<8xf32>
    %110 = vector.shape_cast %109 : vector<8xf32> to vector<8x1xf32>
    %111 = tpu.reciprocal %110 {approx = true} : vector<8x1xf32> -> vector<8x1xf32>
    %112 = vector.broadcast %111 : vector<8x1xf32> to vector<8x8xf32>
    %113 = arith.mulf %108, %112 : vector<8x8xf32>
    %114 = arith.truncf %113 : vector<8x8xf32> to vector<8x8xbf16>
    %115 = vector.extract_strided_slice %51 {offsets = [0, 16], sizes = [8, 8], strides = [1, 1]} : vector<8x32xbf16> to vector<8x8xbf16>
    %cst_50 = arith.constant dense<0.000000e+00> : vector<8x8xf32>
    %116 = tpu.matmul %114, %115, %cst_50 {dimension_numbers = #tpu.dot_dimension_numbers<[1], [0], [0], [1], [0, 0, 1, 1], [], []>} : vector<8x8xbf16>, vector<8x8xbf16>, vector<8x8xf32> -> vector<8x8xf32>
    %117 = vector.extract_strided_slice %49 {offsets = [0, 24], sizes = [8, 8], strides = [1, 1]} : vector<8x32xbf16> to vector<8x8xbf16>
    %118 = vector.extract_strided_slice %50 {offsets = [0, 24], sizes = [8, 8], strides = [1, 1]} : vector<8x32xbf16> to vector<8x8xbf16>
    %119 = tpu.transpose %118, [1, 0] : vector<8x8xbf16> -> vector<8x8xbf16>
    %cst_51 = arith.constant dense<0.000000e+00> : vector<8x8xf32>
    %120 = tpu.matmul %117, %119, %cst_51 {dimension_numbers = #tpu.dot_dimension_numbers<[1], [0], [0], [1], [0, 0, 1, 1], [], []>} : vector<8x8xbf16>, vector<8x8xbf16>, vector<8x8xf32> -> vector<8x8xf32>
    %cst_52 = arith.constant -1.000000e+30 : f32
    %121 = vector.shape_cast %53 : vector<1x8xi1> to vector<1x8xi1>
    %122 = vector.broadcast %121 : vector<1x8xi1> to vector<8x8xi1>
    %123 = vector.broadcast %cst_52 : f32 to vector<8x8xf32>
    %124 = arith.select %122, %123, %120 : vector<8x8xi1>, vector<8x8xf32>
    %cst_53 = arith.constant dense<0xFF800000> : vector<8xf32>
    %125 = vector.multi_reduction <maximumf>, %124, %cst_53 [1] : vector<8x8xf32> to vector<8xf32>
    %126 = vector.shape_cast %125 : vector<8xf32> to vector<8x1xf32>
    %127 = vector.broadcast %126 : vector<8x1xf32> to vector<8x8xf32>
    %128 = arith.subf %124, %127 : vector<8x8xf32>
    %129 = math.exp %128 : vector<8x8xf32>
    %cst_54 = arith.constant dense<0.000000e+00> : vector<8xf32>
    %130 = vector.multi_reduction <add>, %129, %cst_54 [1] : vector<8x8xf32> to vector<8xf32>
    %131 = vector.shape_cast %130 : vector<8xf32> to vector<8x1xf32>
    %132 = tpu.reciprocal %131 {approx = true} : vector<8x1xf32> -> vector<8x1xf32>
    %133 = vector.broadcast %132 : vector<8x1xf32> to vector<8x8xf32>
    %134 = arith.mulf %129, %133 : vector<8x8xf32>
    %135 = arith.truncf %134 : vector<8x8xf32> to vector<8x8xbf16>
    %136 = vector.extract_strided_slice %51 {offsets = [0, 24], sizes = [8, 8], strides = [1, 1]} : vector<8x32xbf16> to vector<8x8xbf16>
    %cst_55 = arith.constant dense<0.000000e+00> : vector<8x8xf32>
    %137 = tpu.matmul %135, %136, %cst_55 {dimension_numbers = #tpu.dot_dimension_numbers<[1], [0], [0], [1], [0, 0, 1, 1], [], []>} : vector<8x8xbf16>, vector<8x8xbf16>, vector<8x8xf32> -> vector<8x8xf32>
    %138 = tpu.concatenate %74, %95, %116, %137 in 1 : vector<8x8xf32>, vector<8x8xf32>, vector<8x8xf32>, vector<8x8xf32> -> vector<8x32xf32>
    %139 = arith.truncf %138 : vector<8x32xf32> to vector<8x32xbf16>
    %cst_56 = arith.constant dense<0.000000e+00> : vector<8x32xf32>
    %140 = tpu.matmul %139, %34, %cst_56 {dimension_numbers = #tpu.dot_dimension_numbers<[1], [0], [0], [1], [0, 0, 1, 1], [], []>} : vector<8x32xbf16>, vector<32x32xbf16>, vector<8x32xf32> -> vector<8x32xf32>
    %141 = vector.broadcast %35 : vector<1x32xf32> to vector<8x32xf32>
    %142 = arith.addf %140, %141 : vector<8x32xf32>
    %143 = arith.addf %1, %142 : vector<8x32xf32>
    %c0_57 = arith.constant 0 : index
    %c0_58 = arith.constant 0 : index
    %c0_59 = arith.constant 0 : index
    %144 = vector.load %arg14[%c0_57, %c0_58, %c0_59] : memref<1x8x32xf32, #tpu.memory_space<vmem>>, vector<1x8x32xf32>
    %145 = vector.shape_cast %144 : vector<1x8x32xf32> to vector<8x32xf32>
    %146 = vector.shape_cast %143 : vector<8x32xf32> to vector<1x8x32xf32>
    tpu.vector_store %arg14[%c0_57, %c0_58, %c0_59], %146 {strides = array<i32>} : memref<1x8x32xf32, #tpu.memory_space<vmem>>, vector<1x8x32xf32>,
    return
  }
  func.func @transform_0(%arg0: i32) -> (i32, i32, i32) {
    %c0_i32 = arith.constant 0 : i32
    %c0_i32_0 = arith.constant 0 : i32
    %c0_i32_1 = arith.constant 0 : i32
    return %arg0, %c0_i32, %c0_i32_0 : i32, i32, i32
  }
  func.func @transform_1(%arg0: i32) -> (i32, i32, i32) {
    %c0_i32 = arith.constant 0 : i32
    %c0_i32_0 = arith.constant 0 : i32
    %c0_i32_1 = arith.constant 0 : i32
    return %arg0, %c0_i32, %c0_i32_0 : i32, i32, i32
  }
  func.func @transform_2(%arg0: i32) -> (i32, i32, i32) {
    %c0_i32 = arith.constant 0 : i32
    %c0_i32_0 = arith.constant 0 : i32
    %c0_i32_1 = arith.constant 0 : i32
    return %arg0, %c0_i32, %c0_i32_0 : i32, i32, i32
  }
  func.func @transform_3(%arg0: i32) -> (i32, i32) {
    %c0_i32 = arith.constant 0 : i32
    %c0_i32_0 = arith.constant 0 : i32
    %c0_i32_1 = arith.constant 0 : i32
    return %c0_i32, %c0_i32_0 : i32, i32
  }
  func.func @transform_4(%arg0: i32) -> (i32, i32) {
    %c0_i32 = arith.constant 0 : i32
    %c0_i32_0 = arith.constant 0 : i32
    %c0_i32_1 = arith.constant 0 : i32
    return %c0_i32, %c0_i32_0 : i32, i32
  }
  func.func @transform_5(%arg0: i32) -> (i32, i32) {
    %c0_i32 = arith.constant 0 : i32
    %c0_i32_0 = arith.constant 0 : i32
    %c0_i32_1 = arith.constant 0 : i32
    return %c0_i32, %c0_i32_0 : i32, i32
  }
  func.func @transform_6(%arg0: i32) -> (i32, i32) {
    %c0_i32 = arith.constant 0 : i32
    %c0_i32_0 = arith.constant 0 : i32
    %c0_i32_1 = arith.constant 0 : i32
    return %c0_i32, %c0_i32_0 : i32, i32
  }
  func.func @transform_7(%arg0: i32) -> (i32, i32) {
    %c0_i32 = arith.constant 0 : i32
    %c0_i32_0 = arith.constant 0 : i32
    %c0_i32_1 = arith.constant 0 : i32
    return %c0_i32, %c0_i32_0 : i32, i32
  }
  func.func @transform_8(%arg0: i32) -> (i32, i32) {
    %c0_i32 = arith.constant 0 : i32
    %c0_i32_0 = arith.constant 0 : i32
    %c0_i32_1 = arith.constant 0 : i32
    return %c0_i32, %c0_i32_0 : i32, i32
  }
  func.func @transform_9(%arg0: i32) -> (i32, i32) {
    %c0_i32 = arith.constant 0 : i32
    %c0_i32_0 = arith.constant 0 : i32
    %c0_i32_1 = arith.constant 0 : i32
    return %c0_i32, %c0_i32_0 : i32, i32
  }
  func.func @transform_10(%arg0: i32) -> (i32, i32) {
    %c0_i32 = arith.constant 0 : i32
    %c0_i32_0 = arith.constant 0 : i32
    %c0_i32_1 = arith.constant 0 : i32
    return %c0_i32, %c0_i32_0 : i32, i32
  }
  func.func @transform_11(%arg0: i32) -> (i32, i32) {
    %c0_i32 = arith.constant 0 : i32
    %c0_i32_0 = arith.constant 0 : i32
    %c0_i32_1 = arith.constant 0 : i32
    return %c0_i32, %c0_i32_0 : i32, i32
  }
  func.func @transform_12(%arg0: i32) -> (i32, i32) {
    %c0_i32 = arith.constant 0 : i32
    %c0_i32_0 = arith.constant 0 : i32
    %c0_i32_1 = arith.constant 0 : i32
    return %c0_i32, %c0_i32_0 : i32, i32
  }
  func.func @transform_13(%arg0: i32) -> (i32, i32, i32) {
    %c0_i32 = arith.constant 0 : i32
    %c0_i32_0 = arith.constant 0 : i32
    %c0_i32_1 = arith.constant 0 : i32
    return %arg0, %c0_i32, %c0_i32_0 : i32, i32, i32
  }
}

module attributes {stable_mosaic.version = 11 : i64} {
  func.func @_gen_logits_kernel(%arg0: i32, %arg1: i32, %arg2: memref<16x32xf32, #tpu.memory_space<vmem>>, %arg3: memref<1x32xf32, #tpu.memory_space<vmem>>, %arg4: memref<1x32xf32, #tpu.memory_space<vmem>>, %arg5: memref<32x64xbf16, #tpu.memory_space<vmem>>, %arg6: memref<1x64xf32, #tpu.memory_space<vmem>>, %arg7: memref<16x64xbf16, #tpu.memory_space<vmem>>, %arg8: memref<16x1xf32, #tpu.memory_space<vmem>>, %arg9: memref<16x32xbf16, #tpu.memory_space<vmem>>, %arg10: memref<16x1xf32, #tpu.memory_space<vmem>>, %arg11: memref<16x1xf32, #tpu.memory_space<vmem>>) attributes {dimension_semantics = [#tpu.dimension_semantics<parallel>, #tpu.dimension_semantics<arbitrary>], iteration_bounds = array<i64: 1, 1>, scalar_prefetch = 0 : i64, scratch_operands = 3 : i64, tpu.core_type = #tpu.core_type<tc>, window_params = [{transform_indices = @transform_0, window_bounds = array<i64: 16, 32>}, {pipeline_mode = #tpu.pipeline_mode<synchronous>, transform_indices = @transform_1, window_bounds = array<i64: 1, 32>}, {pipeline_mode = #tpu.pipeline_mode<synchronous>, transform_indices = @transform_2, window_bounds = array<i64: 1, 32>}, {transform_indices = @transform_3, window_bounds = array<i64: 32, 64>}, {transform_indices = @transform_4, window_bounds = array<i64: 1, 64>}, {transform_indices = @transform_5, window_bounds = array<i64: 16, 64>}, {transform_indices = @transform_6, window_bounds = array<i64: 16, 1>}]} {
    %c0_i32 = arith.constant 0 : i32
    %0 = arith.cmpi eq, %arg1, %c0_i32 : i32
    %1 = arith.extui %0 : i1 to i32
    %c0_i32_0 = arith.constant 0 : i32
    %2 = arith.cmpi ne, %1, %c0_i32_0 : i32
    scf.if %2 {
      %c0_21 = arith.constant 0 : index
      %c0_22 = arith.constant 0 : index
      %32 = vector.load %arg2[%c0_21, %c0_22] : memref<16x32xf32, #tpu.memory_space<vmem>>, vector<16x32xf32>
      %c0_23 = arith.constant 0 : index
      %c0_24 = arith.constant 0 : index
      %33 = vector.load %arg3[%c0_23, %c0_24] : memref<1x32xf32, #tpu.memory_space<vmem>>, vector<1x32xf32>
      %c0_25 = arith.constant 0 : index
      %c0_26 = arith.constant 0 : index
      %34 = vector.load %arg4[%c0_25, %c0_26] : memref<1x32xf32, #tpu.memory_space<vmem>>, vector<1x32xf32>
      %cst_27 = arith.constant dense<0.000000e+00> : vector<16xf32>
      %35 = vector.multi_reduction <add>, %32, %cst_27 [1] : vector<16x32xf32> to vector<16xf32>
      %36 = vector.shape_cast %35 : vector<16xf32> to vector<16x1xf32>
      %cst_28 = arith.constant 3.200000e+01 : f32
      %37 = vector.broadcast %cst_28 : f32 to vector<16x1xf32>
      %38 = arith.divf %36, %37 : vector<16x1xf32>
      %39 = vector.broadcast %38 : vector<16x1xf32> to vector<16x32xf32>
      %40 = arith.subf %32, %39 : vector<16x32xf32>
      %41 = arith.mulf %40, %40 : vector<16x32xf32>
      %cst_29 = arith.constant dense<0.000000e+00> : vector<16xf32>
      %42 = vector.multi_reduction <add>, %41, %cst_29 [1] : vector<16x32xf32> to vector<16xf32>
      %43 = vector.shape_cast %42 : vector<16xf32> to vector<16x1xf32>
      %cst_30 = arith.constant 3.200000e+01 : f32
      %44 = vector.broadcast %cst_30 : f32 to vector<16x1xf32>
      %45 = arith.divf %43, %44 : vector<16x1xf32>
      %cst_31 = arith.constant 9.99999997E-7 : f32
      %46 = vector.broadcast %cst_31 : f32 to vector<16x1xf32>
      %47 = arith.addf %45, %46 : vector<16x1xf32>
      %48 = math.rsqrt %47 : vector<16x1xf32>
      %49 = vector.broadcast %48 : vector<16x1xf32> to vector<16x32xf32>
      %50 = arith.mulf %40, %49 : vector<16x32xf32>
      %51 = vector.broadcast %33 : vector<1x32xf32> to vector<16x32xf32>
      %52 = arith.mulf %50, %51 : vector<16x32xf32>
      %53 = vector.broadcast %34 : vector<1x32xf32> to vector<16x32xf32>
      %54 = arith.addf %52, %53 : vector<16x32xf32>
      %55 = arith.truncf %54 : vector<16x32xf32> to vector<16x32xbf16>
      %c0_32 = arith.constant 0 : index
      %c0_33 = arith.constant 0 : index
      %56 = vector.load %arg9[%c0_32, %c0_33] : memref<16x32xbf16, #tpu.memory_space<vmem>>, vector<16x32xbf16>
      tpu.vector_store %arg9[%c0_32, %c0_33], %55 {strides = array<i32>} : memref<16x32xbf16, #tpu.memory_space<vmem>>, vector<16x32xbf16>,
      %cst_34 = arith.constant -1.000000e+30 : f32
      %57 = vector.broadcast %cst_34 : f32 to vector<16x1xf32>
      %c0_35 = arith.constant 0 : index
      %c0_36 = arith.constant 0 : index
      %58 = vector.load %arg10[%c0_35, %c0_36] : memref<16x1xf32, #tpu.memory_space<vmem>>, vector<16x1xf32>
      tpu.vector_store %arg10[%c0_35, %c0_36], %57 {strides = array<i32>} : memref<16x1xf32, #tpu.memory_space<vmem>>, vector<16x1xf32>,
      %cst_37 = arith.constant 0.000000e+00 : f32
      %59 = vector.broadcast %cst_37 : f32 to vector<16x1xf32>
      %c0_38 = arith.constant 0 : index
      %c0_39 = arith.constant 0 : index
      %60 = vector.load %arg11[%c0_38, %c0_39] : memref<16x1xf32, #tpu.memory_space<vmem>>, vector<16x1xf32>
      tpu.vector_store %arg11[%c0_38, %c0_39], %59 {strides = array<i32>} : memref<16x1xf32, #tpu.memory_space<vmem>>, vector<16x1xf32>,
    } else {
    }
    %c0 = arith.constant 0 : index
    %c0_1 = arith.constant 0 : index
    %3 = vector.load %arg9[%c0, %c0_1] : memref<16x32xbf16, #tpu.memory_space<vmem>>, vector<16x32xbf16>
    %c0_2 = arith.constant 0 : index
    %c0_3 = arith.constant 0 : index
    %4 = vector.load %arg5[%c0_2, %c0_3] : memref<32x64xbf16, #tpu.memory_space<vmem>>, vector<32x64xbf16>
    %cst = arith.constant dense<0.000000e+00> : vector<16x64xf32>
    %5 = tpu.matmul %3, %4, %cst {dimension_numbers = #tpu.dot_dimension_numbers<[1], [0], [0], [1], [0, 0, 1, 1], [], []>} : vector<16x32xbf16>, vector<32x64xbf16>, vector<16x64xf32> -> vector<16x64xf32>
    %c0_4 = arith.constant 0 : index
    %c0_5 = arith.constant 0 : index
    %6 = vector.load %arg6[%c0_4, %c0_5] : memref<1x64xf32, #tpu.memory_space<vmem>>, vector<1x64xf32>
    %7 = vector.broadcast %6 : vector<1x64xf32> to vector<16x64xf32>
    %8 = arith.addf %5, %7 : vector<16x64xf32>
    %cst_6 = arith.constant 1.000000e+00 : f32
    %9 = vector.broadcast %cst_6 : f32 to vector<16x64xf32>
    %10 = arith.mulf %8, %9 : vector<16x64xf32>
    %11 = arith.truncf %10 : vector<16x64xf32> to vector<16x64xbf16>
    %c0_7 = arith.constant 0 : index
    %c0_8 = arith.constant 0 : index
    %12 = vector.load %arg7[%c0_7, %c0_8] : memref<16x64xbf16, #tpu.memory_space<vmem>>, vector<16x64xbf16>
    tpu.vector_store %arg7[%c0_7, %c0_8], %11 {strides = array<i32>} : memref<16x64xbf16, #tpu.memory_space<vmem>>, vector<16x64xbf16>,
    %c0_9 = arith.constant 0 : index
    %c0_10 = arith.constant 0 : index
    %13 = vector.load %arg10[%c0_9, %c0_10] : memref<16x1xf32, #tpu.memory_space<vmem>>, vector<16x1xf32>
    %cst_11 = arith.constant dense<0xFF800000> : vector<16xf32>
    %14 = vector.multi_reduction <maximumf>, %10, %cst_11 [1] : vector<16x64xf32> to vector<16xf32>
    %15 = vector.shape_cast %14 : vector<16xf32> to vector<16x1xf32>
    %16 = arith.maximumf %13, %15 : vector<16x1xf32>
    %c0_12 = arith.constant 0 : index
    %c0_13 = arith.constant 0 : index
    %17 = vector.load %arg11[%c0_12, %c0_13] : memref<16x1xf32, #tpu.memory_space<vmem>>, vector<16x1xf32>
    %18 = arith.subf %13, %16 : vector<16x1xf32>
    %19 = math.exp %18 : vector<16x1xf32>
    %20 = arith.mulf %17, %19 : vector<16x1xf32>
    %21 = vector.broadcast %16 : vector<16x1xf32> to vector<16x64xf32>
    %22 = arith.subf %10, %21 : vector<16x64xf32>
    %23 = math.exp %22 : vector<16x64xf32>
    %cst_14 = arith.constant dense<0.000000e+00> : vector<16xf32>
    %24 = vector.multi_reduction <add>, %23, %cst_14 [1] : vector<16x64xf32> to vector<16xf32>
    %25 = vector.shape_cast %24 : vector<16xf32> to vector<16x1xf32>
    %26 = arith.addf %20, %25 : vector<16x1xf32>
    %c0_15 = arith.constant 0 : index
    %c0_16 = arith.constant 0 : index
    %27 = vector.load %arg11[%c0_15, %c0_16] : memref<16x1xf32, #tpu.memory_space<vmem>>, vector<16x1xf32>
    tpu.vector_store %arg11[%c0_15, %c0_16], %26 {strides = array<i32>} : memref<16x1xf32, #tpu.memory_space<vmem>>, vector<16x1xf32>,
    %c0_17 = arith.constant 0 : index
    %c0_18 = arith.constant 0 : index
    %28 = vector.load %arg10[%c0_17, %c0_18] : memref<16x1xf32, #tpu.memory_space<vmem>>, vector<16x1xf32>
    tpu.vector_store %arg10[%c0_17, %c0_18], %16 {strides = array<i32>} : memref<16x1xf32, #tpu.memory_space<vmem>>, vector<16x1xf32>,
    %c0_i32_19 = arith.constant 0 : i32
    %29 = arith.cmpi eq, %arg1, %c0_i32_19 : i32
    %30 = arith.extui %29 : i1 to i32
    %c0_i32_20 = arith.constant 0 : i32
    %31 = arith.cmpi ne, %30, %c0_i32_20 : i32
    scf.if %31 {
      %c0_21 = arith.constant 0 : index
      %c0_22 = arith.constant 0 : index
      %32 = vector.load %arg10[%c0_21, %c0_22] : memref<16x1xf32, #tpu.memory_space<vmem>>, vector<16x1xf32>
      %c0_23 = arith.constant 0 : index
      %c0_24 = arith.constant 0 : index
      %33 = vector.load %arg11[%c0_23, %c0_24] : memref<16x1xf32, #tpu.memory_space<vmem>>, vector<16x1xf32>
      %34 = math.log %33 : vector<16x1xf32>
      %35 = arith.addf %32, %34 : vector<16x1xf32>
      %c0_25 = arith.constant 0 : index
      %c0_26 = arith.constant 0 : index
      %36 = vector.load %arg8[%c0_25, %c0_26] : memref<16x1xf32, #tpu.memory_space<vmem>>, vector<16x1xf32>
      tpu.vector_store %arg8[%c0_25, %c0_26], %35 {strides = array<i32>} : memref<16x1xf32, #tpu.memory_space<vmem>>, vector<16x1xf32>,
    } else {
    }
    return
  }
  func.func @transform_0(%arg0: i32, %arg1: i32) -> (i32, i32) {
    %c0_i32 = arith.constant 0 : i32
    %c0_i32_0 = arith.constant 0 : i32
    return %arg0, %c0_i32 : i32, i32
  }
  func.func @transform_1(%arg0: i32, %arg1: i32) -> (i32, i32) {
    %c0_i32 = arith.constant 0 : i32
    %c0_i32_0 = arith.constant 0 : i32
    %c0_i32_1 = arith.constant 0 : i32
    return %c0_i32, %c0_i32_0 : i32, i32
  }
  func.func @transform_2(%arg0: i32, %arg1: i32) -> (i32, i32) {
    %c0_i32 = arith.constant 0 : i32
    %c0_i32_0 = arith.constant 0 : i32
    %c0_i32_1 = arith.constant 0 : i32
    return %c0_i32, %c0_i32_0 : i32, i32
  }
  func.func @transform_3(%arg0: i32, %arg1: i32) -> (i32, i32) {
    %c0_i32 = arith.constant 0 : i32
    %c0_i32_0 = arith.constant 0 : i32
    return %c0_i32, %arg1 : i32, i32
  }
  func.func @transform_4(%arg0: i32, %arg1: i32) -> (i32, i32) {
    %c0_i32 = arith.constant 0 : i32
    %c0_i32_0 = arith.constant 0 : i32
    return %c0_i32, %arg1 : i32, i32
  }
  func.func @transform_5(%arg0: i32, %arg1: i32) -> (i32, i32) {
    %c0_i32 = arith.constant 0 : i32
    return %arg0, %arg1 : i32, i32
  }
  func.func @transform_6(%arg0: i32, %arg1: i32) -> (i32, i32) {
    %c0_i32 = arith.constant 0 : i32
    %c0_i32_0 = arith.constant 0 : i32
    return %arg0, %c0_i32 : i32, i32
  }
}

module attributes {stable_mosaic.version = 11 : i64} {
  func.func @_gen_normalize_kernel(%arg0: i32, %arg1: i32, %arg2: memref<16x64xbf16, #tpu.memory_space<vmem>>, %arg3: memref<16x1xf32, #tpu.memory_space<vmem>>, %arg4: memref<16x64xf32, #tpu.memory_space<vmem>>) attributes {dimension_semantics = [#tpu.dimension_semantics<parallel>, #tpu.dimension_semantics<parallel>], iteration_bounds = array<i64: 1, 1>, scalar_prefetch = 0 : i64, scratch_operands = 0 : i64, tpu.core_type = #tpu.core_type<tc>, window_params = [{transform_indices = @transform_0, window_bounds = array<i64: 16, 64>}, {transform_indices = @transform_1, window_bounds = array<i64: 16, 1>}, {transform_indices = @transform_2, window_bounds = array<i64: 16, 64>}]} {
    %c0 = arith.constant 0 : index
    %c0_0 = arith.constant 0 : index
    %0 = vector.load %arg2[%c0, %c0_0] : memref<16x64xbf16, #tpu.memory_space<vmem>>, vector<16x64xbf16>
    %1 = arith.extf %0 : vector<16x64xbf16> to vector<16x64xf32>
    %c0_1 = arith.constant 0 : index
    %c0_2 = arith.constant 0 : index
    %2 = vector.load %arg3[%c0_1, %c0_2] : memref<16x1xf32, #tpu.memory_space<vmem>>, vector<16x1xf32>
    %3 = vector.broadcast %2 : vector<16x1xf32> to vector<16x64xf32>
    %4 = arith.subf %1, %3 : vector<16x64xf32>
    %c0_3 = arith.constant 0 : index
    %c0_4 = arith.constant 0 : index
    %5 = vector.load %arg4[%c0_3, %c0_4] : memref<16x64xf32, #tpu.memory_space<vmem>>, vector<16x64xf32>
    tpu.vector_store %arg4[%c0_3, %c0_4], %4 {strides = array<i32>} : memref<16x64xf32, #tpu.memory_space<vmem>>, vector<16x64xf32>,
    return
  }
  func.func @transform_0(%arg0: i32, %arg1: i32) -> (i32, i32) {
    %c0_i32 = arith.constant 0 : i32
    return %arg0, %arg1 : i32, i32
  }
  func.func @transform_1(%arg0: i32, %arg1: i32) -> (i32, i32) {
    %c0_i32 = arith.constant 0 : i32
    %c0_i32_0 = arith.constant 0 : i32
    return %arg0, %c0_i32 : i32, i32
  }
  func.func @transform_2(%arg0: i32, %arg1: i32) -> (i32, i32) {
    %c0_i32 = arith.constant 0 : i32
    return %arg0, %arg1 : i32, i32
  }
}

</mosaic_0001>

<bundles_post_ra>
// kernel: decoder_forward.10
= control target key start
LH: loop header
LB: loop body
LE: loop exit
PB: predicated region body
PF: predicated region fallthrough
CT: control target
= control target key end

     0   :  { %12 = vsyncpa [#allocation5], 0  ;;  %s855_s0 = inlined_call_operand.hbm [shape: f32[16,32], index: 0, kind: input, shape index: {}]   ;;  %s856_s1 = inlined_call_operand.hbm [shape: f32[1,32], index: 1, kind: input, shape index: {}]   ;;  %s857_s2 = inlined_call_operand.hbm [shape: f32[1,32], index: 2, kind: input, shape index: {}]   ;;  %s858_s3 = inlined_call_operand.hbm [shape: bf16[32,128], index: 3, kind: input, shape index: {}]   ;;  %s859_s4 = inlined_call_operand.hbm [shape: f32[1,128], index: 4, kind: input, shape index: {}]   ;;  %s860_s5 = inlined_call_operand.hbm [shape: bf16[128,32], index: 5, kind: input, shape index: {}]   ;;  %s861_s6 = inlined_call_operand.hbm [shape: f32[1,32], index: 6, kind: input, shape index: {}]   ;;  %s862_s7 = inlined_call_operand.hbm [shape: f32[16,32], index: 7, kind: output, shape index: {}]  }
   0x1   :  { %13 = vsyncpa [#allocation8], 0 }
   0x2   :  { %14 = vsyncpa [#allocation11], 0 }
   0x3   :  { %15 = vsyncpa [#allocation14], 0 }
   0x4   :  { %16 = vsyncpa [#allocation6], 0  ;;  %s663_s24 = smov [#allocation7]   ;;  %s664_s26 = smov [#allocation10]  }
   0x5   :  { %s35_s25 = sshll.u32 %s663_s24, 4  ;;  %s54_s27 = sshll.u32 %s664_s26, 4  ;;  %s36_s25 = int_to_ptr.vmem [resolvable:$true] %s35_s25  ;;  %s717_s27 = int_to_ptr.vmem [resolvable:$true] %s54_s27 }
   0x6   :  { %s477_s30 = scalar_lea.hbm %s856_s1, 16 }
   0x7   :  { %p478_p0 = scmp.ne.s32.totalorder %s856_s1, %s477_s30  ;;  %p481_p1 = scmp.lt.u32.totalorder %s477_s30, %s856_s1 }
   0x9   :  { %p483_p2 = pnand %p481_p1, %p478_p0 }
   0xb   :  { %486 = shalt.err (!%p483_p2)
}
   0xc   :  { %s487_s12 = scalar_lea.vmem %s36_s25, 16  ;;  %s491_s13 = scalar_lea.vmem %s36_s25, 32 }
   0xd   :  { %p488_p3 = scmp.ne.s32.totalorder %s36_s25, %s487_s12  ;;  %p492_p4 = scmp.lt.s32.totalorder %s36_s25, %s36_s25 }
   0xe   :  { %p493_p5 = scmp.lt.s32.totalorder %s491_s13, %s487_s12 }
  0x10   :  { %p494_p6 = por %p493_p5, %p492_p4 }
  0x12   :  { %p495_p7 = pnand %p494_p6, %p488_p3 }
  0x14   :  { %498 = shalt.err (!%p495_p7)
}
  0x15   :  { %38 = dma.hbm_to_vmem [thread:$0]  %s856_s1, 16, %s36_s25, [#allocation8]  }
  0x16   :  { %s499_s18 = scalar_lea.hbm %s858_s3, 256 }
  0x17   :  { %p500_p8 = scmp.ne.s32.totalorder %s858_s3, %s499_s18  ;;  %p503_p9 = scmp.lt.u32.totalorder %s499_s18, %s858_s3 }
  0x19   :  { %p505_p10 = pnand %p503_p9, %p500_p8 }
  0x1b   :  { %508 = shalt.err (!%p505_p10)
}
  0x1c   :  { %s509_s23 = scalar_lea.vmem %s717_s27, 256  ;;  %p514_p12 = scmp.lt.s32.totalorder %s717_s27, %s717_s27 }
  0x1d   :  { %p510_p11 = scmp.ne.s32.totalorder %s717_s27, %s509_s23  ;;  %p515_p13 = scmp.lt.s32.totalorder %s509_s23, %s509_s23 }
  0x1f   :  { %p516_p0 = por %p515_p13, %p514_p12 }
  0x21   :  { %p517_p1 = pnand %p516_p0, %p510_p11 }
  0x23   :  { %520 = shalt.err (!%p517_p1)
}
  0x24   :  { %s665_s1 = smov 64   ;;  %s666_s24 = smov 4  }
  0x25   :  { %60 = dma.hbm_to_vmem [thread:$0]  %s858_s3, 256, %s717_s27, [#allocation11], %s665_s1, %s665_s1, %s666_s24  }
  0x26   :  { %s667_s28 = smov [#allocation13]   ;;  %s668_s30 = smov [#allocation4]  }
  0x27   :  { %s76_s29 = sshll.u32 %s667_s28, 4  ;;  %s22_s8 = sshll.u32 %s668_s30, 4  ;;  %s77_s29 = int_to_ptr.vmem [resolvable:$true] %s76_s29  ;;  %s748_s8 = int_to_ptr.vmem [resolvable:$true] %s22_s8 }
  0x28   :  { %s521_s11 = scalar_lea.hbm %s860_s5, 1024 }
  0x29   :  { %p522_p2 = scmp.ne.s32.totalorder %s860_s5, %s521_s11  ;;  %p525_p3 = scmp.lt.u32.totalorder %s521_s11, %s860_s5 }
  0x2b   :  { %p527_p4 = pnand %p525_p3, %p522_p2 }
  0x2d   :  { %530 = shalt.err (!%p527_p4)
}
  0x2e   :  { %s531_s3 = scalar_lea.vmem %s77_s29, 1024  ;;  %p536_p6 = scmp.lt.s32.totalorder %s77_s29, %s77_s29 }
  0x2f   :  { %p532_p5 = scmp.ne.s32.totalorder %s77_s29, %s531_s3  ;;  %p537_p7 = scmp.lt.s32.totalorder %s531_s3, %s531_s3 }
  0x31   :  { %p538_p8 = por %p537_p7, %p536_p6 }
  0x33   :  { %p539_p9 = pnand %p538_p8, %p532_p5 }
  0x35   :  { %542 = shalt.err (!%p539_p9)
}
  0x36   :  { %82 = dma.hbm_to_vmem [thread:$0]  %s860_s5, 1024, %s77_s29, [#allocation14], %s665_s1, %s665_s1, %s666_s24  }
  0x37   :  { %s543_s19 = scalar_lea.hbm %s855_s0, 256 }
  0x38   :  { %p544_p10 = scmp.ne.s32.totalorder %s855_s0, %s543_s19  ;;  %p547_p11 = scmp.lt.u32.totalorder %s543_s19, %s855_s0 }
  0x3a   :  { %p549_p12 = pnand %p547_p11, %p544_p10 }
  0x3c   :  { %552 = shalt.err (!%p549_p12)
}
  0x3d   :  { %s553_s25 = scalar_lea.vmem %s748_s8, 256  ;;  %p558_p0 = scmp.lt.s32.totalorder %s748_s8, %s748_s8 }
  0x3e   :  { %p554_p13 = scmp.ne.s32.totalorder %s748_s8, %s553_s25  ;;  %p559_p1 = scmp.lt.s32.totalorder %s553_s25, %s553_s25 }
  0x40   :  { %p560_p2 = por %p559_p1, %p558_p0 }
  0x42   :  { %p561_p3 = pnand %p560_p2, %p554_p13 }
  0x44   :  { %564 = shalt.err (!%p561_p3)
}
  0x45   :  { %s669_s5 = smov 128   ;;  %s670_s1 = smov 8  }
  0x46   :  { %28 = dma.hbm_to_vmem [thread:$0]  %s855_s0, 256, %s748_s8, [#allocation5], %s669_s5, %s669_s5, %s670_s1  }
  0x47   :  { %s671_s28 = smov [#allocation9]   ;;  %s672_s30 = smov [#allocation12]  }
  0x48   :  { %s45_s29 = sshll.u32 %s671_s28, 4  ;;  %s67_s9 = sshll.u32 %s672_s30, 4  ;;  %s46_s29 = int_to_ptr.vmem [resolvable:$true] %s45_s29  ;;  %s68_s9 = int_to_ptr.vmem [resolvable:$true] %s67_s9 }
  0x49   :  { %s565_s12 = scalar_lea.hbm %s857_s2, 16 }
  0x4a   :  { %p566_p4 = scmp.ne.s32.totalorder %s857_s2, %s565_s12  ;;  %p569_p5 = scmp.lt.u32.totalorder %s565_s12, %s857_s2 }
  0x4c   :  { %p571_p6 = pnand %p569_p5, %p566_p4 }
  0x4e   :  { %574 = shalt.err (!%p571_p6)
}
  0x4f   :  { %s575_s0 = scalar_lea.vmem %s46_s29, 16  ;;  %s579_s8 = scalar_lea.vmem %s46_s29, 32 }
  0x50   :  { %p576_p7 = scmp.ne.s32.totalorder %s46_s29, %s575_s0  ;;  %p580_p8 = scmp.lt.s32.totalorder %s46_s29, %s46_s29 }
  0x51   :  { %p581_p9 = scmp.lt.s32.totalorder %s579_s8, %s575_s0 }
  0x53   :  { %p582_p10 = por %p581_p9, %p580_p8 }
  0x55   :  { %p583_p11 = pnand %p582_p10, %p576_p7 }
  0x57   :  { %586 = shalt.err (!%p583_p11)
}
  0x58   :  { %48 = dma.hbm_to_vmem [thread:$0]  %s857_s2, 16, %s46_s29, [#allocation8]  }
  0x59   :  { %s587_s19 = scalar_lea.hbm %s859_s4, 16 }
  0x5a   :  { %p588_p12 = scmp.ne.s32.totalorder %s859_s4, %s587_s19  ;;  %p591_p13 = scmp.lt.u32.totalorder %s587_s19, %s859_s4 }
  0x5c   :  { %p593_p0 = pnand %p591_p13, %p588_p12 }
  0x5e   :  { %596 = shalt.err (!%p593_p0)
}
  0x5f   :  { %s597_s25 = scalar_lea.vmem %s68_s9, 16  ;;  %s601_s24 = scalar_lea.vmem %s68_s9, 32 }
  0x60   :  { %p598_p1 = scmp.ne.s32.totalorder %s68_s9, %s597_s25  ;;  %p602_p2 = scmp.lt.s32.totalorder %s68_s9, %s68_s9 }
  0x61   :  { %p603_p3 = scmp.lt.s32.totalorder %s601_s24, %s597_s25 }
  0x63   :  { %p604_p4 = por %p603_p3, %p602_p2 }
  0x65   :  { %p605_p5 = pnand %p604_p4, %p598_p1 }
  0x67   :  { %608 = shalt.err (!%p605_p5)
}
  0x68   :  { %70 = dma.hbm_to_vmem [thread:$0]  %s859_s4, 16, %s68_s9, [#allocation11]  }
  0x69   :  { %s673_s28 = smov [#allocation15]   ;;  %s609_s11 = scalar_lea.hbm %s861_s6, 16 }
  0x6a   :  { %s89_s29 = sshll.u32 %s673_s28, 4  ;;  %p610_p6 = scmp.ne.s32.totalorder %s861_s6, %s609_s11  ;;  %s90_s29 = int_to_ptr.vmem [resolvable:$true] %s89_s29 }
  0x6b   :  { %p613_p7 = scmp.lt.u32.totalorder %s609_s11, %s861_s6 }
  0x6d   :  { %p615_p8 = pnand %p613_p7, %p610_p6 }
  0x6f   :  { %618 = shalt.err (!%p615_p8)
}
  0x70   :  { %s619_s3 = scalar_lea.vmem %s90_s29, 16  ;;  %s623_s4 = scalar_lea.vmem %s90_s29, 32 }
  0x71   :  { %p620_p9 = scmp.ne.s32.totalorder %s90_s29, %s619_s3  ;;  %p624_p10 = scmp.lt.s32.totalorder %s90_s29, %s90_s29 }
  0x72   :  { %p625_p11 = scmp.lt.s32.totalorder %s623_s4, %s619_s3 }
  0x74   :  { %p626_p12 = por %p625_p11, %p624_p10 }
  0x76   :  { %p627_p13 = pnand %p626_p12, %p620_p9 }
  0x78   :  { %630 = shalt.err (!%p627_p13)
}
  0x79   :  { %92 = dma.hbm_to_vmem [thread:$0]  %s861_s6, 16, %s90_s29, [#allocation14]  }
  0x7a   :  { %653 = dma.done.wait [#allocation5], 256  }
  0x7b   :  { %654 = vsyncadd [#allocation5], 4294967040 }
  0x7c   :  { %655 = dma.done.wait [#allocation8], 32  }
  0x7d   :  { %656 = vsyncadd [#allocation8], 4294967264 }
  0x7e   :  { %657 = dma.done.wait [#allocation11], 272  }
  0x7f   :  { %658 = vsyncadd [#allocation11], 4294967024 }
  0x80   :  { %659 = dma.done.wait [#allocation14], 1040  }
  0x81   :  { %660 = vsyncadd [#allocation14], 4294966256  ;;  %vm123_vm0 = vcmask 261120   ;;  %v818_v0 = vld [vmem:[#allocation4] sm:$0xff]  ;;  %v820_v1 = vld [vmem:[#allocation4 + $0x8] sm:$0xff]  ;;  %v674_v15 = vmov 0.0  }
  0x82   :  { %v124_v2 = vsel %vm123_vm0, %v818_v0, 0.0  ;;  %v127_v3 = vsel %vm123_vm0, %v820_v1, 0.0  ;;  %v463_v14 = vld [vmem:[#allocation10] sm:$0xff]   ;;  %421 = vmatprep.subr.bf16.mxu0 %v674_v15  ;;  %169 = vst.msk [vmem:[#allocation3] sm:$0xff] %vm123_vm0, %v674_v15  ;;  %170 = vst.msk [vmem:[#allocation3 + $0x8] sm:$0xff] %vm123_vm0, %v674_v15  ;;  %429 = vmatprep.subr.bf16.mxu1 %v674_v15  ;;  %v464_v16 = vld [vmem:[#allocation10 + $0x8] sm:$0xff]  }
  0x83   :  { %125 = vadd.xlane.f32.xlu0 %v124_v2  ;;  %422 = vmatpush3.bf16.msra.mxu0 %v463_v14  ;;  %vm675_vm1 = vmmov 0   ;;  %v465_v17 = vld [vmem:[#allocation13] sm:$0xff]   ;;  %v466_v18 = vld [vmem:[#allocation13 + $0x8] sm:$0xff]   ;;  %v467_v19 = vld [vmem:[#allocation13 + $0x10] sm:$0xff]   ;;  %s676_s6 = smov [#allocation16]  }
  0x84   :  { %425 = vmatprep.mubr.msk.bf16.mxu0 %vm675_vm1, %v674_v15  ;;  %423 = vmatprep.subr.bf16.mxu0 %v674_v15  ;;  %v468_v20 = vld [vmem:[#allocation13 + $0x18] sm:$0xff]   ;;  %v469_v21 = vld [vmem:[#allocation13 + $0x20] sm:$0xff]   ;;  %v470_v22 = vld [vmem:[#allocation13 + $0x28] sm:$0xff]   ;;  %s379_s8 = sshll.u32 %s676_s6, 4  ;;  %s380_s8 = int_to_ptr.vmem [resolvable:$true] %s379_s8 }
  0x85   :  { %445 = vmatprep.mubr.msk.bf16.mxu1 %vm675_vm1, %v674_v15  ;;  %430 = vmatpush3.bf16.msra.mxu1 %v465_v17  ;;  %v394_v31 = vld [vmem:[#allocation7] ss:$0 sm:$0xff]  ;;  %v395_v35 = vld [vmem:[#allocation9] ss:$0 sm:$0xff]  ;;  %v471_v41 = vld [vmem:[#allocation13 + $0x30] sm:$0xff]   ;;  %s631_s27 = scalar_lea.vmem %s380_s8, 256  ;;  %p636_p1 = scmp.lt.s32.totalorder %s380_s8, %s380_s8 }
  0x86   :  { %431 = vmatprep.subr.bf16.mxu1 %v674_v15  ;;  %v472_v42 = vld [vmem:[#allocation13 + $0x38] sm:$0xff]   ;;  %v408_v62 = vld [vmem:[#allocation15] ss:$0 sm:$0xff]  ;;  %p632_p0 = scmp.ne.s32.totalorder %s380_s8, %s631_s27  ;;  %p637_p2 = scmp.lt.s32.totalorder %s631_s27, %s631_s27 }
  0x87   :  { %128 = vadd.xlane.f32.xlu0 %v127_v3  ;;  %424 = vmatpush3.bf16.msra.mxu0 %v464_v16  ;;  %v396_v43 = vld [vmem:[#allocation12] ss:$0 sm:$0xff] }
  0x88   :  { %p638_p3 = por %p637_p2, %p636_p1 }
  0x89   :  { %432 = vmatpush3.bf16.msra.mxu1 %v466_v18  ;;  %v242_v53 = vld [vmem:[#allocation3] sm:$0xff]  ;;  %v243_v55 = vld [vmem:[#allocation3 + $0x8] sm:$0xff] }
  0x8a   :  { %433 = vmatprep.subr.bf16.mxu1 %v674_v15  ;;  %p639_p4 = pnand %p638_p3, %p632_p0 }
  0x8d   :  { %434 = vmatpush3.bf16.msra.mxu1 %v467_v19 }
  0x8e   :  { %435 = vmatprep.subr.bf16.mxu1 %v674_v15 }
  0x91   :  { %436 = vmatpush3.bf16.msra.mxu1 %v468_v20 }
  0x92   :  { %437 = vmatprep.subr.bf16.mxu1 %v674_v15 }
  0x95   :  { %438 = vmatpush3.bf16.msra.mxu1 %v469_v21 }
  0x96   :  { %439 = vmatprep.subr.bf16.mxu1 %v674_v15 }
  0x99   :  { %440 = vmatpush3.bf16.msra.mxu1 %v470_v22 }
  0x9a   :  { %441 = vmatprep.subr.bf16.mxu1 %v674_v15 }
  0x9d   :  { %442 = vmatpush3.bf16.msra.mxu1 %v471_v41 }
  0x9e   :  { %443 = vmatprep.subr.bf16.mxu1 %v674_v15 }
  0xa1   :  { %444 = vmatpush3.bf16.msra.mxu1 %v472_v42 }
 0x110   :  { %v126_v4 = vpop.xlane.xlu0 %125 }
 0x111   :  { %v131_v5 = vmul.f32 0.03125, %v126_v4 }
 0x113   :  { %v133_v6 = vsub.f32 %v818_v0, %v131_v5 }
 0x114   :  { %v129_v7 = vpop.xlane.xlu0 %128 }
 0x115   :  { %v132_v8 = vmul.f32 0.03125, %v129_v7  ;;  %v135_v9 = vmul.f32 %v133_v6, %v133_v6 }
 0x117   :  { %v134_v10 = vsub.f32 %v820_v1, %v132_v8  ;;  %v137_v11 = vsel %vm123_vm0, %v135_v9, 0.0 }
 0x118   :  { %138 = vadd.xlane.f32.xlu1 %v137_v11 }
 0x119   :  { %v136_v12 = vmul.f32 %v134_v10, %v134_v10 }
 0x11b   :  { %v140_v13 = vsel %vm123_vm0, %v136_v12, 0.0 }
 0x11c   :  { %141 = vadd.xlane.f32.xlu1 %v140_v13 }
 0x1a5   :  { %v139_v23 = vpop.xlane.xlu1 %138 }
 0x1a6   :  { %v143_v24 = vmul.f32 0.03125, %v139_v23 }
 0x1a8   :  { %v145_v25 = vadd.f32 1e-06, %v143_v24 }
 0x1a9   :  { %v142_v26 = vpop.xlane.xlu1 %141 }
 0x1aa   :  { %473 = vrsqrt.f32 %v145_v25  ;;  %v144_v27 = vmul.f32 0.03125, %v142_v26 }
 0x1ac   :  { %v146_v28 = vadd.f32 1e-06, %v144_v27 }
 0x1ae   :  { %475 = vrsqrt.f32 %v146_v28 }
 0x1b4   :  { %v474_v29 = vpop.eup %473 }
 0x1b5   :  { %v149_v30 = vmul.f32 %v474_v29, %v133_v6 }
 0x1b7   :  { %v157_v33 = vmul.f32 %v394_v31, %v149_v30 }
 0x1b8   :  { %v476_v32 = vpop.eup %475 }
 0x1b9   :  { %v150_v34 = vmul.f32 %v476_v32, %v134_v10  ;;  %v165_v37 = vadd.f32 %v395_v35, %v157_v33 }
 0x1bb   :  { %v158_v36 = vmul.f32 %v394_v31, %v150_v34 }
 0x1bd   :  { %v166_v38 = vadd.f32 %v395_v35, %v158_v36 }
 0x1bf   :  { %v167_v39 = vpack.c.bf16 %v166_v38, %v165_v37 }
 0x1c1   :  { %168 = vst.msk [vmem:[#allocation2] sm:$0xff] %vm123_vm0, %v167_v39 }
 0x1c8   :  { %v171_v40 = vld [vmem:[#allocation2] sm:$0xff] }
 0x1c9   :  { %426 = vmatmul.mubr.msk.bf16.vlgmr.msra.gmra.mrb[0].mxu0 %vm123_vm0, %v171_v40 }
 0x29c   :  { %v233_v44 = vpop.f32.mrb[0].mxu0 }
 0x29d   :  { %v234_v45 = vadd.f32 %v396_v43, %v233_v44  ;;  %v427_v46 = vpop.f32.mrb[1].mxu0 }
 0x29e   :  { %v236_v47 = vpop.f32.mrb[2].mxu0 }
 0x29f   :  { %v237_v48 = vadd.f32 %v396_v43, %v236_v47  ;;  %v428_v49 = vpop.f32.mrb[3].mxu0  ;;  %v240_v50 = vmax.f32 %v234_v45, 0.0 }
 0x2a1   :  { %v241_v51 = vmax.f32 %v237_v48, 0.0 }
 0x2a3   :  { %v244_v52 = vpack.c.bf16 %v241_v51, %v240_v50 }
 0x2a5   :  { %446 = vmatmul.mubr.bf16.vlgmr.msra.gmra.mrb[0].mxu1 %v244_v52 }
 0x378   :  { %v343_v54 = vpop.f32.mrb[0].mxu1 }
 0x379   :  { %v350_v56 = vadd.f32 %v343_v54, %v242_v53  ;;  %v447_v57 = vpop.f32.mrb[1].mxu1 }
 0x37a   :  { %v346_v58 = vpop.f32.mrb[2].mxu1 }
 0x37b   :  { %352 = vst.msk [vmem:[#allocation3] sm:$0xff] %vm123_vm0, %v350_v56  ;;  %v351_v59 = vadd.f32 %v346_v58, %v243_v55  ;;  %v448_v60 = vpop.f32.mrb[3].mxu1 }
 0x37d   :  { %353 = vst.msk [vmem:[#allocation3 + $0x8] sm:$0xff] %vm123_vm0, %v351_v59 }
 0x382   :  { %v359_v61 = vld [vmem:[#allocation3] sm:$0xff] }
 0x383   :  { %v361_v63 = vadd.f32 %v359_v61, %v818_v0 }
 0x384   :  { %v360_v2 = vld [vmem:[#allocation3 + $0x8] sm:$0xff] }
 0x385   :  { %v362_v3 = vadd.f32 %v360_v2, %v820_v1  ;;  %v370_v4 = vadd.f32 %v408_v62, %v361_v63 }
 0x387   :  { %v371_v5 = vadd.f32 %v408_v62, %v362_v3  ;;  %372 = vst.msk [vmem:[#allocation16] sm:$0xff] %vm123_vm0, %v370_v4 }
 0x389   :  { %373 = vst.msk [vmem:[#allocation16 + $0x8] sm:$0xff] %vm123_vm0, %v371_v5 }
 0x38a   :  { %642 = shalt.err (!%p639_p4)
}
 0x38b   :  { %s643_s18 = scalar_lea.hbm %s862_s7, 256 }
 0x38c   :  { %p644_p5 = scmp.ne.s32.totalorder %s862_s7, %s643_s18  ;;  %p647_p6 = scmp.lt.u32.totalorder %s643_s18, %s862_s7 }
 0x38e   :  { %p649_p7 = pnand %p647_p6, %p644_p5 }
 0x390   :  { %652 = shalt.err (!%p649_p7)
}
 0x391   :  { %385 = dma.vmem_to_hbm [thread:$0]  %s380_s8, 256, %s862_s7, [#allocation6], %s669_s5, %s669_s5, %s670_s1  }
 0x392   :  { %661 = dma.done.wait [#allocation6], 256  }
 0x393   :  { %662 = vsyncadd [#allocation6], 4294967040 }
 0x394   :  { %389 = vsyncpa [#allocation5], 1 }
 0x395   :  { %390 = vsyncpa [#allocation8], 1 }
 0x396   :  { %391 = vsyncpa [#allocation11], 1 }
 0x397   :  { %392 = vsyncpa [#allocation14], 1 }
 0x398   :  { %393 = vsyncpa [#allocation6], 1 }

// kernel: decoder_forward.8
= control target key start
LH: loop header
LB: loop body
LE: loop exit
PB: predicated region body
PF: predicated region fallthrough
CT: control target
= control target key end

     0   :  { %s3039_s0 = inlined_call_operand.hbm [shape: f32[2,8,32], index: 0, kind: input, shape index: {}]   ;;  %s3040_s1 = inlined_call_operand.hbm [shape: s8[2,8,8], index: 1, kind: input, shape index: {}]   ;;  %s3041_s2 = inlined_call_operand.hbm [shape: f32[1,32], index: 2, kind: input, shape index: {}]   ;;  %s3042_s3 = inlined_call_operand.hbm [shape: f32[1,32], index: 3, kind: input, shape index: {}]   ;;  %s3043_s4 = inlined_call_operand.hbm [shape: bf16[32,32], index: 4, kind: input, shape index: {}]   ;;  %s3044_s5 = inlined_call_operand.hbm [shape: f32[1,32], index: 5, kind: input, shape index: {}]   ;;  %s3045_s6 = inlined_call_operand.hbm [shape: bf16[32,32], index: 6, kind: input, shape index: {}]   ;;  %s3046_s7 = inlined_call_operand.hbm [shape: f32[1,32], index: 7, kind: input, shape index: {}]   ;;  %s3047_s8 = inlined_call_operand.hbm [shape: bf16[32,32], index: 8, kind: input, shape index: {}]   ;;  %s3048_s9 = inlined_call_operand.hbm [shape: f32[1,32], index: 9, kind: input, shape index: {}]   ;;  %s3049_s10 = inlined_call_operand.hbm [shape: bf16[32,32], index: 10, kind: input, shape index: {}]   ;;  %s3050_s11 = inlined_call_operand.hbm [shape: f32[1,32], index: 11, kind: input, shape index: {}]   ;;  %s3051_s12 = inlined_call_operand.hbm [shape: f32[2,8,32], index: 12, kind: output, shape index: {}]  }
   0x1   :  { %3059 = sst [smem:[#allocation33_spill]] %s3039_s0 }
   0x2   :  { %3060 = sst [smem:[#allocation34_spill]] %s3040_s1 }
   0x3   :  { %3061 = sst [smem:[#allocation35_spill]] %s3041_s2 }
   0x4   :  { %3062 = sst [smem:[#allocation36_spill]] %s3042_s3 }
   0x5   :  { %3063 = sst [smem:[#allocation37_spill]] %s3043_s4 }
   0x6   :  { %3064 = sst [smem:[#allocation38_spill]] %s3044_s5 }
   0x7   :  { %3065 = sst [smem:[#allocation39_spill]] %s3045_s6 }
   0x8   :  { %3066 = sst [smem:[#allocation40_spill]] %s3051_s12 }
   0x9   :  { %17 = vsyncpa [#allocation3], 0 }
   0xa   :  { %19 = vsyncpa [#allocation3 + $0x1], 0 }
   0xb   :  { %20 = vsyncpa [#allocation6], 0 }
   0xc   :  { %22 = vsyncpa [#allocation6 + $0x1], 0 }
   0xd   :  { %23 = vsyncpa [#allocation9], 0 }
   0xe   :  { %24 = vsyncpa [#allocation12], 0 }
   0xf   :  { %25 = vsyncpa [#allocation15], 0 }
  0x10   :  { %26 = vsyncpa [#allocation18], 0 }
  0x11   :  { %27 = vsyncpa [#allocation21], 0 }
  0x12   :  { %28 = vsyncpa [#allocation4], 0 }
  0x13   :  { %30 = vsyncpa [#allocation4 + $0x1], 0  ;;  %s2450_s21 = smov 0   ;;  %s2452_s22 = smov 0  }
  0x14   :  { %s2454_s23 = smov 0   ;;  %s2456_s24 = smov 0  }
  0x15 LB: > { %s2361_s25 = smov [#allocation7]   ;;  %s2471_s27 = sadd.s32 4294967295, %s2359_s24   ;;  %s2359_s24 = sphi %s2456_s24, %s3110_s24   ;;  %s2355_s23 = sphi %s2454_s23, %s3109_s23   ;;  %s2351_s22 = sphi %s2452_s22, %s3108_s22   ;;  %s2347_s21 = sphi %s2450_s21, %s3107_s21  }
  0x16   : > { %s342_s26 = sshll.u32 %s2361_s25, 4  ;;  %p1568_p0 = scmp.ge.s32.totalorder %s2359_s24, 1  ;;  %s2476_s26 = int_to_ptr.vmem [resolvable:$true] %s342_s26 }
  0x17   : > { %p3055_p1 = scmp.eq.s32.totalorder %s2471_s27, 0  ;;  %p329_p2 = scmp.lt.s32.totalorder %s2359_s24, 3 }
  0x18   : > { %s2362_s29 = smov [#allocation8]   ;;  %s2363_s13 = smov [#allocation11]  }
  0x19   : > { %p2478_p3 = pnand %p1568_p0, %p329_p2  ;;  %s353_s30 = sshll.u32 %s2362_s29, 4  ;;  %s2485_s30 = int_to_ptr.vmem [resolvable:$true] %s353_s30 }
  0x1a   : > { %s377_s14 = sshll.u32 %s2363_s13, 4  ;;  %s2364_s16 = smov [#allocation14]   ;;  %s2493_s14 = int_to_ptr.vmem [resolvable:$true] %s377_s14 }
  0x1b   : > { %s3067_s28 = scalar_select %p2478_p3, 1, 0 }
  0x1c   : > { %p1782_p5 = pneg %p2478_p3  ;;  %s2495_s17 = sshll.u32 %s2364_s16, 4  ;;  %s402_s17 = int_to_ptr.vmem [resolvable:$true] %s2495_s17 }
  0x1d   : > { %3068 = sst [smem:[#allocation32_spill]] %s3067_s28  ;;  %s3070_s2 = sld [smem:[#allocation35_spill]] }
  0x1e   : > { %p2489_p6 = pnand %p1782_p5, %p3055_p1 }
  0x20   : > { %p2505_p8 = pneg %p2489_p6 }
  0x23   : > { %s1925_s20 = scalar_lea.hbm %s3070_s2, 16 }
  0x24   : > { %p1926_p7 = scmp.ne.s32.totalorder %s3070_s2, %s1925_s20  ;;  %p1932_p11 = scmp.lt.u32.totalorder %s1925_s20, %s3070_s2 }
  0x26   : > { %p1928_p9 = pnand %p2505_p8, %p1926_p7 }
  0x28   : > { %p1929_p10 = pneg %p1928_p9 }
  0x2a   : > { %p1934_p12 = pnand %p1932_p11, %p1929_p10 }
  0x2c   : > { %1937 = shalt.err (!%p1934_p12)
}
  0x2d   : > { %s1938_s18 = scalar_lea.vmem %s2476_s26, 16  ;;  %s1945_s19 = scalar_lea.vmem %s2476_s26, 32 }
  0x2e   : > { %p1939_p13 = scmp.ne.s32.totalorder %s2476_s26, %s1938_s18  ;;  %p1946_p5 = scmp.lt.s32.totalorder %s2476_s26, %s2476_s26 }
  0x2f   : > { %p1947_p7 = scmp.lt.s32.totalorder %s1945_s19, %s1938_s18 }
  0x30   : > { %p1941_p0 = pnand %p1939_p13, %p2505_p8 }
  0x31   : > { %p1948_p9 = por %p1947_p7, %p1946_p5 }
  0x32   : > { %p1942_p2 = pneg %p1941_p0 }
  0x34   : > { %p1949_p4 = pnand %p1948_p9, %p1942_p2 }
  0x36   : > { %1952 = shalt.err (!%p1949_p4)
}
  0x37   : > { %1785 = dma.hbm_to_vmem [thread:$0]  (!%p2489_p6), %s3070_s2, 16, %s2476_s26, [#allocation6]  }
  0x38   : > { %s3072_s3 = sld [smem:[#allocation36_spill]] }
  0x3e   : > { %s1953_s16 = scalar_lea.hbm %s3072_s3, 16 }
  0x3f   : > { %p1954_p10 = scmp.ne.s32.totalorder %s3072_s3, %s1953_s16  ;;  %p1960_p4 = scmp.lt.u32.totalorder %s1953_s16, %s3072_s3 }
  0x41   : > { %p1956_p11 = pnand %p1954_p10, %p2505_p8 }
  0x43   : > { %p1957_p12 = pneg %p1956_p11 }
  0x45   : > { %p1962_p13 = pnand %p1960_p4, %p1957_p12 }
  0x47   : > { %1965 = shalt.err (!%p1962_p13)
}
  0x48   : > { %s1966_s26 = scalar_lea.vmem %s2485_s30, 16  ;;  %s1973_s1 = scalar_lea.vmem %s2485_s30, 32 }
  0x49   : > { %p1967_p0 = scmp.ne.s32.totalorder %s2485_s30, %s1966_s26  ;;  %p1974_p7 = scmp.lt.s32.totalorder %s2485_s30, %s2485_s30 }
  0x4a   : > { %p1975_p9 = scmp.lt.s32.totalorder %s1973_s1, %s1966_s26 }
  0x4b   : > { %p1969_p2 = pnand %p1967_p0, %p2505_p8 }
  0x4c   : > { %p1976_p10 = por %p1975_p9, %p1974_p7 }
  0x4d   : > { %p1970_p5 = pneg %p1969_p2 }
  0x4f   : > { %p1977_p11 = pnand %p1976_p10, %p1970_p5 }
  0x51   : > { %1980 = shalt.err (!%p1977_p11)
}
  0x52   : > { %1788 = dma.hbm_to_vmem [thread:$0]  (!%p2489_p6), %s3072_s3, 16, %s2485_s30, [#allocation9]  }
  0x53   : > { %s3073_s5 = sld [smem:[#allocation38_spill]] }
  0x59   : > { %s1981_s29 = scalar_lea.hbm %s3073_s5, 16 }
  0x5a   : > { %p1982_p12 = scmp.ne.s32.totalorder %s3073_s5, %s1981_s29  ;;  %p1988_p0 = scmp.lt.u32.totalorder %s1981_s29, %s3073_s5 }
  0x5c   : > { %p1984_p4 = pnand %p1982_p12, %p2505_p8 }
  0x5e   : > { %p1985_p13 = pneg %p1984_p4 }
  0x60   : > { %p1990_p2 = pnand %p1988_p0, %p1985_p13 }
  0x62   : > { %1993 = shalt.err (!%p1990_p2)
}
  0x63   : > { %s1994_s30 = scalar_lea.vmem %s2493_s14, 16  ;;  %s2001_s1 = scalar_lea.vmem %s2493_s14, 32 }
  0x64   : > { %p1995_p5 = scmp.ne.s32.totalorder %s2493_s14, %s1994_s30  ;;  %p2002_p10 = scmp.lt.s32.totalorder %s2493_s14, %s2493_s14 }
  0x65   : > { %p2003_p11 = scmp.lt.s32.totalorder %s2001_s1, %s1994_s30 }
  0x66   : > { %p1997_p7 = pnand %p1995_p5, %p2505_p8 }
  0x67   : > { %p2004_p12 = por %p2003_p11, %p2002_p10 }
  0x68   : > { %p1998_p9 = pneg %p1997_p7 }
  0x6a   : > { %p2005_p4 = pnand %p2004_p12, %p1998_p9 }
  0x6c   : > { %2008 = shalt.err (!%p2005_p4)
}
  0x6d   : > { %1794 = dma.hbm_to_vmem [thread:$0]  (!%p2489_p6), %s3073_s5, 16, %s2493_s14, [#allocation12]  }
  0x6e   : > { %s2365_s20 = smov [#allocation17]   ;;  %s2009_s18 = scalar_lea.hbm %s3046_s7, 16 }
  0x6f   : > { %s425_s25 = sshll.u32 %s2365_s20, 4  ;;  %p2010_p13 = scmp.ne.s32.totalorder %s3046_s7, %s2009_s18  ;;  %s426_s25 = int_to_ptr.vmem [resolvable:$true] %s425_s25 }
  0x70   : > { %p2016_p5 = scmp.lt.u32.totalorder %s2009_s18, %s3046_s7 }
  0x71   : > { %p2012_p0 = pnand %p2010_p13, %p2505_p8 }
  0x73   : > { %p2013_p2 = pneg %p2012_p0 }
  0x75   : > { %p2018_p7 = pnand %p2016_p5, %p2013_p2 }
  0x77   : > { %2021 = shalt.err (!%p2018_p7)
}
  0x78   : > { %s2022_s14 = scalar_lea.vmem %s402_s17, 16  ;;  %s2029_s28 = scalar_lea.vmem %s402_s17, 32 }
  0x79   : > { %p2023_p9 = scmp.ne.s32.totalorder %s402_s17, %s2022_s14  ;;  %p2030_p12 = scmp.lt.s32.totalorder %s402_s17, %s402_s17 }
  0x7a   : > { %p2031_p4 = scmp.lt.s32.totalorder %s2029_s28, %s2022_s14 }
  0x7b   : > { %p2025_p10 = pnand %p2023_p9, %p2505_p8 }
  0x7c   : > { %p2032_p1 = por %p2031_p4, %p2030_p12 }
  0x7d   : > { %p2026_p11 = pneg %p2025_p10 }
  0x7f   : > { %p2033_p3 = pnand %p2032_p1, %p2026_p11 }
  0x81   : > { %2036 = shalt.err (!%p2033_p3)
}
  0x82   : > { %1800 = dma.hbm_to_vmem [thread:$0]  (!%p2489_p6), %s3046_s7, 16, %s402_s17, [#allocation15]  }
  0x83   : > { %s2037_s18 = scalar_lea.hbm %s3048_s9, 16 }
  0x84   : > { %p2038_p13 = scmp.ne.s32.totalorder %s3048_s9, %s2037_s18  ;;  %p2044_p3 = scmp.lt.u32.totalorder %s2037_s18, %s3048_s9 }
  0x86   : > { %p2040_p0 = pnand %p2038_p13, %p2505_p8 }
  0x88   : > { %p2041_p1 = pneg %p2040_p0 }
  0x8a   : > { %p2046_p2 = pnand %p2044_p3, %p2041_p1 }
  0x8c   : > { %2049 = shalt.err (!%p2046_p2)
}
  0x8d   : > { %s2050_s14 = scalar_lea.vmem %s426_s25, 16  ;;  %s2057_s17 = scalar_lea.vmem %s426_s25, 32 }
  0x8e   : > { %p2051_p5 = scmp.ne.s32.totalorder %s426_s25, %s2050_s14  ;;  %p2058_p10 = scmp.lt.s32.totalorder %s426_s25, %s426_s25 }
  0x8f   : > { %p2059_p11 = scmp.lt.s32.totalorder %s2057_s17, %s2050_s14 }
  0x90   : > { %p2053_p7 = pnand %p2051_p5, %p2505_p8 }
  0x91   : > { %p2060_p12 = por %p2059_p11, %p2058_p10 }
  0x92   : > { %p2054_p9 = pneg %p2053_p7 }
  0x94   : > { %p2061_p4 = pnand %p2060_p12, %p2054_p9 }
  0x96   : > { %2064 = shalt.err (!%p2061_p4)
}
  0x97   : > { %1806 = dma.hbm_to_vmem [thread:$0]  (!%p2489_p6), %s3048_s9, 16, %s426_s25, [#allocation18]  }
  0x98   : > { %s2366_s20 = smov [#allocation10]   ;;  %s3074_s4 = sld [smem:[#allocation37_spill]] }
  0x99   : > { %s363_s29 = sshll.u32 %s2366_s20, 4  ;;  %s364_s29 = int_to_ptr.vmem [resolvable:$true] %s363_s29 }
  0x9e   : > { %s2065_s19 = scalar_lea.hbm %s3074_s4, 256 }
  0x9f   : > { %p2066_p13 = scmp.ne.s32.totalorder %s3074_s4, %s2065_s19  ;;  %p2072_p3 = scmp.lt.u32.totalorder %s2065_s19, %s3074_s4 }
  0xa1   : > { %p2068_p0 = pnand %p2066_p13, %p2505_p8 }
  0xa3   : > { %p2069_p1 = pneg %p2068_p0 }
  0xa5   : > { %p2074_p2 = pnand %p2072_p3, %p2069_p1 }
  0xa7   : > { %2077 = shalt.err (!%p2074_p2)
}
  0xa8   : > { %s2078_s25 = scalar_lea.vmem %s364_s29, 256  ;;  %p2086_p10 = scmp.lt.s32.totalorder %s364_s29, %s364_s29 }
  0xa9   : > { %p2079_p5 = scmp.ne.s32.totalorder %s364_s29, %s2078_s25  ;;  %p2087_p11 = scmp.lt.s32.totalorder %s2078_s25, %s2078_s25 }
  0xab   : > { %p2081_p7 = pnand %p2079_p5, %p2505_p8  ;;  %p2088_p12 = por %p2087_p11, %p2086_p10 }
  0xad   : > { %p2082_p9 = pneg %p2081_p7 }
  0xaf   : > { %p2089_p4 = pnand %p2088_p12, %p2082_p9 }
  0xb1   : > { %2092 = shalt.err (!%p2089_p4)
}
  0xb2   : > { %s2367_s17 = smov 64   ;;  %s2368_s28 = smov 4  }
  0xb3   : > { %1791 = dma.hbm_to_vmem [thread:$0]  (!%p2489_p6), %s3074_s4, 256, %s364_s29, [#allocation9], %s2367_s17, %s2367_s17, %s2368_s28  }
  0xb4   : > { %s2369_s16 = smov [#allocation13]   ;;  %s2370_s19 = smov [#allocation16]  }
  0xb5   : > { %s387_s18 = sshll.u32 %s2369_s16, 4  ;;  %s411_s26 = sshll.u32 %s2370_s19, 4  ;;  %s388_s18 = int_to_ptr.vmem [resolvable:$true] %s387_s18  ;;  %s2633_s26 = int_to_ptr.vmem [resolvable:$true] %s411_s26 }
  0xb6   : > { %s3075_s6 = sld [smem:[#allocation39_spill]] }
  0xbc   : > { %s2093_s14 = scalar_lea.hbm %s3075_s6, 256 }
  0xbd   : > { %p2094_p13 = scmp.ne.s32.totalorder %s3075_s6, %s2093_s14  ;;  %p2100_p3 = scmp.lt.u32.totalorder %s2093_s14, %s3075_s6 }
  0xbf   : > { %p2096_p0 = pnand %p2094_p13, %p2505_p8 }
  0xc1   : > { %p2097_p1 = pneg %p2096_p0 }
  0xc3   : > { %p2102_p2 = pnand %p2100_p3, %p2097_p1 }
  0xc5   : > { %2105 = shalt.err (!%p2102_p2)
}
  0xc6   : > { %s2106_s20 = scalar_lea.vmem %s388_s18, 256  ;;  %p2114_p10 = scmp.lt.s32.totalorder %s388_s18, %s388_s18 }
  0xc7   : > { %p2107_p5 = scmp.ne.s32.totalorder %s388_s18, %s2106_s20  ;;  %p2115_p11 = scmp.lt.s32.totalorder %s2106_s20, %s2106_s20 }
  0xc9   : > { %p2109_p7 = pnand %p2107_p5, %p2505_p8  ;;  %p2116_p12 = por %p2115_p11, %p2114_p10 }
  0xcb   : > { %p2110_p9 = pneg %p2109_p7 }
  0xcd   : > { %p2117_p4 = pnand %p2116_p12, %p2110_p9 }
  0xcf   : > { %2120 = shalt.err (!%p2117_p4)
}
  0xd0   : > { %1797 = dma.hbm_to_vmem [thread:$0]  (!%p2489_p6), %s3075_s6, 256, %s388_s18, [#allocation12], %s2367_s17, %s2367_s17, %s2368_s28  }
  0xd1   : > { %s2121_s1 = scalar_lea.hbm %s3047_s8, 256 }
  0xd2   : > { %p2122_p13 = scmp.ne.s32.totalorder %s3047_s8, %s2121_s1  ;;  %p2128_p3 = scmp.lt.u32.totalorder %s2121_s1, %s3047_s8 }
  0xd4   : > { %p2124_p0 = pnand %p2122_p13, %p2505_p8 }
  0xd6   : > { %p2125_p1 = pneg %p2124_p0 }
  0xd8   : > { %p2130_p2 = pnand %p2128_p3, %p2125_p1 }
  0xda   : > { %2133 = shalt.err (!%p2130_p2)
}
  0xdb   : > { %s2134_s18 = scalar_lea.vmem %s2633_s26, 256  ;;  %p2142_p10 = scmp.lt.s32.totalorder %s2633_s26, %s2633_s26 }
  0xdc   : > { %p2135_p5 = scmp.ne.s32.totalorder %s2633_s26, %s2134_s18  ;;  %p2143_p11 = scmp.lt.s32.totalorder %s2134_s18, %s2134_s18 }
  0xde   : > { %p2137_p7 = pnand %p2135_p5, %p2505_p8  ;;  %p2144_p12 = por %p2143_p11, %p2142_p10 }
  0xe0   : > { %p2138_p9 = pneg %p2137_p7 }
  0xe2   : > { %p2145_p4 = pnand %p2144_p12, %p2138_p9 }
  0xe4   : > { %2148 = shalt.err (!%p2145_p4)
}
  0xe5   : > { %1803 = dma.hbm_to_vmem [thread:$0]  (!%p2489_p6), %s3047_s8, 256, %s2633_s26, [#allocation15], %s2367_s17, %s2367_s17, %s2368_s28  }
  0xe6   : > { %s2371_s16 = smov [#allocation19]   ;;  %s2372_s30 = smov [#allocation20]  }
  0xe7   : > { %s435_s19 = sshll.u32 %s2371_s16, 4  ;;  %s449_s1 = sshll.u32 %s2372_s30, 4  ;;  %s436_s19 = int_to_ptr.vmem [resolvable:$true] %s435_s19  ;;  %s2682_s1 = int_to_ptr.vmem [resolvable:$true] %s449_s1 }
  0xe8   : > { %s2149_s12 = scalar_lea.hbm %s3049_s10, 256 }
  0xe9   : > { %p2150_p13 = scmp.ne.s32.totalorder %s3049_s10, %s2149_s12  ;;  %p2156_p3 = scmp.lt.u32.totalorder %s2149_s12, %s3049_s10 }
  0xeb   : > { %p2152_p0 = pnand %p2150_p13, %p2505_p8 }
  0xed   : > { %p2153_p1 = pneg %p2152_p0 }
  0xef   : > { %p2158_p2 = pnand %p2156_p3, %p2153_p1 }
  0xf1   : > { %2161 = shalt.err (!%p2158_p2)
}
  0xf2   : > { %s2162_s2 = scalar_lea.vmem %s436_s19, 256  ;;  %p2170_p10 = scmp.lt.s32.totalorder %s436_s19, %s436_s19 }
  0xf3   : > { %p2163_p5 = scmp.ne.s32.totalorder %s436_s19, %s2162_s2  ;;  %p2171_p11 = scmp.lt.s32.totalorder %s2162_s2, %s2162_s2 }
  0xf5   : > { %p2165_p7 = pnand %p2163_p5, %p2505_p8  ;;  %p2172_p12 = por %p2171_p11, %p2170_p10 }
  0xf7   : > { %p2166_p9 = pneg %p2165_p7 }
  0xf9   : > { %p2173_p4 = pnand %p2172_p12, %p2166_p9 }
  0xfb   : > { %2176 = shalt.err (!%p2173_p4)
}
  0xfc   : > { %1809 = dma.hbm_to_vmem [thread:$0]  (!%p2489_p6), %s3049_s10, 256, %s436_s19, [#allocation18], %s2367_s17, %s2367_s17, %s2368_s28  }
  0xfd   : > { %s2177_s12 = scalar_lea.hbm %s3050_s11, 16 }
  0xfe   : > { %p2178_p13 = scmp.ne.s32.totalorder %s3050_s11, %s2177_s12  ;;  %p2184_p3 = scmp.lt.u32.totalorder %s2177_s12, %s3050_s11 }
 0x100   : > { %p2180_p0 = pnand %p2178_p13, %p2505_p8 }
 0x102   : > { %p2181_p1 = pneg %p2180_p0 }
 0x104   : > { %p2186_p2 = pnand %p2184_p3, %p2181_p1 }
 0x106   : > { %2189 = shalt.err (!%p2186_p2)
}
 0x107   : > { %s2190_s17 = scalar_lea.vmem %s2682_s1, 16  ;;  %s2197_s28 = scalar_lea.vmem %s2682_s1, 32 }
 0x108   : > { %p2191_p5 = scmp.ne.s32.totalorder %s2682_s1, %s2190_s17  ;;  %p2198_p10 = scmp.lt.s32.totalorder %s2682_s1, %s2682_s1 }
 0x109   : > { %p2199_p11 = scmp.lt.s32.totalorder %s2197_s28, %s2190_s17 }
 0x10a   : > { %p2193_p7 = pnand %p2191_p5, %p2505_p8 }
 0x10b   : > { %p2200_p12 = por %p2199_p11, %p2198_p10 }
 0x10c   : > { %p2194_p9 = pneg %p2193_p7 }
 0x10e   : > { %p2201_p4 = pnand %p2200_p12, %p2194_p9 }
 0x110   : > { %2204 = shalt.err (!%p2201_p4)
}
 0x111   : > { %1812 = dma.hbm_to_vmem [thread:$0]  (!%p2489_p6), %s3050_s11, 16, %s2682_s1, [#allocation21]  }
 0x112   : > { %s1567_s15 = sadd.s32 4294967294, %s2359_s24   ;;  %s2731_s13 = sadd.s32 1, %s2359_s24  }
 0x113   : > { %s40_s16 = ssub.s32 %s2359_s24, %s2731_s13  ;;  %s43_s30 = sadd.s32 1, %s2355_s23 }
 0x114   : > { %p41_p8 = scmp.eq.s32.totalorder %s40_s16, 0  ;;  %p50_p13 = scmp.ne.s32.totalorder %s2355_s23, %s2351_s22 }
 0x115   : > { %p51_p0 = scmp.eq.s32.totalorder %s2359_s24, 0  ;;  %p56_p1 = scmp.ne.s32.totalorder %s2351_s22, %s2347_s21 }
 0x116   : > { %s2742_s14 = scalar_select %p41_p8, %s2355_s23, %s43_s30  }
 0x117   : > { %p2744_p3 = por %p51_p0, %p50_p13  ;;  %p3077_p2 = scmp.eq.s32.totalorder %s2471_s27, 0 }
 0x118   : > { %p316_p5 = scmp.eq.s32.totalorder %s2471_s27, 1  ;;  %p322_p7 = scmp.eq.s32.totalorder %s1567_s15, 1 }
 0x119   : > { %p2750_p6 = por %p3077_p2, %p56_p1  ;;  %p1834_p9 = scmp.lt.s32.totalorder %s2359_s24, 2 }
 0x11a   : > { %s2757_s12 = sand.u32 1, %s2355_s23   ;;  %p2759_p10 = por %p316_p5, %p50_p13 }
 0x11b   : > { %s3078_s1 = scalar_select %p2750_p6, 1, 0 }
 0x11c   : > { %s3079_s29 = scalar_select %p2759_p10, 1, 0 }
 0x11d   : > { %p2763_p11 = por %p322_p7, %p56_p1  ;;  %s1580_s20 = sshll.u32 %s2757_s12, 3 }
 0x11e   : > { %s1581_s26 = sshll.u32 %s2359_s24, 7  ;;  %s3081_s0 = sld [smem:[#allocation33_spill]] }
 0x11f   : > { %s3080_s18 = scalar_select %p2763_p11, 1, 0 }
 0x120   : > { %s464_s2 = scalar_lea.vmem [#allocation2], %s1580_s20  ;;  %p2778_p12 = pnand %p1834_p9, %p2744_p3 }
 0x121   : > { %s471_s15 = sshll.u32 %s464_s2, 4  ;;  %s461_s17 = scalar_lea.sflag [#allocation3], %s2757_s12  ;;  %s2774_s15 = int_to_ptr.vmem [resolvable:$true] %s471_s15 }
 0x122   : > { %p2207_p8 = pneg %p2778_p12 }
 0x124   : > { %s2772_s19 = scalar_lea.hbm %s3081_s0, %s1581_s26  ;;  %s2210_s25 = scalar_lea.hbm %s3081_s0, 256 }
 0x125   : > { %s2205_s26 = scalar_lea.hbm %s2772_s19, 128  ;;  %p2211_p1 = scmp.lt.u32.totalorder %s2772_s19, %s3081_s0 }
 0x126   : > { %p2206_p4 = scmp.ne.s32.totalorder %s2772_s19, %s2205_s26  ;;  %p2212_p3 = scmp.lt.u32.totalorder %s2210_s25, %s2205_s26 }
 0x127   : > { %p2214_p5 = scmp.lt.u32.totalorder %s2205_s26, %s2772_s19 }
 0x128   : > { %p2208_p13 = pnand %p2207_p8, %p2206_p4  ;;  %p2213_p2 = por %p2212_p3, %p2211_p1 }
 0x12a   : > { %p2209_p0 = pneg %p2208_p13  ;;  %p2215_p7 = por %p2214_p5, %p2213_p2 }
 0x12c   : > { %p2216_p9 = pnand %p2215_p7, %p2209_p0 }
 0x12e   : > { %2219 = shalt.err (!%p2216_p9)
}
 0x12f   : > { %s2220_s30 = scalar_lea.vmem %s2774_s15, 128  ;;  %s2373_s20 = smov [#allocation2]  }
 0x130   : > { %p2221_p4 = scmp.ne.s32.totalorder %s2774_s15, %s2220_s30  ;;  %s2225_s28 = sshll.u32 %s2373_s20, 4  ;;  %s2226_s28 = int_to_ptr.vmem [resolvable:$false] %s2225_s28 }
 0x131   : > { %s2227_s4 = scalar_lea.vmem %s2226_s28, 256  ;;  %p2228_p10 = scmp.lt.s32.totalorder %s2774_s15, %s2226_s28 }
 0x132   : > { %p2223_p13 = pnand %p2221_p4, %p2207_p8  ;;  %p2229_p1 = scmp.lt.s32.totalorder %s2227_s4, %s2220_s30 }
 0x134   : > { %p2224_p11 = pneg %p2223_p13  ;;  %p2230_p3 = por %p2229_p1, %p2228_p10 }
 0x136   : > { %p2231_p2 = pnand %p2230_p3, %p2224_p11 }
 0x138   : > { %2234 = shalt.err (!%p2231_p2)
}
 0x139   : > { %1816 = dma.hbm_to_vmem [thread:$0]  (!%p2778_p12), %s2772_s19, 128, %s2774_s15, %s461_s17  }
 0x13a   : > { %s1583_s26 = sshll.u32 %s2359_s24, 5  ;;  %s3083_s20 = sld [smem:[#allocation34_spill]] }
 0x13b   : > { %s3084_s28 = sshll.u32 %s2757_s12, 1  ;;  %s3085_s0 = sand.u32 1, %s2359_s24  }
 0x13c   : > { %s482_s30 = scalar_lea.vmem [#allocation5], %s3084_s28  ;;  %s479_s5 = scalar_lea.sflag [#allocation6], %s3085_s0 }
 0x13d   : > { %s489_s4 = sshll.u32 %s482_s30, 4  ;;  %s490_s4 = int_to_ptr.vmem [resolvable:$true] %s489_s4 }
 0x140   : > { %s2814_s3 = scalar_lea.hbm %s3083_s20, %s1583_s26  ;;  %s2240_s17 = scalar_lea.hbm %s3083_s20, 64 }
 0x141   : > { %s2235_s6 = scalar_lea.hbm %s2814_s3, 32  ;;  %p2241_p5 = scmp.lt.u32.totalorder %s2814_s3, %s3083_s20 }
 0x142   : > { %p2236_p10 = scmp.ne.s32.totalorder %s2814_s3, %s2235_s6  ;;  %p2242_p7 = scmp.lt.u32.totalorder %s2240_s17, %s2235_s6 }
 0x143   : > { %p2244_p4 = scmp.lt.u32.totalorder %s2235_s6, %s2814_s3 }
 0x144   : > { %p2238_p11 = pnand %p2236_p10, %p2207_p8  ;;  %p2243_p9 = por %p2242_p7, %p2241_p5 }
 0x146   : > { %p2239_p0 = pneg %p2238_p11  ;;  %p2245_p13 = por %p2244_p4, %p2243_p9 }
 0x148   : > { %p2246_p1 = pnand %p2245_p13, %p2239_p0 }
 0x14a   : > { %2249 = shalt.err (!%p2246_p1)
}
 0x14b   : > { %s2250_s0 = scalar_lea.vmem %s490_s4, 32  ;;  %s2374_s25 = smov [#allocation5]  }
 0x14c   : > { %p2251_p3 = scmp.ne.s32.totalorder %s490_s4, %s2250_s0  ;;  %s2255_s2 = sshll.u32 %s2374_s25, 4  ;;  %s2256_s2 = int_to_ptr.vmem [resolvable:$false] %s2255_s2 }
 0x14d   : > { %s2257_s28 = scalar_lea.vmem %s2256_s2, 64  ;;  %p2258_p11 = scmp.lt.s32.totalorder %s490_s4, %s2256_s2 }
 0x14e   : > { %p2253_p2 = pnand %p2251_p3, %p2207_p8  ;;  %p2259_p6 = scmp.lt.s32.totalorder %s2257_s28, %s2250_s0 }
 0x150   : > { %p2254_p10 = pneg %p2253_p2  ;;  %p2260_p5 = por %p2259_p6, %p2258_p11 }
 0x152   : > { %p2261_p7 = pnand %p2260_p5, %p2254_p10 }
 0x154   : > { %2264 = shalt.err (!%p2261_p7)
}
 0x155   : > { %1819 = dma.hbm_to_vmem [thread:$0]  (!%p2778_p12), %s2814_s3, 32, %s490_s4, %s479_s5  }
 0x156   : > { %s3086_s6 = sld [smem:[#allocation32_spill]] }
 0x15c   : > { %p3087_p0 = scmp.ne.s32.totalorder %s3086_s6, 0 }
 0x15d   : > { %s2842_s30 = sand.u32 (!%p3087_p0), 1, %s2351_s22   ;;  %p3088_p6 = scmp.ne.s32.totalorder (!%p3087_p0), %s3078_s1, 0 }
 0x15e   : > { %498 = sbr.rel (%p3087_p0) target bundleno = 2177 (0x881), region = 68  ;;  %s1585_s19 = sshll.u32 (!%p3087_p0), %s2842_s30, 3 }
 0x15f   : > { %s501_s15 = scalar_lea.sflag (!%p3087_p0), [#allocation3], %s2842_s30  ;;  %s504_s17 = scalar_lea.vmem (!%p3087_p0), [#allocation2], %s1585_s19 }
 0x165   : > { %2310 = dma.done.wait (%p3088_p6), %s501_s15, 128  }
 0x166   : > { %2312 = vsyncadd (%p3088_p6), %s501_s15, 4294967168  ;;  %s509_s3 = sand.u32 1, %s2471_s27   ;;  %s1586_s5 = sshll.u32 %s2842_s30, 1 }
 0x167   : > { %s510_s16 = scalar_lea.sflag [#allocation6], %s509_s3  ;;  %s2854_s4 = scalar_lea.vmem [#allocation5], %s1586_s5 }
 0x168   : > { %2314 = dma.done.wait (%p3088_p6), %s510_s16, 32  }
 0x169   : > { %2316 = vsyncadd (%p3088_p6), %s510_s16, 4294967264  ;;  %p3089_p12 = scmp.eq.s32.totalorder %s2471_s27, 0 }
 0x16b   : > { %2318 = dma.done.wait (%p3089_p12), [#allocation6], 16   ;;  %p3090_p8 = pmov %p3089_p12 }
 0x16d   : > { %2320 = vsyncadd (%p3090_p8), [#allocation6], 4294967280  ;;  %p3091_p9 = pmov %p3090_p8 }
 0x16e   : > { %p3092_p4 = pmov %p3090_p8 }
 0x16f   : > { %2322 = dma.done.wait (%p3091_p9), [#allocation9], 272  }
 0x170   : > { %2324 = vsyncadd (%p3092_p4), [#allocation9], 4294967024  ;;  %p3093_p13 = pmov %p3092_p4 }
 0x171   : > { %p3094_p1 = pmov %p3092_p4 }
 0x172   : > { %2326 = dma.done.wait (%p3093_p13), [#allocation12], 272  }
 0x173   : > { %2328 = vsyncadd (%p3094_p1), [#allocation12], 4294967024  ;;  %p3095_p3 = pmov %p3094_p1 }
 0x174   : > { %p3096_p2 = pmov %p3094_p1 }
 0x175   : > { %2330 = dma.done.wait (%p3095_p3), [#allocation15], 272  }
 0x176   : > { %2332 = vsyncadd (%p3096_p2), [#allocation15], 4294967024  ;;  %p3097_p10 = pmov %p3094_p1 }
 0x177   : > { %p3098_p11 = pmov %p3094_p1 }
 0x178   : > { %2334 = dma.done.wait (%p3097_p10), [#allocation18], 272  }
 0x179   : > { %2336 = vsyncadd (%p3098_p11), [#allocation18], 4294967024  ;;  %p3099_p5 = pmov %p3094_p1 }
 0x17a   : > { %p3100_p7 = pmov %p3094_p1 }
 0x17b   : > { %2338 = dma.done.wait (%p3099_p5), [#allocation21], 16  }
 0x17c   : > { %2340 = vsyncadd (%p3100_p7), [#allocation21], 4294967280  ;;  %vm605_vm0 = vcmask 261120   ;;  %v2884_v0 = vld [vmem:[%s504_s17] sm:$0xff]  ;;  %v1899_v7 = vld [vmem:[#allocation10] sm:$0xff]   ;;  %v2375_v9 = vmov 0.0  }
 0x17d   : > { %v606_v1 = vsel %vm605_vm0, %v2884_v0, 0.0  ;;  %v1900_v8 = vld [vmem:[#allocation13] sm:$0xff]   ;;  %1656 = vmatprep.subr.bf16.mxu0 %v2375_v9  ;;  %1664 = vmatprep.subr.bf16.mxu1 %v2375_v9  ;;  %v1901_v10 = vld [vmem:[#allocation10 + $0x8] sm:$0xff]   ;;  %v1902_v11 = vld [vmem:[#allocation13 + $0x8] sm:$0xff]   ;;  %vm2376_vm1 = vmmov 0   ;;  %vm838_vm2 = vcmask 64512  }
 0x17e   : > { %607 = vadd.xlane.f32.xlu0 %v606_v1  ;;  %1657 = vmatpush3.bf16.msra.mxu0 %v1899_v7  ;;  %v1598_v16 = vld [vmem:[#allocation7] ss:$0 sm:$0xff]  ;;  %v1599_v18 = vld [vmem:[#allocation8] ss:$0 sm:$0xff]  ;;  %v1903_v21 = vld [vmem:[#allocation16] sm:$0xff]   ;;  %s2377_s1 = smov 112  }
 0x17f   : > { %1665 = vmatpush3.bf16.msra.mxu1 %v1900_v8  ;;  %1658 = vmatprep.subr.bf16.mxu0 %v2375_v9  ;;  %v1904_v23 = vld [vmem:[#allocation16 + $0x8] sm:$0xff]   ;;  %v1604_v25 = vld [vmem:[#allocation14] ss:$0 sm:$0xff]  ;;  %s2378_s12 = smov 120   ;;  %v1608_v39 = vld [vmem:[#allocation17] ss:$0 sm:$0xff] }
 0x180   : > { %1666 = vmatprep.subr.bf16.mxu1 %v2375_v9  ;;  %1660 = vmatprep.mubr.msk.bf16.mxu0 %vm2376_vm1, %v2375_v9  ;;  %v1600_v24 = vld [vmem:[#allocation11] ss:$0 sm:$0xff]  ;;  %vm904_vm3 = vcmask 1043456   ;;  %s2379_s26 = smov 104   ;;  %v634_v57 = vld [vmem:[%s2854_s4] sm:$0x3] }
 0x181   : > { %1668 = vmatprep.mubr.msk.bf16.mxu1 %vm2376_vm1, %v2375_v9  ;;  %vm837_vm4 = vnez %v634_v57  ;;  %v2380_v58 = vmov 0   ;;  %s2381_s0 = smov 8   ;;  %s2382_s25 = smov 16   ;;  %vm1297_vm6 = vcmask 130048   ;;  %vm1299_vm7 = vcmask 195584  }
 0x182   : > { %1659 = vmatpush3.bf16.msra.mxu0 %v1901_v10  ;;  %v885_v59 = vsel %vm837_vm4, 16843009, %v2380_v58  ;;  %s2383_s2 = smov 24   ;;  %s1625_s28 = sshll.u32 %s2471_s27, 7 }
 0x183   : > { %1667 = vmatpush3.bf16.msra.mxu1 %v1902_v11  ;;  %1672 = vmatprep.subr.bf16.mxu0 %v2375_v9  ;;  %v886_v60 = vunpack.c.0.s8 %v885_v59  ;;  %s598_s6 = scalar_lea.vmem [#allocation22], %s1585_s19  ;;  %s3103_s5 = sld [smem:[#allocation40_spill]] }
 0x184   : > { %1680 = vmatprep.subr.bf16.mxu1 %v2375_v9  ;;  %s1379_s15 = sshll.u32 %s598_s6, 4  ;;  %s1366_s27 = scalar_lea.sflag [#allocation4], %s2842_s30  ;;  %s2996_s15 = int_to_ptr.vmem [resolvable:$true] %s1379_s15 }
 0x185   : > { %vm2943_vm5 = vcmp.ne.s32.totalorder %v886_v60, 0  ;;  %s2265_s19 = scalar_lea.vmem %s2996_s15, 128  ;;  %p3104_p6 = scmp.ne.s32.totalorder %s3079_s29, 0 }
 0x186   : > { %p2266_p0 = scmp.ne.s32.totalorder %s2996_s15, %s2265_s19  ;;  %s2384_s4 = smov [#allocation22]  }
 0x188   : > { %p2267_p12 = pnand %p2266_p0, %p3104_p6 }
 0x189   : > { %s2994_s16 = scalar_lea.hbm %s3103_s5, %s1625_s28 }
 0x18a   : > { %p2268_p8 = pneg %p2267_p12 }
 0x20b   : > { %v608_v2 = vpop.xlane.xlu0 %607 }
 0x20c   : > { %v610_v3 = vmul.f32 0.03125, %v608_v2 }
 0x20e   : > { %v611_v4 = vsub.f32 %v2884_v0, %v610_v3 }
 0x210   : > { %v612_v5 = vmul.f32 %v611_v4, %v611_v4 }
 0x212   : > { %v613_v6 = vsel %vm605_vm0, %v612_v5, 0.0 }
 0x213   : > { %614 = vadd.xlane.f32.xlu0 %v613_v6 }
 0x2a0   : > { %v615_v12 = vpop.xlane.xlu0 %614 }
 0x2a1   : > { %v616_v13 = vmul.f32 0.03125, %v615_v12 }
 0x2a3   : > { %v617_v14 = vadd.f32 1e-06, %v616_v13 }
 0x2a5   : > { %1907 = vrsqrt.f32 %v617_v14 }
 0x2af   : > { %v1908_v15 = vpop.eup %1907 }
 0x2b0   : > { %v619_v17 = vmul.f32 %v1908_v15, %v611_v4 }
 0x2b2   : > { %v626_v19 = vmul.f32 %v1598_v16, %v619_v17 }
 0x2b4   : > { %v633_v20 = vadd.f32 %v1599_v18, %v626_v19 }
 0x2b6   : > { %v655_v22 = vpack.c.bf16 %v633_v20, %v633_v20 }
 0x2b8   : > { %1661 = vmatmul.mubr.msk.bf16.vlgmr.msra.gmra.mrb[0].mxu0 %vm605_vm0, %v655_v22  ;;  %1669 = vmatmul.mubr.msk.bf16.vlgmr.msra.gmra.mrb[0].mxu1 %vm605_vm0, %v655_v22 }
 0x2b9   : > { %1673 = vmatpush3.bf16.msra.mxu0 %v1903_v21  ;;  %1676 = vmatprep.mubr.msk.bf16.mxu0 %vm2376_vm1, %v2375_v9 }
 0x2ba   : > { %1674 = vmatprep.subr.bf16.mxu0 %v2375_v9  ;;  %1682 = vmatprep.mubr.msk.bf16.mxu1 %vm2376_vm1, %v2375_v9 }
 0x2bd   : > { %1675 = vmatpush3.bf16.msra.mxu0 %v1904_v23 }
 0x2be   : > { %1686 = vmatprep.subr.bf16.mxu0 %v2375_v9 }
 0x2c0   : > { %1677 = vmatmul.mubr.msk.bf16.vlgmr.msra.gmra.mrb[4].mxu0 %vm605_vm0, %v655_v22 }
 0x2c1   : > { %1688 = vmatprep.mubr.msk.bf16.mxu0 %vm2376_vm1, %v2375_v9 }
 0x38b   : > { %v711_v26 = vpop.f32.mrb[0].mxu0  ;;  %v770_v27 = vpop.f32.mrb[0].mxu1 }
 0x38c   : > { %v712_v28 = vadd.f32 %v1600_v24, %v711_v26  ;;  %v771_v29 = vadd.f32 %v1604_v25, %v770_v27  ;;  %v1662_v30 = vpop.f32.mrb[1].mxu0  ;;  %v1670_v31 = vpop.f32.mrb[1].mxu1 }
 0x38d   : > { %v714_v32 = vpop.f32.mrb[2].mxu0  ;;  %v773_v33 = vpop.f32.mrb[2].mxu1 }
 0x38e   : > { %v717_v34 = vmul.f32 0.35355338, %v712_v28  ;;  %v835_v35 = vpack.c.bf16 %v771_v29, %v771_v29  ;;  %v1663_v36 = vpop.f32.mrb[3].mxu0  ;;  %v1671_v37 = vpop.f32.mrb[3].mxu1 }
 0x390   : > { %1064 = vrot.lane.b32.xlu0 %v835_v35, %s2377_s1  ;;  %952 = vrot.lane.b32.xlu1 %v835_v35, %s2378_s12  ;;  %v843_v38 = vsel %vm838_vm2, %v835_v35, 0  ;;  %v834_v40 = vpack.c.bf16 %v717_v34, %v717_v34 }
 0x391   : > { %1681 = vmatpush3.bf16.xpose.msra.mxu1 %v843_v38 }
 0x392   : > { %1692 = vmatprep.subr.bf16.mxu1 %v2375_v9 }
 0x393   : > { %v828_v41 = vpop.f32.mrb[4].mxu0 }
 0x394   : > { %v829_v42 = vadd.f32 %v1608_v39, %v828_v41  ;;  %949 = vrot.lane.b32.xlu1 %v834_v40, %s2378_s12  ;;  %v1678_v43 = vpop.f32.mrb[5].mxu0 }
 0x395   : > { %v831_v44 = vpop.f32.mrb[6].mxu0 }
 0x396   : > { %v2916_v45 = vpack.c.bf16 %v829_v42, %v829_v42  ;;  %v1679_v46 = vpop.f32.mrb[7].mxu0 }
 0x398   : > { %1062 = vrot.lane.b32.xlu1 %v834_v40, %s2377_s1  ;;  %1683 = vmatmul.mubr.msk.bf16.vlgmr.msra.gmra.mrb[4].mxu1 %vm838_vm2, %v834_v40  ;;  %v906_v47 = vsel %vm904_vm3, %v2916_v45, 0 }
 0x399   : > { %1687 = vmatpush3.bf16.msra.mxu0 %v906_v47  ;;  %1694 = vmatprep.mubr.msk.bf16.mxu1 %vm2376_vm1, %v2375_v9 }
 0x39a   : > { %1698 = vmatprep.subr.bf16.mxu0 %v2375_v9 }
 0x39c   : > { %1175 = vrot.lane.b32.xlu1 %v835_v35, %s2379_s26 }
 0x3a0   : > { %1173 = vrot.lane.b32.xlu1 %v834_v40, %s2379_s26 }
 0x402   : > { %v953_v48 = vpop.permute.xlu1 %952  ;;  %v1065_v51 = vpop.permute.xlu0 %1064 }
 0x403   : > { %v958_v49 = vsel %vm838_vm2, %v953_v48, 0  ;;  %v1070_v53 = vsel %vm838_vm2, %v1065_v51, 0 }
 0x404   : > { %1693 = vmatpush3.bf16.xpose.msra.mxu1 %v958_v49 }
 0x405   : > { %1704 = vmatprep.subr.bf16.mxu1 %v2375_v9 }
 0x406   : > { %v950_v50 = vpop.permute.xlu1 %949 }
 0x40a   : > { %v1063_v52 = vpop.permute.xlu1 %1062 }
 0x40b   : > { %1695 = vmatmul.mubr.msk.bf16.vlgmr.msra.gmra.mrb[8].mxu1 %vm838_vm2, %v950_v50 }
 0x40c   : > { %1705 = vmatpush3.bf16.xpose.msra.mxu1 %v1070_v53  ;;  %1706 = vmatprep.mubr.msk.bf16.mxu1 %vm2376_vm1, %v2375_v9 }
 0x40d   : > { %1716 = vmatprep.subr.bf16.mxu1 %v2375_v9 }
 0x40e   : > { %v1176_v54 = vpop.permute.xlu1 %1175 }
 0x40f   : > { %v1181_v55 = vsel %vm838_vm2, %v1176_v54, 0 }
 0x412   : > { %v1174_v56 = vpop.permute.xlu1 %1173 }
 0x413   : > { %1707 = vmatmul.mubr.msk.bf16.vlgmr.msra.gmra.mrb[12].mxu1 %vm838_vm2, %v1063_v52 }
 0x414   : > { %1717 = vmatpush3.bf16.xpose.msra.mxu1 %v1181_v55  ;;  %1718 = vmatprep.mubr.msk.bf16.mxu1 %vm2376_vm1, %v2375_v9 }
 0x415   : > { %1728 = vmatprep.subr.bf16.mxu1 %v2375_v9 }
 0x41b   : > { %1719 = vmatmul.mubr.msk.bf16.vlgmr.msra.gmra.mrb[16].mxu1 %vm838_vm2, %v1174_v56 }
 0x41c   : > { %1732 = vmatprep.mubr.msk.bf16.mxu1 %vm2376_vm1, %v2375_v9 }
 0x46b   : > { %v879_v62 = vpop.f32.mrb[4].mxu1 }
 0x46c   : > { %v888_v63 = vsel %vm2943_vm5, -1e+30, %v879_v62  ;;  %v1684_v1 = vpop.f32.mrb[5].mxu1 }
 0x46d   : > { %v882_v2 = vpop.f32.mrb[6].mxu1  ;;  %v889_v3 = vsel %vm838_vm2, %v888_v63, -inf }
 0x46e   : > { %890 = vmax.xlane.f32.xlu1 %v889_v3  ;;  %v1685_v4 = vpop.f32.mrb[7].mxu1 }
 0x4de   : > { %v994_v5 = vpop.f32.mrb[8].mxu1 }
 0x4df   : > { %v1000_v6 = vsel %vm2943_vm5, -1e+30, %v994_v5  ;;  %v1696_v7 = vpop.f32.mrb[9].mxu1 }
 0x4e0   : > { %v997_v8 = vpop.f32.mrb[10].mxu1  ;;  %v1001_v10 = vsel %vm838_vm2, %v1000_v6, -inf  ;;  %v1905_v7 = vld [vmem:[#allocation19] sm:$0xff]  }
 0x4e1   : > { %1002 = vmax.xlane.f32.xlu0 %v1001_v10  ;;  %v1697_v11 = vpop.f32.mrb[11].mxu1  ;;  %1729 = vmatpush3.bf16.msra.mxu1 %v1905_v7 }
 0x4e2   : > { %1730 = vmatprep.subr.bf16.mxu1 %v2375_v9 }
 0x4e6   : > { %v1106_v12 = vpop.f32.mrb[12].mxu1 }
 0x4e7   : > { %v1112_v13 = vsel %vm2943_vm5, -1e+30, %v1106_v12  ;;  %v1708_v14 = vpop.f32.mrb[13].mxu1 }
 0x4e8   : > { %v1109_v15 = vpop.f32.mrb[14].mxu1  ;;  %v1113_v16 = vsel %vm838_vm2, %v1112_v13, -inf }
 0x4e9   : > { %1114 = vmax.xlane.f32.xlu1 %v1113_v16  ;;  %v1709_v17 = vpop.f32.mrb[15].mxu1 }
 0x4ea   : > { %v1906_v17 = vld [vmem:[#allocation19 + $0x8] sm:$0xff]  }
 0x4eb   : > { %1731 = vmatpush3.bf16.msra.mxu1 %v1906_v17 }
 0x4ee   : > { %v1217_v18 = vpop.f32.mrb[16].mxu1 }
 0x4ef   : > { %v1223_v19 = vsel %vm2943_vm5, -1e+30, %v1217_v18  ;;  %v1720_v20 = vpop.f32.mrb[17].mxu1 }
 0x4f0   : > { %v1220_v21 = vpop.f32.mrb[18].mxu1  ;;  %v1224_v22 = vsel %vm838_vm2, %v1223_v19, -inf }
 0x4f1   : > { %1225 = vmax.xlane.f32.xlu1 %v1224_v22  ;;  %v1721_v23 = vpop.f32.mrb[19].mxu1 }
 0x4fb   : > { %v891_v24 = vpop.xlane.xlu1 %890 }
 0x4fc   : > { %v892_v25 = vsub.f32 %v888_v63, %v891_v24 }
 0x4fe   : > { %v893_v26 = vmul.f32 1.442695, %v892_v25 }
 0x500   : > { %1909 = vpow2.f32 %v893_v26 }
 0x50a   : > { %v1910_v27 = vpop.eup %1909 }
 0x50b   : > { %v895_v28 = vsel %vm838_vm2, %v1910_v27, 0.0 }
 0x50c   : > { %896 = vadd.xlane.f32.xlu0 %v895_v28  ;;  %v1620_v28 = vld [vmem:[#allocation20] ss:$0 sm:$0xff] }
 0x56e   : > { %v1003_v29 = vpop.xlane.xlu0 %1002 }
 0x56f   : > { %v1004_v30 = vsub.f32 %v1000_v6, %v1003_v29 }
 0x571   : > { %v1005_v31 = vmul.f32 1.442695, %v1004_v30 }
 0x573   : > { %1911 = vpow2.f32 %v1005_v31 }
 0x576   : > { %v1115_v32 = vpop.xlane.xlu1 %1114 }
 0x577   : > { %v1116_v33 = vsub.f32 %v1112_v13, %v1115_v32 }
 0x579   : > { %v1117_v34 = vmul.f32 1.442695, %v1116_v33 }
 0x57b   : > { %1913 = vpow2.f32 %v1117_v34 }
 0x57d   : > { %v1912_v35 = vpop.eup %1911 }
 0x57e   : > { %v1007_v36 = vsel %vm838_vm2, %v1912_v35, 0.0  ;;  %v1226_v40 = vpop.xlane.xlu1 %1225 }
 0x57f   : > { %1008 = vadd.xlane.f32.xlu1 %v1007_v36  ;;  %v1227_v41 = vsub.f32 %v1223_v19, %v1226_v40 }
 0x581   : > { %v1228_v42 = vmul.f32 1.442695, %v1227_v41 }
 0x585   : > { %v1914_v37 = vpop.eup %1913 }
 0x586   : > { %v1119_v38 = vsel %vm838_vm2, %v1914_v37, 0.0 }
 0x587   : > { %1120 = vadd.xlane.f32.xlu0 %v1119_v38 }
 0x590   : > { %1125 = vrot.lane.b32.xlu1 %v2916_v45, %s2377_s1  ;;  %s2269_s1 = sshll.u32 %s2384_s4, 4  ;;  %s2270_s1 = int_to_ptr.vmem [resolvable:$false] %s2269_s1 }
 0x591   : > { %p2272_p9 = scmp.lt.s32.totalorder %s2996_s15, %s2270_s1 }
 0x599   : > { %v897_v39 = vpop.xlane.xlu0 %896 }
 0x59a   : > { %1915 = vrcp.f32 %v897_v39 }
 0x59b   : > { %1917 = vpow2.f32 %v1228_v42 }
 0x59d   : > { %1014 = vrot.lane.b32.xlu0 %v2916_v45, %s2378_s12  ;;  %s2271_s12 = scalar_lea.vmem %s2270_s1, 256 }
 0x59e   : > { %p2273_p4 = scmp.lt.s32.totalorder %s2271_s12, %s2265_s19 }
 0x5a0   : > { %p2274_p13 = por %p2273_p4, %p2272_p9 }
 0x5a2   : > { %p2275_p1 = pnand %p2274_p13, %p2268_p8 }
 0x5a4   : > { %v1916_v43 = vpop.eup %1915 }
 0x5a5   : > { %v899_v44 = vmul.f32 %v1916_v43, %v1910_v27  ;;  %v1918_v47 = vpop.eup %1917 }
 0x5a6   : > { %v1230_v48 = vsel %vm838_vm2, %v1918_v47, 0.0 }
 0x5a7   : > { %v900_v46 = vpack.c.bf16 %v899_v44, %v899_v44 }
 0x5a9   : > { %1689 = vmatmul.mubr.msk.bf16.vlgmr.msra.gmra.mrb[8].mxu0 %vm838_vm2, %v900_v46 }
 0x5aa   : > { %1700 = vmatprep.mubr.msk.bf16.mxu0 %vm2376_vm1, %v2375_v9 }
 0x5b4   : > { %1231 = vadd.xlane.f32.xlu1 %v1230_v48 }
 0x5c5   : > { %1236 = vrot.lane.b32.xlu1 %v2916_v45, %s2379_s26 }
 0x60c   : > { %v1009_v49 = vpop.xlane.xlu1 %1008 }
 0x60d   : > { %1919 = vrcp.f32 %v1009_v49 }
 0x610   : > { %v1126_v55 = vpop.permute.xlu1 %1125 }
 0x611   : > { %v1131_v57 = vsel %vm904_vm3, %v1126_v55, 0 }
 0x614   : > { %v1121_v50 = vpop.xlane.xlu0 %1120 }
 0x615   : > { %1921 = vrcp.f32 %v1121_v50 }
 0x617   : > { %v1920_v51 = vpop.eup %1919 }
 0x618   : > { %v1011_v52 = vmul.f32 %v1920_v51, %v1912_v35  ;;  %v1015_v53 = vpop.permute.xlu0 %1014 }
 0x619   : > { %v1020_v54 = vsel %vm904_vm3, %v1015_v53, 0 }
 0x61a   : > { %1699 = vmatpush3.bf16.msra.mxu0 %v1020_v54  ;;  %v1012_v56 = vpack.c.bf16 %v1011_v52, %v1011_v52 }
 0x61b   : > { %1710 = vmatprep.subr.bf16.mxu0 %v2375_v9 }
 0x61d   : > { %1701 = vmatmul.mubr.msk.bf16.vlgmr.msra.gmra.mrb[12].mxu0 %vm838_vm2, %v1012_v56 }
 0x61e   : > { %1711 = vmatpush3.bf16.msra.mxu0 %v1131_v57  ;;  %1712 = vmatprep.mubr.msk.bf16.mxu0 %vm2376_vm1, %v2375_v9 }
 0x61f   : > { %v1922_v45 = vpop.eup %1921  ;;  %1722 = vmatprep.subr.bf16.mxu0 %v2375_v9 }
 0x620   : > { %v1123_v58 = vmul.f32 %v1922_v45, %v1914_v37 }
 0x622   : > { %v1124_v59 = vpack.c.bf16 %v1123_v58, %v1123_v58 }
 0x625   : > { %1713 = vmatmul.mubr.msk.bf16.vlgmr.msra.gmra.mrb[16].mxu0 %vm838_vm2, %v1124_v59 }
 0x626   : > { %1724 = vmatprep.mubr.msk.bf16.mxu0 %vm2376_vm1, %v2375_v9 }
 0x641   : > { %v1232_v60 = vpop.xlane.xlu1 %1231 }
 0x642   : > { %1923 = vrcp.f32 %v1232_v60 }
 0x645   : > { %v1237_v61 = vpop.permute.xlu1 %1236 }
 0x646   : > { %v1242_v62 = vsel %vm904_vm3, %v1237_v61, 0 }
 0x647   : > { %1723 = vmatpush3.bf16.msra.mxu0 %v1242_v62 }
 0x64c   : > { %v1924_v63 = vpop.eup %1923 }
 0x64d   : > { %v1234_v1 = vmul.f32 %v1924_v63, %v1918_v47 }
 0x64f   : > { %v1235_v2 = vpack.c.bf16 %v1234_v1, %v1234_v1 }
 0x651   : > { %1725 = vmatmul.mubr.msk.bf16.vlgmr.msra.gmra.mrb[20].mxu0 %vm838_vm2, %v1235_v2 }
 0x67c   : > { %v942_v3 = vpop.f32.mrb[8].mxu0 }
 0x67d   : > { %v1690_v4 = vpop.f32.mrb[9].mxu0 }
 0x67e   : > { %v945_v5 = vpop.f32.mrb[10].mxu0 }
 0x67f   : > { %v1691_v6 = vpop.f32.mrb[11].mxu0 }
 0x6f0   : > { %v1056_v8 = vpop.f32.mrb[12].mxu0 }
 0x6f1   : > { %1285 = vrot.lane.b32.xlu0 %v1056_v8, %s2381_s0  ;;  %v1702_v10 = vpop.f32.mrb[13].mxu0 }
 0x6f2   : > { %v1059_v11 = vpop.f32.mrb[14].mxu0 }
 0x6f3   : > { %v1703_v12 = vpop.f32.mrb[15].mxu0 }
 0x6f8   : > { %v1167_v13 = vpop.f32.mrb[16].mxu0 }
 0x6f9   : > { %1289 = vrot.lane.b32.xlu1 %v1167_v13, %s2382_s25  ;;  %v1714_v14 = vpop.f32.mrb[17].mxu0 }
 0x6fa   : > { %v1170_v15 = vpop.f32.mrb[18].mxu0 }
 0x6fb   : > { %v1715_v16 = vpop.f32.mrb[19].mxu0 }
 0x724   : > { %v1278_v18 = vpop.f32.mrb[20].mxu0 }
 0x725   : > { %1293 = vrot.lane.b32.xlu0 %v1278_v18, %s2383_s2  ;;  %v1726_v19 = vpop.f32.mrb[21].mxu0 }
 0x726   : > { %v1281_v9 = vpop.f32.mrb[22].mxu0 }
 0x727   : > { %v1727_v20 = vpop.f32.mrb[23].mxu0 }
 0x763   : > { %v1286_v21 = vpop.permute.xlu0 %1285 }
 0x764   : > { %v1296_v23 = vsel %vm838_vm2, %v942_v3, %v1286_v21 }
 0x76b   : > { %v1290_v22 = vpop.permute.xlu1 %1289 }
 0x76c   : > { %v1298_v24 = vsel %vm1297_vm6, %v1296_v23, %v1290_v22 }
 0x797   : > { %v1294_v25 = vpop.permute.xlu0 %1293 }
 0x798   : > { %v1300_v26 = vsel %vm1299_vm7, %v1298_v24, %v1294_v25 }
 0x799   : > { %v1301_v27 = vpack.c.bf16 %v1300_v26, %v1300_v26 }
 0x79b   : > { %1733 = vmatmul.mubr.msk.bf16.vlgmr.msra.gmra.mrb[20].mxu1 %vm605_vm0, %v1301_v27 }
 0x86e   : > { %v1357_v29 = vpop.f32.mrb[20].mxu1 }
 0x86f   : > { %v1358_v30 = vadd.f32 %v1620_v28, %v1357_v29  ;;  %v1734_v31 = vpop.f32.mrb[21].mxu1 }
 0x870   : > { %v1360_v32 = vpop.f32.mrb[22].mxu1 }
 0x871   : > { %v1363_v33 = vadd.f32 %v1358_v30, %v2884_v0  ;;  %v1735_v34 = vpop.f32.mrb[23].mxu1 }
 0x873   : > { %1364 = vst.msk [vmem:[%s598_s6] sm:$0xff] %vm605_vm0, %v1363_v33 }
 0x874   : > { %2278 = shalt.err (!%p2275_p1)
}
 0x875   : > { %s2279_s30 = scalar_lea.hbm %s2994_s16, 128  ;;  %s2283_s25 = scalar_lea.hbm %s3103_s5, 256 }
 0x876   : > { %p2280_p3 = scmp.ne.s32.totalorder %s2994_s16, %s2279_s30  ;;  %p2284_p11 = scmp.lt.u32.totalorder %s2994_s16, %s3103_s5 }
 0x877   : > { %p2285_p5 = scmp.lt.u32.totalorder %s2283_s25, %s2279_s30  ;;  %p2287_p0 = scmp.lt.u32.totalorder %s2279_s30, %s2994_s16 }
 0x878   : > { %p2281_p2 = pnand %p2280_p3, %p3104_p6 }
 0x879   : > { %p2286_p7 = por %p2285_p5, %p2284_p11 }
 0x87a   : > { %p2282_p10 = pneg %p2281_p2 }
 0x87b   : > { %p2288_p12 = por %p2287_p0, %p2286_p7 }
 0x87d   : > { %p2289_p8 = pnand %p2288_p12, %p2282_p10 }
 0x87f   : > { %2292 = shalt.err (!%p2289_p8)
}
 0x880   : > { %1780 = dma.vmem_to_hbm [thread:$0]  (%p3104_p6), %s2996_s15, 128, %s2994_s16, %s1366_s27  }
 0x881 PF: > { %s1391_s6 = sand.u32 1, %s2347_s21   ;;  %p3105_p9 = scmp.ne.s32.totalorder %s3080_s18, 0 }
 0x882   : > { %p3106_p4 = scmp.ge.s32.totalorder %s2359_s24, 2  ;;  %s1392_s17 = scalar_lea.sflag [#allocation4], %s1391_s6 }
 0x884   : > { %p1821_p13 = pnand %p3106_p4, %p3105_p9 }
 0x886   : > { %2342 = dma.done.wait (!%p1821_p13), %s1392_s17, 128  }
 0x887   : > { %2344 = vsyncadd (!%p1821_p13), %s1392_s17, 4294967168  ;;  %p33_p1 = scmp.ge.s32.totalorder %s2731_s13, 4   ;;  %s3107_s21 = smov %s2351_s22 }
 0x888   : > { %s3108_s22 = smov %s2355_s23  ;;  %s3109_s23 = smov %s2742_s14 }
 0x889   : > { %s3110_s24 = smov %s2731_s13  ;;  %35 = sbr.rel (!%p33_p1) target bundleno = 21 (0x15), region = 166 }
 0x890   :  { %1397 = vsyncpa [#allocation3], 1 }
 0x891   :  { %1399 = vsyncpa [#allocation3 + $0x1], 1 }
 0x892   :  { %1400 = vsyncpa [#allocation6], 1 }
 0x893   :  { %1402 = vsyncpa [#allocation6 + $0x1], 1 }
 0x894   :  { %1403 = vsyncpa [#allocation9], 1 }
 0x895   :  { %1404 = vsyncpa [#allocation12], 1 }
 0x896   :  { %1405 = vsyncpa [#allocation15], 1 }
 0x897   :  { %1406 = vsyncpa [#allocation18], 1 }
 0x898   :  { %1407 = vsyncpa [#allocation21], 1 }
 0x899   :  { %1408 = vsyncpa [#allocation4], 1 }
 0x89a   :  { %1410 = vsyncpa [#allocation4 + $0x1], 1 }

// kernel: decoder_forward.14
= control target key start
LH: loop header
LB: loop body
LE: loop exit
PB: predicated region body
PF: predicated region fallthrough
CT: control target
= control target key end

     0   :  { %12 = vsyncpa [#allocation6], 0  ;;  %s719_s0 = inlined_call_operand.hbm [shape: f32[16,32], index: 0, kind: input, shape index: {}]   ;;  %s720_s1 = inlined_call_operand.hbm [shape: f32[1,32], index: 1, kind: input, shape index: {}]   ;;  %s721_s2 = inlined_call_operand.hbm [shape: f32[1,32], index: 2, kind: input, shape index: {}]   ;;  %s722_s3 = inlined_call_operand.hbm [shape: bf16[32,64], index: 3, kind: input, shape index: {}]   ;;  %s723_s4 = inlined_call_operand.hbm [shape: f32[1,64], index: 4, kind: input, shape index: {}]   ;;  %s724_s5 = inlined_call_operand.hbm [shape: bf16[16,64], index: 5, kind: output, shape index: {0}]   ;;  %s725_s6 = inlined_call_operand.hbm [shape: f32[16,1], index: 6, kind: output, shape index: {1}]  }
   0x1   :  { %13 = vsyncpa [#allocation9], 0 }
   0x2   :  { %14 = vsyncpa [#allocation12], 0 }
   0x3   :  { %15 = vsyncpa [#allocation7], 0 }
   0x4   :  { %16 = vsyncpa [#allocation16], 0  ;;  %s546_s21 = smov [#allocation8]   ;;  %s547_s23 = smov [#allocation11]  }
   0x5   :  { %s35_s22 = sshll.u32 %s546_s21, 4  ;;  %s54_s24 = sshll.u32 %s547_s23, 4  ;;  %s36_s22 = int_to_ptr.vmem [resolvable:$true] %s35_s22  ;;  %s596_s24 = int_to_ptr.vmem [resolvable:$true] %s54_s24 }
   0x6   :  { %s382_s27 = scalar_lea.hbm %s720_s1, 16 }
   0x7   :  { %p383_p0 = scmp.ne.s32.totalorder %s720_s1, %s382_s27  ;;  %p386_p1 = scmp.lt.u32.totalorder %s382_s27, %s720_s1 }
   0x9   :  { %p388_p2 = pnand %p386_p1, %p383_p0 }
   0xb   :  { %391 = shalt.err (!%p388_p2)
}
   0xc   :  { %s392_s8 = scalar_lea.vmem %s36_s22, 16  ;;  %s396_s9 = scalar_lea.vmem %s36_s22, 32 }
   0xd   :  { %p393_p3 = scmp.ne.s32.totalorder %s36_s22, %s392_s8  ;;  %p397_p4 = scmp.lt.s32.totalorder %s36_s22, %s36_s22 }
   0xe   :  { %p398_p5 = scmp.lt.s32.totalorder %s396_s9, %s392_s8 }
  0x10   :  { %p399_p6 = por %p398_p5, %p397_p4 }
  0x12   :  { %p400_p7 = pnand %p399_p6, %p393_p3 }
  0x14   :  { %403 = shalt.err (!%p400_p7)
}
  0x15   :  { %38 = dma.hbm_to_vmem [thread:$0]  %s720_s1, 16, %s36_s22, [#allocation9]  }
  0x16   :  { %s404_s14 = scalar_lea.hbm %s722_s3, 256 }
  0x17   :  { %p405_p8 = scmp.ne.s32.totalorder %s722_s3, %s404_s14  ;;  %p408_p9 = scmp.lt.u32.totalorder %s404_s14, %s722_s3 }
  0x19   :  { %p410_p10 = pnand %p408_p9, %p405_p8 }
  0x1b   :  { %413 = shalt.err (!%p410_p10)
}
  0x1c   :  { %s414_s19 = scalar_lea.vmem %s596_s24, 256  ;;  %p419_p12 = scmp.lt.s32.totalorder %s596_s24, %s596_s24 }
  0x1d   :  { %p415_p11 = scmp.ne.s32.totalorder %s596_s24, %s414_s19  ;;  %p420_p13 = scmp.lt.s32.totalorder %s414_s19, %s414_s19 }
  0x1f   :  { %p421_p0 = por %p420_p13, %p419_p12 }
  0x21   :  { %p422_p1 = pnand %p421_p0, %p415_p11 }
  0x23   :  { %425 = shalt.err (!%p422_p1)
}
  0x24   :  { %s548_s1 = smov 64   ;;  %s549_s20 = smov 4  }
  0x25   :  { %60 = dma.hbm_to_vmem [thread:$0]  %s722_s3, 256, %s596_s24, [#allocation12], %s548_s1, %s548_s1, %s549_s20  }
  0x26   :  { %s550_s23 = smov [#allocation5]   ;;  %s426_s28 = scalar_lea.hbm %s719_s0, 256 }
  0x27   :  { %s22_s25 = sshll.u32 %s550_s23, 4  ;;  %p427_p2 = scmp.ne.s32.totalorder %s719_s0, %s426_s28  ;;  %s23_s25 = int_to_ptr.vmem [resolvable:$true] %s22_s25 }
  0x28   :  { %p430_p3 = scmp.lt.u32.totalorder %s426_s28, %s719_s0 }
  0x2a   :  { %p432_p4 = pnand %p430_p3, %p427_p2 }
  0x2c   :  { %435 = shalt.err (!%p432_p4)
}
  0x2d   :  { %s436_s9 = scalar_lea.vmem %s23_s25, 256  ;;  %p441_p6 = scmp.lt.s32.totalorder %s23_s25, %s23_s25 }
  0x2e   :  { %p437_p5 = scmp.ne.s32.totalorder %s23_s25, %s436_s9  ;;  %p442_p7 = scmp.lt.s32.totalorder %s436_s9, %s436_s9 }
  0x30   :  { %p443_p8 = por %p442_p7, %p441_p6 }
  0x32   :  { %p444_p9 = pnand %p443_p8, %p437_p5 }
  0x34   :  { %447 = shalt.err (!%p444_p9)
}
  0x35   :  { %s551_s3 = smov 128   ;;  %s552_s24 = smov 8  }
  0x36   :  { %28 = dma.hbm_to_vmem [thread:$0]  %s719_s0, 256, %s23_s25, [#allocation6], %s551_s3, %s551_s3, %s552_s24  }
  0x37   :  { %s553_s12 = smov [#allocation10]   ;;  %s554_s14 = smov [#allocation13]  }
  0x38   :  { %s45_s13 = sshll.u32 %s553_s12, 4  ;;  %s67_s15 = sshll.u32 %s554_s14, 4  ;;  %s46_s13 = int_to_ptr.vmem [resolvable:$true] %s45_s13  ;;  %s68_s15 = int_to_ptr.vmem [resolvable:$true] %s67_s15 }
  0x39   :  { %s448_s18 = scalar_lea.hbm %s721_s2, 16 }
  0x3a   :  { %p449_p10 = scmp.ne.s32.totalorder %s721_s2, %s448_s18  ;;  %p452_p11 = scmp.lt.u32.totalorder %s448_s18, %s721_s2 }
  0x3c   :  { %p454_p12 = pnand %p452_p11, %p449_p10 }
  0x3e   :  { %457 = shalt.err (!%p454_p12)
}
  0x3f   :  { %s458_s0 = scalar_lea.vmem %s46_s13, 16  ;;  %s462_s25 = scalar_lea.vmem %s46_s13, 32 }
  0x40   :  { %p459_p13 = scmp.ne.s32.totalorder %s46_s13, %s458_s0  ;;  %p463_p0 = scmp.lt.s32.totalorder %s46_s13, %s46_s13 }
  0x41   :  { %p464_p1 = scmp.lt.s32.totalorder %s462_s25, %s458_s0 }
  0x43   :  { %p465_p2 = por %p464_p1, %p463_p0 }
  0x45   :  { %p466_p3 = pnand %p465_p2, %p459_p13 }
  0x47   :  { %469 = shalt.err (!%p466_p3)
}
  0x48   :  { %48 = dma.hbm_to_vmem [thread:$0]  %s721_s2, 16, %s46_s13, [#allocation9]  }
  0x49   :  { %s470_s30 = scalar_lea.hbm %s723_s4, 16 }
  0x4a   :  { %p471_p4 = scmp.ne.s32.totalorder %s723_s4, %s470_s30  ;;  %p474_p5 = scmp.lt.u32.totalorder %s470_s30, %s723_s4 }
  0x4c   :  { %p476_p6 = pnand %p474_p5, %p471_p4 }
  0x4e   :  { %479 = shalt.err (!%p476_p6)
}
  0x4f   :  { %s480_s11 = scalar_lea.vmem %s68_s15, 16  ;;  %s484_s12 = scalar_lea.vmem %s68_s15, 32 }
  0x50   :  { %p481_p7 = scmp.ne.s32.totalorder %s68_s15, %s480_s11  ;;  %p485_p8 = scmp.lt.s32.totalorder %s68_s15, %s68_s15 }
  0x51   :  { %p486_p9 = scmp.lt.s32.totalorder %s484_s12, %s480_s11 }
  0x53   :  { %p487_p10 = por %p486_p9, %p485_p8 }
  0x55   :  { %p488_p11 = pnand %p487_p10, %p481_p7 }
  0x57   :  { %491 = shalt.err (!%p488_p11)
}
  0x58   :  { %70 = dma.hbm_to_vmem [thread:$0]  %s723_s4, 16, %s68_s15, [#allocation12]  }
  0x59   :  { %536 = dma.done.wait [#allocation6], 256  }
  0x5a   :  { %537 = vsyncadd [#allocation6], 4294967040 }
  0x5b   :  { %538 = dma.done.wait [#allocation9], 32  }
  0x5c   :  { %539 = vsyncadd [#allocation9], 4294967264 }
  0x5d   :  { %540 = dma.done.wait [#allocation12], 272  }
  0x5e   :  { %541 = vsyncadd [#allocation12], 4294967024  ;;  %vm95_vm0 = vcmask 261120   ;;  %v91_v0 = vld [vmem:[#allocation5] sm:$0xff]  ;;  %v92_v1 = vld [vmem:[#allocation5 + $0x8] sm:$0xff]  ;;  %vm141_vm1 = vcmask 7168  }
  0x5f   :  { %v96_v2 = vsel %vm95_vm0, %v91_v0, 0.0  ;;  %v99_v3 = vsel %vm95_vm0, %v92_v1, 0.0  ;;  %v364_v14 = vld [vmem:[#allocation11] sm:$0xff]   ;;  %v555_v15 = vmov 0.0   ;;  %v365_v16 = vld [vmem:[#allocation11 + $0x8] sm:$0xff]   ;;  %vm556_vm2 = vmmov 0  }
  0x60   :  { %97 = vadd.xlane.f32.xlu0 %v96_v2  ;;  %339 = vmatprep.subr.bf16.mxu0 %v555_v15  ;;  %144 = vst.msk [vmem:[#allocation4] sm:$0xff] %vm141_vm1, %v555_v15  ;;  %145 = vst.msk [vmem:[#allocation4 + $0x8] sm:$0xff] %vm141_vm1, %v555_v15  ;;  %v326_v25 = vld [vmem:[#allocation8] ss:$0 sm:$0xff]  ;;  %v327_v29 = vld [vmem:[#allocation10] ss:$0 sm:$0xff] }
  0x61   :  { %340 = vmatpush3.bf16.msra.mxu0 %v364_v14  ;;  %343 = vmatprep.mubr.msk.bf16.mxu0 %vm556_vm2, %v555_v15  ;;  %v557_v35 = vmov -1e+30   ;;  %v328_v36 = vld [vmem:[#allocation13] ss:$0 sm:$0xff]  ;;  %vm228_vm3 = vcmask 523264   ;;  %vm223_vm4 = vcmask 519168  }
  0x62   :  { %341 = vmatprep.subr.bf16.mxu0 %v555_v15  ;;  %142 = vst.msk [vmem:[#allocation3] sm:$0xff] %vm141_vm1, %v557_v35  ;;  %143 = vst.msk [vmem:[#allocation3 + $0x8] sm:$0xff] %vm141_vm1, %v557_v35  ;;  %v558_v47 = vmov 0   ;;  %s559_s4 = smov [#allocation14]  }
  0x63   :  { %362 = vset.pattern.permute.xlu0 %v558_v47  ;;  %363 = vset.pattern.permute.xlu1 %v558_v47  ;;  %s296_s14 = sshll.u32 %s559_s4, 4  ;;  %s297_s14 = int_to_ptr.vmem [resolvable:$true] %s296_s14 }
  0x64   :  { %100 = vadd.xlane.f32.xlu0 %v99_v3  ;;  %s492_s15 = scalar_lea.vmem %s297_s14, 128  ;;  %p497_p13 = scmp.lt.s32.totalorder %s297_s14, %s297_s14 }
  0x65   :  { %342 = vmatpush3.bf16.msra.mxu0 %v365_v16  ;;  %p493_p12 = scmp.ne.s32.totalorder %s297_s14, %s492_s15  ;;  %p498_p0 = scmp.lt.s32.totalorder %s492_s15, %s492_s15 }
  0x67   :  { %p499_p1 = por %p498_p0, %p497_p13 }
  0x69   :  { %v226_v48 = vld [vmem:[#allocation3] sm:$0xff]  ;;  %v227_v50 = vld [vmem:[#allocation3 + $0x8] sm:$0xff]  ;;  %p500_p2 = pnand %p499_p1, %p493_p12 }
  0xed   :  { %v98_v4 = vpop.xlane.xlu0 %97 }
  0xee   :  { %v103_v5 = vmul.f32 0.03125, %v98_v4 }
  0xf0   :  { %v105_v6 = vsub.f32 %v91_v0, %v103_v5 }
  0xf1   :  { %v101_v7 = vpop.xlane.xlu0 %100 }
  0xf2   :  { %v104_v8 = vmul.f32 0.03125, %v101_v7  ;;  %v107_v9 = vmul.f32 %v105_v6, %v105_v6 }
  0xf4   :  { %v106_v10 = vsub.f32 %v92_v1, %v104_v8  ;;  %v109_v11 = vsel %vm95_vm0, %v107_v9, 0.0 }
  0xf5   :  { %110 = vadd.xlane.f32.xlu1 %v109_v11 }
  0xf6   :  { %v108_v12 = vmul.f32 %v106_v10, %v106_v10 }
  0xf8   :  { %v112_v13 = vsel %vm95_vm0, %v108_v12, 0.0 }
  0xf9   :  { %113 = vadd.xlane.f32.xlu1 %v112_v13 }
 0x182   :  { %v111_v17 = vpop.xlane.xlu1 %110 }
 0x183   :  { %v115_v18 = vmul.f32 0.03125, %v111_v17 }
 0x185   :  { %v117_v19 = vadd.f32 1e-06, %v115_v18 }
 0x186   :  { %v114_v20 = vpop.xlane.xlu1 %113 }
 0x187   :  { %366 = vrsqrt.f32 %v117_v19  ;;  %v116_v21 = vmul.f32 0.03125, %v114_v20 }
 0x189   :  { %v118_v22 = vadd.f32 1e-06, %v116_v21 }
 0x18b   :  { %368 = vrsqrt.f32 %v118_v22 }
 0x191   :  { %v367_v23 = vpop.eup %366 }
 0x192   :  { %v121_v24 = vmul.f32 %v367_v23, %v105_v6 }
 0x194   :  { %v129_v27 = vmul.f32 %v326_v25, %v121_v24 }
 0x195   :  { %v369_v26 = vpop.eup %368 }
 0x196   :  { %v122_v28 = vmul.f32 %v369_v26, %v106_v10  ;;  %v137_v31 = vadd.f32 %v327_v29, %v129_v27 }
 0x198   :  { %v130_v30 = vmul.f32 %v326_v25, %v122_v28 }
 0x19a   :  { %v138_v32 = vadd.f32 %v327_v29, %v130_v30 }
 0x19c   :  { %v139_v33 = vpack.c.bf16 %v138_v32, %v137_v31 }
 0x19e   :  { %140 = vst.msk [vmem:[#allocation2] sm:$0xff] %vm95_vm0, %v139_v33 }
 0x1a5   :  { %v146_v34 = vld [vmem:[#allocation2] sm:$0xff] }
 0x1a6   :  { %344 = vmatmul.mubr.msk.bf16.vlgmr.msra.gmra.mrb[0].mxu0 %vm95_vm0, %v146_v34 }
 0x279   :  { %v208_v37 = vpop.f32.mrb[0].mxu0 }
 0x27a   :  { %v209_v38 = vadd.f32 %v328_v36, %v208_v37  ;;  %v345_v39 = vpop.f32.mrb[1].mxu0 }
 0x27b   :  { %v211_v40 = vpop.f32.mrb[2].mxu0 }
 0x27c   :  { %v334_v41 = vpack.c.bf16 %v209_v38, %v209_v38  ;;  %v212_v42 = vadd.f32 %v328_v36, %v211_v40  ;;  %v346_v43 = vpop.f32.mrb[3].mxu0  ;;  %v229_v44 = vsel %vm228_vm3, %v209_v38, -inf }
 0x27d   :  { %230 = vmax.xlane.f32.xlu0 %v229_v44 }
 0x27e   :  { %v335_v45 = vpack.c.bf16 %v212_v42, %v212_v42  ;;  %v232_v46 = vsel %vm228_vm3, %v212_v42, -inf  ;;  %224 = vst.msk [vmem:[#allocation14] sm:$0xf] %vm223_vm4, %v334_v41 }
 0x27f   :  { %233 = vmax.xlane.f32.xlu1 %v232_v46 }
 0x280   :  { %225 = vst.msk [vmem:[#allocation14 + $0x4] sm:$0xf] %vm223_vm4, %v335_v45 }
 0x30a   :  { %v231_v49 = vpop.xlane.xlu0 %230 }
 0x30b   :  { %v235_v51 = vmax.f32 %v226_v48, %v231_v49 }
 0x30c   :  { %v234_v52 = vpop.xlane.xlu1 %233 }
 0x30d   :  { %v239_v53 = vsub.f32 %v226_v48, %v235_v51  ;;  %274 = vst.msk [vmem:[#allocation3] sm:$0xff] %vm141_vm1, %v235_v51  ;;  %v236_v54 = vmax.f32 %v227_v50, %v234_v52  ;;  %249 = vperm.xlu0 %362, %v235_v51  }
 0x30f   :  { %v240_v55 = vsub.f32 %v227_v50, %v236_v54  ;;  %275 = vst.msk [vmem:[#allocation3 + $0x8] sm:$0xff] %vm141_vm1, %v236_v54  ;;  %254 = vperm.xlu1 %363, %v236_v54  }
 0x38c   :  { %v250_v56 = vpop.permute.xlu0 %249 }
 0x38d   :  { %v257_v57 = vsub.f32 %v209_v38, %v250_v56 }
 0x38e   :  { %v255_v58 = vpop.permute.xlu1 %254 }
 0x38f   :  { %v259_v59 = vmul.f32 1.442695, %v257_v57  ;;  %v258_v60 = vsub.f32 %v212_v42, %v255_v58 }
 0x391   :  { %370 = vpow2.f32 %v259_v59  ;;  %v261_v61 = vmul.f32 1.442695, %v258_v60 }
 0x393   :  { %372 = vpow2.f32 %v261_v61 }
 0x39b   :  { %v371_v62 = vpop.eup %370 }
 0x39c   :  { %v263_v63 = vsel %vm228_vm3, %v371_v62, 0.0 }
 0x39d   :  { %v373_v0 = vpop.eup %372  ;;  %264 = vadd.xlane.f32.xlu1 %v263_v63 }
 0x39e   :  { %v266_v1 = vsel %vm228_vm3, %v373_v0, 0.0 }
 0x39f   :  { %267 = vadd.xlane.f32.xlu0 %v266_v1 }
 0x3a0   :  { %503 = shalt.err (!%p500_p2)
}
 0x3a1   :  { %s504_s18 = scalar_lea.hbm %s724_s5, 128 }
 0x3a2   :  { %p505_p3 = scmp.ne.s32.totalorder %s724_s5, %s504_s18  ;;  %p508_p4 = scmp.lt.u32.totalorder %s504_s18, %s724_s5 }
 0x3a4   :  { %p510_p5 = pnand %p508_p4, %p505_p3 }
 0x3a6   :  { %513 = shalt.err (!%p510_p5)
}
 0x3a7   :  { %302 = dma.vmem_to_hbm [thread:$0]  %s297_s14, 128, %s724_s5, [#allocation7], %s548_s1, %s548_s1, %s549_s20   ;;  %v241_v2 = vmul.f32 1.442695, %v239_v53  ;;  %v243_v3 = vmul.f32 1.442695, %v240_v55 }
 0x3a8   :  { %v237_v5 = vld [vmem:[#allocation4] sm:$0xff]  ;;  %v238_v7 = vld [vmem:[#allocation4 + $0x8] sm:$0xff]  ;;  %v279_v19 = vld [vmem:[#allocation3] sm:$0xff]  ;;  %s560_s5 = smov [#allocation15]  }
 0x3a9   :  { %374 = vpow2.f32 %v241_v2  ;;  %s308_s1 = sshll.u32 %s560_s5, 4  ;;  %v280_v22 = vld [vmem:[#allocation3 + $0x8] sm:$0xff]  ;;  %s309_s1 = int_to_ptr.vmem [resolvable:$true] %s308_s1 }
 0x3aa   :  { %376 = vpow2.f32 %v243_v3  ;;  %s514_s20 = scalar_lea.vmem %s309_s1, 256  ;;  %p519_p7 = scmp.lt.s32.totalorder %s309_s1, %s309_s1 }
 0x3ab   :  { %p515_p6 = scmp.ne.s32.totalorder %s309_s1, %s514_s20  ;;  %p520_p8 = scmp.lt.s32.totalorder %s514_s20, %s514_s20 }
 0x3ad   :  { %p521_p9 = por %p520_p8, %p519_p7 }
 0x3af   :  { %p522_p10 = pnand %p521_p9, %p515_p6 }
 0x3b3   :  { %v375_v4 = vpop.eup %374 }
 0x3b4   :  { %v377_v6 = vpop.eup %376  ;;  %v245_v8 = vmul.f32 %v375_v4, %v237_v5 }
 0x3b5   :  { %v246_v11 = vmul.f32 %v377_v6, %v238_v7 }
 0x42a   :  { %v265_v9 = vpop.xlane.xlu1 %264 }
 0x42b   :  { %v269_v10 = vadd.f32 %v265_v9, %v245_v8 }
 0x42c   :  { %v268_v12 = vpop.xlane.xlu0 %267 }
 0x42d   :  { %272 = vst.msk [vmem:[#allocation4] sm:$0xff] %vm141_vm1, %v269_v10  ;;  %v270_v13 = vadd.f32 %v268_v12, %v246_v11 }
 0x42f   :  { %273 = vst.msk [vmem:[#allocation4 + $0x8] sm:$0xff] %vm141_vm1, %v270_v13 }
 0x434   :  { %v281_v14 = vld [vmem:[#allocation4] sm:$0xff] }
 0x435   :  { %378 = vlog2.f32 %v281_v14 }
 0x436   :  { %v282_v15 = vld [vmem:[#allocation4 + $0x8] sm:$0xff] }
 0x437   :  { %380 = vlog2.f32 %v282_v15 }
 0x43f   :  { %v379_v16 = vpop.eup %378 }
 0x440   :  { %v284_v17 = vmul.f32 0.6931472, %v379_v16 }
 0x441   :  { %v381_v18 = vpop.eup %380 }
 0x442   :  { %v286_v20 = vmul.f32 0.6931472, %v381_v18  ;;  %v287_v21 = vadd.f32 %v284_v17, %v279_v19 }
 0x444   :  { %v288_v23 = vadd.f32 %v286_v20, %v280_v22  ;;  %289 = vst.msk [vmem:[#allocation15] sm:$0xff] %vm141_vm1, %v287_v21 }
 0x446   :  { %290 = vst.msk [vmem:[#allocation15 + $0x8] sm:$0xff] %vm141_vm1, %v288_v23 }
 0x447   :  { %525 = shalt.err (!%p522_p10)
}
 0x448   :  { %s526_s28 = scalar_lea.hbm %s725_s6, 256 }
 0x449   :  { %p527_p11 = scmp.ne.s32.totalorder %s725_s6, %s526_s28  ;;  %p530_p12 = scmp.lt.u32.totalorder %s526_s28, %s725_s6 }
 0x44b   :  { %p532_p13 = pnand %p530_p12, %p527_p11 }
 0x44d   :  { %535 = shalt.err (!%p532_p13)
}
 0x44e   :  { %314 = dma.vmem_to_hbm [thread:$0]  %s309_s1, 256, %s725_s6, [#allocation16], %s551_s3, %s551_s3, %s552_s24  }
 0x44f   :  { %542 = dma.done.wait [#allocation7], 128  }
 0x450   :  { %543 = vsyncadd [#allocation7], 4294967168 }
 0x451   :  { %544 = dma.done.wait [#allocation16], 256  }
 0x452   :  { %545 = vsyncadd [#allocation16], 4294967040 }
 0x453   :  { %321 = vsyncpa [#allocation6], 1 }
 0x454   :  { %322 = vsyncpa [#allocation9], 1 }
 0x455   :  { %323 = vsyncpa [#allocation12], 1 }
 0x456   :  { %324 = vsyncpa [#allocation7], 1 }
 0x457   :  { %325 = vsyncpa [#allocation16], 1 }

// kernel: decoder_forward.9
= control target key start
LH: loop header
LB: loop body
LE: loop exit
PB: predicated region body
PF: predicated region fallthrough
CT: control target
= control target key end

     0   :  { %s3144_s0 = inlined_call_operand.hbm [shape: f32[2,8,32], index: 0, kind: input, shape index: {}]   ;;  %s3145_s1 = inlined_call_operand.hbm [shape: f32[2,8,32], index: 1, kind: input, shape index: {}]   ;;  %s3146_s2 = inlined_call_operand.hbm [shape: s8[2,1,8], index: 2, kind: input, shape index: {}]   ;;  %s3147_s3 = inlined_call_operand.hbm [shape: f32[1,32], index: 3, kind: input, shape index: {}]   ;;  %s3148_s4 = inlined_call_operand.hbm [shape: f32[1,32], index: 4, kind: input, shape index: {}]   ;;  %s3149_s5 = inlined_call_operand.hbm [shape: bf16[32,32], index: 5, kind: input, shape index: {}]   ;;  %s3150_s6 = inlined_call_operand.hbm [shape: f32[1,32], index: 6, kind: input, shape index: {}]   ;;  %s3151_s7 = inlined_call_operand.hbm [shape: bf16[32,32], index: 7, kind: input, shape index: {}]   ;;  %s3152_s8 = inlined_call_operand.hbm [shape: f32[1,32], index: 8, kind: input, shape index: {}]   ;;  %s3153_s9 = inlined_call_operand.hbm [shape: bf16[32,32], index: 9, kind: input, shape index: {}]   ;;  %s3154_s10 = inlined_call_operand.hbm [shape: f32[1,32], index: 10, kind: input, shape index: {}]   ;;  %s3155_s11 = inlined_call_operand.hbm [shape: bf16[32,32], index: 11, kind: input, shape index: {}]   ;;  %s3156_s12 = inlined_call_operand.hbm [shape: f32[1,32], index: 12, kind: input, shape index: {}]   ;;  %s3157_s13 = inlined_call_operand.hbm [shape: f32[2,8,32], index: 13, kind: output, shape index: {}]  }
   0x1   :  { %3180 = sst [smem:[#allocation36_spill]] %s3144_s0 }
   0x2   :  { %3181 = sst [smem:[#allocation37_spill]] %s3145_s1 }
   0x3   :  { %3182 = sst [smem:[#allocation38_spill]] %s3146_s2 }
   0x4   :  { %3183 = sst [smem:[#allocation39_spill]] %s3147_s3 }
   0x5   :  { %3184 = sst [smem:[#allocation40_spill]] %s3148_s4 }
   0x6   :  { %3185 = sst [smem:[#allocation41_spill]] %s3149_s5 }
   0x7   :  { %3186 = sst [smem:[#allocation42_spill]] %s3151_s7 }
   0x8   :  { %3187 = sst [smem:[#allocation43_spill]] %s3153_s9 }
   0x9   :  { %3188 = sst [smem:[#allocation44_spill]] %s3155_s11 }
   0xa   :  { %3189 = sst [smem:[#allocation45_spill]] %s3157_s13 }
   0xb   :  { %18 = vsyncpa [#allocation3], 0 }
   0xc   :  { %20 = vsyncpa [#allocation3 + $0x1], 0 }
   0xd   :  { %21 = vsyncpa [#allocation6], 0 }
   0xe   :  { %23 = vsyncpa [#allocation6 + $0x1], 0 }
   0xf   :  { %24 = vsyncpa [#allocation9], 0 }
  0x10   :  { %25 = vsyncpa [#allocation12], 0 }
  0x11   :  { %26 = vsyncpa [#allocation15], 0 }
  0x12   :  { %27 = vsyncpa [#allocation18], 0 }
  0x13   :  { %28 = vsyncpa [#allocation21], 0 }
  0x14   :  { %29 = vsyncpa [#allocation4], 0 }
  0x15   :  { %31 = vsyncpa [#allocation4 + $0x1], 0  ;;  %s2574_s25 = smov 0   ;;  %s2576_s26 = smov 0  }
  0x16   :  { %s2578_s27 = smov 0   ;;  %s2580_s28 = smov 0  }
  0x17 LB: > { %3190 = sst [smem:[#allocation32_spill]] %s2473_s27  ;;  %s2479_s29 = smov [#allocation8]   ;;  %s2477_s28 = sphi %s2580_s28, %s3236_s28   ;;  %s2473_s27 = sphi %s2578_s27, %s3238_s27   ;;  %s2469_s26 = sphi %s2576_s26, %s3240_s26   ;;  %s2465_s25 = sphi %s2574_s25, %s3239_s25  }
  0x18   : > { %s369_s30 = sshll.u32 %s2479_s29, 4  ;;  %s2595_s14 = sadd.s32 4294967295, %s2477_s28   ;;  %s2600_s30 = int_to_ptr.vmem [resolvable:$true] %s369_s30 }
  0x19   : > { %p1654_p0 = scmp.ge.s32.totalorder %s2477_s28, 1  ;;  %p3162_p1 = scmp.eq.s32.totalorder %s2595_s14, 0 }
  0x1a   : > { %p356_p2 = scmp.lt.s32.totalorder %s2477_s28, 3  ;;  %s2480_s16 = smov [#allocation11]  }
  0x1b   : > { %s390_s17 = sshll.u32 %s2480_s16, 4  ;;  %s2481_s19 = smov [#allocation14]   ;;  %s2609_s17 = int_to_ptr.vmem [resolvable:$true] %s390_s17 }
  0x1c   : > { %p2602_p3 = pnand %p1654_p0, %p356_p2  ;;  %s414_s20 = sshll.u32 %s2481_s19, 4  ;;  %s2617_s20 = int_to_ptr.vmem [resolvable:$true] %s414_s20 }
  0x1d   : > { %s3194_s3 = sld [smem:[#allocation39_spill]] }
  0x1e   : > { %s3191_s15 = scalar_select %p2602_p3, 1, 0 }
  0x1f   : > { %p1871_p5 = pneg %p2602_p3 }
  0x20   : > { %3192 = sst [smem:[#allocation33_spill]] %s3191_s15 }
  0x21   : > { %p2613_p6 = pnand %p1871_p5, %p3162_p1 }
  0x23   : > { %s3193_s18 = scalar_select %p2613_p6, 1, 0 }
  0x24   : > { %s2017_s23 = scalar_lea.hbm %s3194_s3, 16  ;;  %p2627_p8 = pneg %p2613_p6 }
  0x25   : > { %p2018_p7 = scmp.ne.s32.totalorder %s3194_s3, %s2017_s23  ;;  %p2024_p11 = scmp.lt.u32.totalorder %s2017_s23, %s3194_s3 }
  0x26   : > { %s3195_s16 = scalar_select %p2627_p8, 1, 0 }
  0x27   : > { %p2020_p9 = pnand %p2627_p8, %p2018_p7 }
  0x29   : > { %p2021_p10 = pneg %p2020_p9 }
  0x2b   : > { %p2026_p12 = pnand %p2024_p11, %p2021_p10 }
  0x2d   : > { %2029 = shalt.err (!%p2026_p12)
}
  0x2e   : > { %s2030_s21 = scalar_lea.vmem %s2600_s30, 16  ;;  %s2037_s22 = scalar_lea.vmem %s2600_s30, 32 }
  0x2f   : > { %p2031_p13 = scmp.ne.s32.totalorder %s2600_s30, %s2030_s21  ;;  %p2038_p5 = scmp.lt.s32.totalorder %s2600_s30, %s2600_s30 }
  0x30   : > { %p2039_p7 = scmp.lt.s32.totalorder %s2037_s22, %s2030_s21 }
  0x31   : > { %p2033_p0 = pnand %p2031_p13, %p2627_p8 }
  0x32   : > { %p2040_p9 = por %p2039_p7, %p2038_p5 }
  0x33   : > { %p2034_p2 = pneg %p2033_p0 }
  0x35   : > { %p2041_p4 = pnand %p2040_p9, %p2034_p2 }
  0x37   : > { %2044 = shalt.err (!%p2041_p4)
}
  0x38   : > { %1874 = dma.hbm_to_vmem [thread:$0]  (!%p2613_p6), %s3194_s3, 16, %s2600_s30, [#allocation9]  }
  0x39   : > { %s3196_s5 = sld [smem:[#allocation41_spill]] }
  0x3f   : > { %s2045_s19 = scalar_lea.hbm %s3196_s5, 256 }
  0x40   : > { %p2046_p10 = scmp.ne.s32.totalorder %s3196_s5, %s2045_s19  ;;  %p2052_p4 = scmp.lt.u32.totalorder %s2045_s19, %s3196_s5 }
  0x42   : > { %p2048_p11 = pnand %p2046_p10, %p2627_p8 }
  0x44   : > { %p2049_p12 = pneg %p2048_p11 }
  0x46   : > { %p2054_p13 = pnand %p2052_p4, %p2049_p12 }
  0x48   : > { %2057 = shalt.err (!%p2054_p13)
}
  0x49   : > { %s2058_s30 = scalar_lea.vmem %s2609_s17, 256  ;;  %p2066_p7 = scmp.lt.s32.totalorder %s2609_s17, %s2609_s17 }
  0x4a   : > { %p2059_p0 = scmp.ne.s32.totalorder %s2609_s17, %s2058_s30  ;;  %p2067_p9 = scmp.lt.s32.totalorder %s2058_s30, %s2058_s30 }
  0x4c   : > { %p2061_p2 = pnand %p2059_p0, %p2627_p8  ;;  %p2068_p10 = por %p2067_p9, %p2066_p7 }
  0x4e   : > { %p2062_p5 = pneg %p2061_p2 }
  0x50   : > { %p2069_p11 = pnand %p2068_p10, %p2062_p5 }
  0x52   : > { %2072 = shalt.err (!%p2069_p11)
}
  0x53   : > { %s2482_s2 = smov 64   ;;  %s2483_s15 = smov 4  }
  0x54   : > { %1880 = dma.hbm_to_vmem [thread:$0]  (!%p2613_p6), %s3196_s5, 256, %s2609_s17, [#allocation12], %s2482_s2, %s2482_s2, %s2483_s15  }
  0x55   : > { %s3197_s7 = sld [smem:[#allocation42_spill]] }
  0x5b   : > { %s2073_s19 = scalar_lea.hbm %s3197_s7, 256 }
  0x5c   : > { %p2074_p12 = scmp.ne.s32.totalorder %s3197_s7, %s2073_s19  ;;  %p2080_p0 = scmp.lt.u32.totalorder %s2073_s19, %s3197_s7 }
  0x5e   : > { %p2076_p4 = pnand %p2074_p12, %p2627_p8 }
  0x60   : > { %p2077_p13 = pneg %p2076_p4 }
  0x62   : > { %p2082_p2 = pnand %p2080_p0, %p2077_p13 }
  0x64   : > { %2085 = shalt.err (!%p2082_p2)
}
  0x65   : > { %s2086_s17 = scalar_lea.vmem %s2617_s20, 256  ;;  %p2094_p10 = scmp.lt.s32.totalorder %s2617_s20, %s2617_s20 }
  0x66   : > { %p2087_p5 = scmp.ne.s32.totalorder %s2617_s20, %s2086_s17  ;;  %p2095_p11 = scmp.lt.s32.totalorder %s2086_s17, %s2086_s17 }
  0x68   : > { %p2089_p7 = pnand %p2087_p5, %p2627_p8  ;;  %p2096_p12 = por %p2095_p11, %p2094_p10 }
  0x6a   : > { %p2090_p9 = pneg %p2089_p7 }
  0x6c   : > { %p2097_p4 = pnand %p2096_p12, %p2090_p9 }
  0x6e   : > { %2100 = shalt.err (!%p2097_p4)
}
  0x6f   : > { %1886 = dma.hbm_to_vmem [thread:$0]  (!%p2613_p6), %s3197_s7, 256, %s2617_s20, [#allocation15], %s2482_s2, %s2482_s2, %s2483_s15  }
  0x70   : > { %s2484_s23 = smov [#allocation17]   ;;  %s2485_s29 = smov [#allocation20]  }
  0x71   : > { %s438_s24 = sshll.u32 %s2484_s23, 4  ;;  %s462_s19 = sshll.u32 %s2485_s29, 4  ;;  %s439_s24 = int_to_ptr.vmem [resolvable:$true] %s438_s24  ;;  %s463_s19 = int_to_ptr.vmem [resolvable:$true] %s462_s19 }
  0x72   : > { %s3198_s9 = sld [smem:[#allocation43_spill]] }
  0x78   : > { %s2101_s30 = scalar_lea.hbm %s3198_s9, 256 }
  0x79   : > { %p2102_p13 = scmp.ne.s32.totalorder %s3198_s9, %s2101_s30  ;;  %p2108_p5 = scmp.lt.u32.totalorder %s2101_s30, %s3198_s9 }
  0x7b   : > { %p2104_p0 = pnand %p2102_p13, %p2627_p8 }
  0x7d   : > { %p2105_p2 = pneg %p2104_p0 }
  0x7f   : > { %p2110_p7 = pnand %p2108_p5, %p2105_p2 }
  0x81   : > { %2113 = shalt.err (!%p2110_p7)
}
  0x82   : > { %s2114_s20 = scalar_lea.vmem %s439_s24, 256  ;;  %p2122_p12 = scmp.lt.s32.totalorder %s439_s24, %s439_s24 }
  0x83   : > { %p2115_p9 = scmp.ne.s32.totalorder %s439_s24, %s2114_s20  ;;  %p2123_p4 = scmp.lt.s32.totalorder %s2114_s20, %s2114_s20 }
  0x85   : > { %p2117_p10 = pnand %p2115_p9, %p2627_p8  ;;  %p2124_p1 = por %p2123_p4, %p2122_p12 }
  0x87   : > { %p2118_p11 = pneg %p2117_p10 }
  0x89   : > { %p2125_p3 = pnand %p2124_p1, %p2118_p11 }
  0x8b   : > { %2128 = shalt.err (!%p2125_p3)
}
  0x8c   : > { %1892 = dma.hbm_to_vmem [thread:$0]  (!%p2613_p6), %s3198_s9, 256, %s439_s24, [#allocation18], %s2482_s2, %s2482_s2, %s2483_s15  }
  0x8d   : > { %s3199_s11 = sld [smem:[#allocation44_spill]] }
  0x93   : > { %s2129_s29 = scalar_lea.hbm %s3199_s11, 256 }
  0x94   : > { %p2130_p1 = scmp.ne.s32.totalorder %s3199_s11, %s2129_s29  ;;  %p2136_p0 = scmp.lt.u32.totalorder %s2129_s29, %s3199_s11 }
  0x96   : > { %p2132_p3 = pnand %p2130_p1, %p2627_p8 }
  0x98   : > { %p2133_p13 = pneg %p2132_p3 }
  0x9a   : > { %p2138_p2 = pnand %p2136_p0, %p2133_p13 }
  0x9c   : > { %2141 = shalt.err (!%p2138_p2)
}
  0x9d   : > { %s2142_s3 = scalar_lea.vmem %s463_s19, 256  ;;  %p2150_p10 = scmp.lt.s32.totalorder %s463_s19, %s463_s19 }
  0x9e   : > { %p2143_p5 = scmp.ne.s32.totalorder %s463_s19, %s2142_s3  ;;  %p2151_p11 = scmp.lt.s32.totalorder %s2142_s3, %s2142_s3 }
  0xa0   : > { %p2145_p7 = pnand %p2143_p5, %p2627_p8  ;;  %p2152_p12 = por %p2151_p11, %p2150_p10 }
  0xa2   : > { %p2146_p9 = pneg %p2145_p7 }
  0xa4   : > { %p2153_p4 = pnand %p2152_p12, %p2146_p9 }
  0xa6   : > { %2156 = shalt.err (!%p2153_p4)
}
  0xa7   : > { %1898 = dma.hbm_to_vmem [thread:$0]  (!%p2613_p6), %s3199_s11, 256, %s463_s19, [#allocation21], %s2482_s2, %s2482_s2, %s2483_s15  }
  0xa8   : > { %s1653_s0 = sadd.s32 4294967294, %s2477_s28   ;;  %s2745_s5 = sadd.s32 1, %s2477_s28  }
  0xa9   : > { %3200 = sst [smem:[#allocation34_spill]] %s2745_s5  ;;  %s44_s13 = sadd.s32 1, %s2473_s27 }
  0xaa   : > { %s41_s23 = ssub.s32 %s2477_s28, %s2745_s5  ;;  %p51_p1 = scmp.ne.s32.totalorder %s2473_s27, %s2469_s26 }
  0xab   : > { %p42_p3 = scmp.eq.s32.totalorder %s41_s23, 0  ;;  %p52_p13 = scmp.eq.s32.totalorder %s2477_s28, 0 }
  0xac   : > { %p57_p0 = scmp.ne.s32.totalorder %s2469_s26, %s2465_s25  ;;  %p343_p2 = scmp.eq.s32.totalorder %s2595_s14, 1 }
  0xad   : > { %s2757_s29 = scalar_select %p42_p3, %s2473_s27, %s44_s13  }
  0xae   : > { %p53_p5 = por %p52_p13, %p51_p1  ;;  %p3202_p7 = scmp.eq.s32.totalorder %s2595_s14, 0 }
  0xaf   : > { %3201 = sst [smem:[#allocation35_spill]] %s2757_s29  ;;  %p2765_p10 = por %p343_p2, %p51_p1 }
  0xb0   : > { %p2761_p9 = por %p3202_p7, %p57_p0  ;;  %p349_p11 = scmp.eq.s32.totalorder %s1653_s0, 1 }
  0xb1   : > { %s3204_s15 = scalar_select %p2765_p10, 1, 0 }
  0xb2   : > { %s3203_s2 = scalar_select %p2761_p9, 1, 0 }
  0xb3   : > { %p1926_p12 = scmp.lt.s32.totalorder %s2477_s28, 2  ;;  %s2771_s19 = sand.u32 1, %s2473_s27  }
  0xb4   : > { %p2773_p4 = por %p349_p11, %p57_p0  ;;  %s3164_s22 = sshll.u32 %s2771_s19, 3 }
  0xb5   : > { %s3165_s30 = sshll.u32 %s2477_s28, 7  ;;  %p2779_p3 = pnand %p1926_p12, %p53_p5 }
  0xb6   : > { %s3205_s21 = scalar_select %p2773_p4, 1, 0 }
  0xb7   : > { %s3206_s17 = scalar_select %p2779_p3, 1, 0 }
  0xb8   : > { %s505_s3 = sand.u32 1, %s2477_s28   ;;  %s3207_s1 = sld [smem:[#allocation37_spill]] }
  0xb9   : > { %s509_s13 = scalar_lea.vmem [#allocation5], %s3164_s22  ;;  %s2795_s7 = scalar_lea.sflag [#allocation6], %s505_s3 }
  0xba   : > { %s516_s23 = sshll.u32 %s509_s13, 4  ;;  %p2801_p13 = pneg %p2779_p3  ;;  %s2793_s23 = int_to_ptr.vmem [resolvable:$true] %s516_s23 }
  0xbc   : > { %s3208_s11 = scalar_select %p2801_p13, 1, 0 }
  0xbe   : > { %s2789_s0 = scalar_lea.hbm %s3207_s1, %s3165_s30  ;;  %s2162_s22 = scalar_lea.hbm %s3207_s1, 256 }
  0xbf   : > { %s2157_s9 = scalar_lea.hbm %s2789_s0, 128  ;;  %p2163_p5 = scmp.lt.u32.totalorder %s2789_s0, %s3207_s1 }
  0xc0   : > { %p2158_p1 = scmp.ne.s32.totalorder %s2789_s0, %s2157_s9  ;;  %p2164_p7 = scmp.lt.u32.totalorder %s2162_s22, %s2157_s9 }
  0xc1   : > { %p2166_p12 = scmp.lt.u32.totalorder %s2157_s9, %s2789_s0 }
  0xc2   : > { %p2160_p0 = pnand %p2801_p13, %p2158_p1  ;;  %p2165_p11 = por %p2164_p7, %p2163_p5 }
  0xc4   : > { %p2161_p2 = pneg %p2160_p0  ;;  %p2167_p4 = por %p2166_p12, %p2165_p11 }
  0xc6   : > { %p2168_p10 = pnand %p2167_p4, %p2161_p2 }
  0xc8   : > { %2171 = shalt.err (!%p2168_p10)
}
  0xc9   : > { %s2172_s3 = scalar_lea.vmem %s2793_s23, 128  ;;  %s2486_s24 = smov [#allocation5]  }
  0xca   : > { %p2173_p1 = scmp.ne.s32.totalorder %s2793_s23, %s2172_s3  ;;  %s2177_s20 = sshll.u32 %s2486_s24, 4  ;;  %s2178_s20 = int_to_ptr.vmem [resolvable:$false] %s2177_s20 }
  0xcb   : > { %s2179_s30 = scalar_lea.vmem %s2178_s20, 256  ;;  %p2180_p6 = scmp.lt.s32.totalorder %s2793_s23, %s2178_s20 }
  0xcc   : > { %p2175_p0 = pnand %p2173_p1, %p2801_p13  ;;  %p2181_p8 = scmp.lt.s32.totalorder %s2179_s30, %s2172_s3 }
  0xce   : > { %p2176_p9 = pneg %p2175_p0  ;;  %p2182_p5 = por %p2181_p8, %p2180_p6 }
  0xd0   : > { %p2183_p7 = pnand %p2182_p5, %p2176_p9 }
  0xd2   : > { %2186 = shalt.err (!%p2183_p7)
}
  0xd3   : > { %1908 = dma.hbm_to_vmem [thread:$0]  (!%p2779_p3), %s2789_s0, 128, %s2793_s23, %s2795_s7  }
  0xd4   : > { %s2487_s9 = smov [#allocation10]   ;;  %s2488_s13 = smov [#allocation13]  }
  0xd5   : > { %s380_s22 = sshll.u32 %s2487_s9, 4  ;;  %s404_s1 = sshll.u32 %s2488_s13, 4  ;;  %s381_s22 = int_to_ptr.vmem [resolvable:$true] %s380_s22  ;;  %s405_s1 = int_to_ptr.vmem [resolvable:$true] %s404_s1 }
  0xd6   : > { %s3209_s4 = sld [smem:[#allocation40_spill]]  ;;  %p3210_p8 = scmp.ne.s32.totalorder %s3195_s16, 0 }
  0xdc   : > { %s2187_s20 = scalar_lea.hbm %s3209_s4, 16 }
  0xdd   : > { %p2188_p6 = scmp.ne.s32.totalorder %s3209_s4, %s2187_s20  ;;  %p2194_p4 = scmp.lt.u32.totalorder %s2187_s20, %s3209_s4 }
  0xdf   : > { %p2190_p9 = pnand %p2188_p6, %p3210_p8 }
  0xe1   : > { %p2191_p10 = pneg %p2190_p9 }
  0xe3   : > { %p2196_p2 = pnand %p2194_p4, %p2191_p10 }
  0xe5   : > { %2199 = shalt.err (!%p2196_p2)
}
  0xe6   : > { %s2200_s0 = scalar_lea.vmem %s381_s22, 16  ;;  %s2207_s29 = scalar_lea.vmem %s381_s22, 32 }
  0xe7   : > { %p2201_p11 = scmp.ne.s32.totalorder %s381_s22, %s2200_s0  ;;  %p2208_p0 = scmp.lt.s32.totalorder %s381_s22, %s381_s22 }
  0xe8   : > { %p2209_p5 = scmp.lt.s32.totalorder %s2207_s29, %s2200_s0 }
  0xe9   : > { %p2203_p12 = pnand %p2201_p11, %p3210_p8 }
  0xea   : > { %p2210_p7 = por %p2209_p5, %p2208_p0 }
  0xeb   : > { %p2204_p1 = pneg %p2203_p12 }
  0xed   : > { %p2211_p3 = pnand %p2210_p7, %p2204_p1 }
  0xef   : > { %2214 = shalt.err (!%p2211_p3)
}
  0xf0   : > { %p3211_p6 = scmp.ne.s32.totalorder %s3193_s18, 0  ;;  %s2215_s13 = scalar_lea.hbm %s3150_s6, 16 }
  0xf1   : > { %p2216_p9 = scmp.ne.s32.totalorder %s3150_s6, %s2215_s13  ;;  %p2222_p3 = scmp.lt.u32.totalorder %s2215_s13, %s3150_s6 }
  0xf2   : > { %1877 = dma.hbm_to_vmem [thread:$0]  (!%p3211_p6), %s3209_s4, 16, %s381_s22, [#allocation9]  }
  0xf3   : > { %p2218_p10 = pnand %p2216_p9, %p3210_p8 }
  0xf5   : > { %p2219_p4 = pneg %p2218_p10 }
  0xf7   : > { %p2224_p2 = pnand %p2222_p3, %p2219_p4 }
  0xf9   : > { %2227 = shalt.err (!%p2224_p2)
}
  0xfa   : > { %s2228_s0 = scalar_lea.vmem %s405_s1, 16  ;;  %s2235_s22 = scalar_lea.vmem %s405_s1, 32 }
  0xfb   : > { %p2229_p11 = scmp.ne.s32.totalorder %s405_s1, %s2228_s0  ;;  %p2236_p0 = scmp.lt.s32.totalorder %s405_s1, %s405_s1 }
  0xfc   : > { %p2237_p5 = scmp.lt.s32.totalorder %s2235_s22, %s2228_s0 }
  0xfd   : > { %p2231_p12 = pnand %p2229_p11, %p3210_p8 }
  0xfe   : > { %p2238_p7 = por %p2237_p5, %p2236_p0 }
  0xff   : > { %p2232_p1 = pneg %p2231_p12 }
 0x101   : > { %p2239_p13 = pnand %p2238_p7, %p2232_p1 }
 0x103   : > { %2242 = shalt.err (!%p2239_p13)
}
 0x104   : > { %1883 = dma.hbm_to_vmem [thread:$0]  (!%p3211_p6), %s3150_s6, 16, %s405_s1, [#allocation12]  }
 0x105   : > { %s2489_s9 = smov [#allocation16]   ;;  %s2490_s5 = smov [#allocation19]  }
 0x106   : > { %s428_s27 = sshll.u32 %s2489_s9, 4  ;;  %s452_s13 = sshll.u32 %s2490_s5, 4  ;;  %s429_s27 = int_to_ptr.vmem [resolvable:$true] %s428_s27  ;;  %s453_s13 = int_to_ptr.vmem [resolvable:$true] %s452_s13 }
 0x107   : > { %s2243_s3 = scalar_lea.hbm %s3152_s8, 16 }
 0x108   : > { %p2244_p13 = scmp.ne.s32.totalorder %s3152_s8, %s2243_s3  ;;  %p2250_p4 = scmp.lt.u32.totalorder %s2243_s3, %s3152_s8 }
 0x10a   : > { %p2246_p9 = pnand %p2244_p13, %p3210_p8 }
 0x10c   : > { %p2247_p10 = pneg %p2246_p9 }
 0x10e   : > { %p2252_p3 = pnand %p2250_p4, %p2247_p10 }
 0x110   : > { %2255 = shalt.err (!%p2252_p3)
}
 0x111   : > { %s2256_s1 = scalar_lea.vmem %s429_s27, 16  ;;  %s2263_s23 = scalar_lea.vmem %s429_s27, 32 }
 0x112   : > { %p2257_p2 = scmp.ne.s32.totalorder %s429_s27, %s2256_s1  ;;  %p2264_p1 = scmp.lt.s32.totalorder %s429_s27, %s429_s27 }
 0x113   : > { %p2265_p0 = scmp.lt.s32.totalorder %s2263_s23, %s2256_s1 }
 0x114   : > { %p2259_p11 = pnand %p2257_p2, %p3210_p8 }
 0x115   : > { %p2266_p5 = por %p2265_p0, %p2264_p1 }
 0x116   : > { %p2260_p12 = pneg %p2259_p11 }
 0x118   : > { %p2267_p7 = pnand %p2266_p5, %p2260_p12 }
 0x11a   : > { %2270 = shalt.err (!%p2267_p7)
}
 0x11b   : > { %1889 = dma.hbm_to_vmem [thread:$0]  (!%p3211_p6), %s3152_s8, 16, %s429_s27, [#allocation15]  }
 0x11c   : > { %s2271_s3 = scalar_lea.hbm %s3154_s10, 16 }
 0x11d   : > { %p2272_p13 = scmp.ne.s32.totalorder %s3154_s10, %s2271_s3  ;;  %p2278_p4 = scmp.lt.u32.totalorder %s2271_s3, %s3154_s10 }
 0x11f   : > { %p2274_p9 = pnand %p2272_p13, %p3210_p8 }
 0x121   : > { %p2275_p10 = pneg %p2274_p9 }
 0x123   : > { %p2280_p3 = pnand %p2278_p4, %p2275_p10 }
 0x125   : > { %2283 = shalt.err (!%p2280_p3)
}
 0x126   : > { %s2284_s1 = scalar_lea.vmem %s453_s13, 16  ;;  %s2291_s27 = scalar_lea.vmem %s453_s13, 32 }
 0x127   : > { %p2285_p2 = scmp.ne.s32.totalorder %s453_s13, %s2284_s1  ;;  %p2292_p1 = scmp.lt.s32.totalorder %s453_s13, %s453_s13 }
 0x128   : > { %p2293_p0 = scmp.lt.s32.totalorder %s2291_s27, %s2284_s1 }
 0x129   : > { %p2287_p11 = pnand %p2285_p2, %p3210_p8 }
 0x12a   : > { %p2294_p5 = por %p2293_p0, %p2292_p1 }
 0x12b   : > { %p2288_p12 = pneg %p2287_p11 }
 0x12d   : > { %p2295_p7 = pnand %p2294_p5, %p2288_p12 }
 0x12f   : > { %2298 = shalt.err (!%p2295_p7)
}
 0x130   : > { %1895 = dma.hbm_to_vmem [thread:$0]  (!%p3211_p6), %s3154_s10, 16, %s453_s13, [#allocation18]  }
 0x131   : > { %s2491_s5 = smov [#allocation22]   ;;  %s2299_s30 = scalar_lea.hbm %s3156_s12, 16 }
 0x132   : > { %s476_s24 = sshll.u32 %s2491_s5, 4  ;;  %p2300_p13 = scmp.ne.s32.totalorder %s3156_s12, %s2299_s30  ;;  %s477_s24 = int_to_ptr.vmem [resolvable:$true] %s476_s24 }
 0x133   : > { %p2306_p4 = scmp.lt.u32.totalorder %s2299_s30, %s3156_s12 }
 0x134   : > { %p2302_p9 = pnand %p2300_p13, %p3210_p8 }
 0x136   : > { %p2303_p10 = pneg %p2302_p9 }
 0x138   : > { %p2308_p3 = pnand %p2306_p4, %p2303_p10 }
 0x13a   : > { %2311 = shalt.err (!%p2308_p3)
}
 0x13b   : > { %s2312_s13 = scalar_lea.vmem %s477_s24, 16  ;;  %s2319_s27 = scalar_lea.vmem %s477_s24, 32 }
 0x13c   : > { %p2313_p2 = scmp.ne.s32.totalorder %s477_s24, %s2312_s13  ;;  %p2320_p1 = scmp.lt.s32.totalorder %s477_s24, %s477_s24 }
 0x13d   : > { %p2321_p0 = scmp.lt.s32.totalorder %s2319_s27, %s2312_s13 }
 0x13e   : > { %p2315_p11 = pnand %p2313_p2, %p3210_p8 }
 0x13f   : > { %p2322_p5 = por %p2321_p0, %p2320_p1 }
 0x140   : > { %p2316_p12 = pneg %p2315_p11 }
 0x142   : > { %p2323_p7 = pnand %p2322_p5, %p2316_p12 }
 0x144   : > { %2326 = shalt.err (!%p2323_p7)
}
 0x145   : > { %1901 = dma.hbm_to_vmem [thread:$0]  (!%p3211_p6), %s3156_s12, 16, %s477_s24, [#allocation21]  }
 0x146   : > { %s3212_s5 = sshll.u32 %s2477_s28, 7  ;;  %s3213_s3 = sld [smem:[#allocation36_spill]] }
 0x147   : > { %s3214_s0 = sshll.u32 %s2771_s19, 3  ;;  %s488_s29 = scalar_lea.sflag [#allocation3], %s2771_s19 }
 0x148   : > { %s491_s18 = scalar_lea.vmem [#allocation2], %s3214_s0  ;;  %p3215_p13 = scmp.ne.s32.totalorder %s3208_s11, 0 }
 0x149   : > { %s498_s22 = sshll.u32 %s491_s18, 4  ;;  %s499_s22 = int_to_ptr.vmem [resolvable:$true] %s498_s22 }
 0x14c   : > { %s2920_s30 = scalar_lea.hbm %s3213_s3, %s3212_s5  ;;  %s2332_s27 = scalar_lea.hbm %s3213_s3, 256 }
 0x14d   : > { %s2327_s1 = scalar_lea.hbm %s2920_s30, 128  ;;  %p2333_p10 = scmp.lt.u32.totalorder %s2920_s30, %s3213_s3 }
 0x14e   : > { %p2328_p8 = scmp.ne.s32.totalorder %s2920_s30, %s2327_s1  ;;  %p2334_p4 = scmp.lt.u32.totalorder %s2332_s27, %s2327_s1 }
 0x14f   : > { %p2336_p2 = scmp.lt.u32.totalorder %s2327_s1, %s2920_s30 }
 0x150   : > { %p2330_p9 = pnand %p2328_p8, %p3215_p13  ;;  %p2335_p3 = por %p2334_p4, %p2333_p10 }
 0x152   : > { %p2331_p6 = pneg %p2330_p9  ;;  %p2337_p11 = por %p2336_p2, %p2335_p3 }
 0x154   : > { %p2338_p12 = pnand %p2337_p11, %p2331_p6 }
 0x156   : > { %2341 = shalt.err (!%p2338_p12)
}
 0x157   : > { %s2342_s5 = scalar_lea.vmem %s499_s22, 128  ;;  %s2492_s16 = smov [#allocation2]  }
 0x158   : > { %p2343_p1 = scmp.ne.s32.totalorder %s499_s22, %s2342_s5  ;;  %s2347_s20 = sshll.u32 %s2492_s16, 4  ;;  %s2348_s20 = int_to_ptr.vmem [resolvable:$false] %s2347_s20 }
 0x159   : > { %s2349_s0 = scalar_lea.vmem %s2348_s20, 256  ;;  %p2350_p7 = scmp.lt.s32.totalorder %s499_s22, %s2348_s20 }
 0x15a   : > { %p2345_p0 = pnand %p2343_p1, %p3215_p13  ;;  %p2351_p8 = scmp.lt.s32.totalorder %s2349_s0, %s2342_s5 }
 0x15c   : > { %p2346_p5 = pneg %p2345_p0  ;;  %p2352_p9 = por %p2351_p8, %p2350_p7 }
 0x15e   : > { %p2353_p4 = pnand %p2352_p9, %p2346_p5 }
 0x160   : > { %2356 = shalt.err (!%p2353_p4)
}
 0x161   : > { %p3216_p10 = scmp.ne.s32.totalorder %s3206_s17, 0  ;;  %s1670_s18 = sshll.u32 %s2477_s28, 4 }
 0x162   : > { %s526_s1 = scalar_lea.vmem [#allocation7], %s2771_s19  ;;  %s3217_s23 = sld [smem:[#allocation38_spill]] }
 0x163   : > { %1905 = dma.hbm_to_vmem [thread:$0]  (!%p3216_p10), %s2920_s30, 128, %s499_s22, %s488_s29  }
 0x164   : > { %s533_s24 = sshll.u32 %s526_s1, 4  ;;  %s534_s24 = int_to_ptr.vmem [resolvable:$true] %s533_s24 }
 0x168   : > { %s531_s9 = scalar_lea.hbm %s3217_s23, %s1670_s18  ;;  %s2362_s0 = scalar_lea.hbm %s3217_s23, 32 }
 0x169   : > { %s2357_s16 = scalar_lea.hbm %s531_s9, 16  ;;  %p2363_p11 = scmp.lt.u32.totalorder %s531_s9, %s3217_s23 }
 0x16a   : > { %p2358_p6 = scmp.ne.s32.totalorder %s531_s9, %s2357_s16  ;;  %p2364_p12 = scmp.lt.u32.totalorder %s2362_s0, %s2357_s16 }
 0x16b   : > { %p2366_p0 = scmp.lt.u32.totalorder %s2357_s16, %s531_s9 }
 0x16c   : > { %p2360_p3 = pnand %p2358_p6, %p3215_p13  ;;  %p2365_p1 = por %p2364_p12, %p2363_p11 }
 0x16e   : > { %p2361_p2 = pneg %p2360_p3  ;;  %p2367_p5 = por %p2366_p0, %p2365_p1 }
 0x170   : > { %p2368_p7 = pnand %p2367_p5, %p2361_p2 }
 0x172   : > { %2371 = shalt.err (!%p2368_p7)
}
 0x173   : > { %s2372_s19 = scalar_lea.vmem %s534_s24, 16  ;;  %s2493_s30 = smov [#allocation7]  }
 0x174   : > { %p2373_p8 = scmp.ne.s32.totalorder %s534_s24, %s2372_s19  ;;  %s2377_s22 = sshll.u32 %s2493_s30, 4  ;;  %s2378_s22 = int_to_ptr.vmem [resolvable:$false] %s2377_s22 }
 0x175   : > { %s2379_s29 = scalar_lea.vmem %s2378_s22, 32  ;;  %p2380_p6 = scmp.lt.s32.totalorder %s534_s24, %s2378_s22 }
 0x176   : > { %p2375_p9 = pnand %p2373_p8, %p3215_p13  ;;  %p2381_p3 = scmp.lt.s32.totalorder %s2379_s29, %s2372_s19 }
 0x178   : > { %p2376_p4 = pneg %p2375_p9  ;;  %p2382_p10 = por %p2381_p3, %p2380_p6 }
 0x17a   : > { %p2383_p11 = pnand %p2382_p10, %p2376_p4 }
 0x17c   : > { %2386 = shalt.err (!%p2383_p11)
}
 0x17d   : > { %p3218_p12 = scmp.ne.s32.totalorder %s3206_s17, 0  ;;  %s3219_s4 = sld [smem:[#allocation33_spill]] }
 0x17f   : > { %1911 = dma.hbm_to_vmem [thread:$0]  (!%p3218_p12), %s531_s9, 16, %s534_s24, %s2795_s7  }
 0x183   : > { %p3220_p2 = scmp.ne.s32.totalorder %s3219_s4, 0 }
 0x184   : > { %s2963_s11 = sand.u32 (!%p3220_p2), 1, %s2469_s26   ;;  %p3221_p13 = scmp.ne.s32.totalorder (!%p3220_p2), %s3203_s2, 0 }
 0x185   : > { %542 = sbr.rel (%p3220_p2) target bundleno = 2207 (0x89f), region = 72  ;;  %s2966_s3 = sshll.u32 (!%p3220_p2), %s2963_s11, 3 }
 0x186   : > { %s545_s18 = scalar_lea.sflag (!%p3220_p2), [#allocation3], %s2963_s11  ;;  %s548_s1 = scalar_lea.vmem (!%p3220_p2), [#allocation2], %s2966_s3 }
 0x18c   : > { %2432 = dma.done.wait (%p3221_p13), %s545_s18, 128  }
 0x18d   : > { %2434 = vsyncadd (%p3221_p13), %s545_s18, 4294967168  ;;  %s553_s7 = sand.u32 1, %s2595_s14   ;;  %s557_s24 = scalar_lea.vmem [#allocation5], %s2966_s3 }
 0x18e   : > { %s554_s17 = scalar_lea.sflag [#allocation6], %s553_s7 }
 0x18f   : > { %2436 = dma.done.wait (%p3221_p13), %s554_s17, 144  }
 0x190   : > { %2438 = vsyncadd (%p3221_p13), %s554_s17, 4294967152  ;;  %s565_s13 = scalar_lea.vmem [#allocation7], %s2963_s11  ;;  %p3222_p10 = scmp.eq.s32.totalorder %s2595_s14, 0 }
 0x192   : > { %2440 = dma.done.wait (%p3222_p10), [#allocation9], 32   ;;  %p3223_p1 = pmov %p3222_p10 }
 0x194   : > { %2442 = vsyncadd (%p3223_p1), [#allocation9], 4294967264  ;;  %p3224_p0 = pmov %p3223_p1 }
 0x196   : > { %2444 = dma.done.wait (%p3224_p0), [#allocation12], 272   ;;  %p3225_p5 = pmov %p3224_p0 }
 0x197   : > { %p3226_p7 = pmov %p3224_p0 }
 0x198   : > { %2446 = vsyncadd (%p3225_p5), [#allocation12], 4294967024 }
 0x199   : > { %2448 = dma.done.wait (%p3226_p7), [#allocation15], 272   ;;  %p3227_p8 = pmov %p3224_p0 }
 0x19a   : > { %p3228_p9 = pmov %p3224_p0 }
 0x19b   : > { %2450 = vsyncadd (%p3227_p8), [#allocation15], 4294967024 }
 0x19c   : > { %2452 = dma.done.wait (%p3228_p9), [#allocation18], 272   ;;  %p3229_p4 = pmov %p3224_p0 }
 0x19d   : > { %p3230_p6 = pmov %p3224_p0 }
 0x19e   : > { %2454 = vsyncadd (%p3229_p4), [#allocation18], 4294967024 }
 0x19f   : > { %2456 = dma.done.wait (%p3230_p6), [#allocation21], 272   ;;  %p3231_p3 = pmov %p3224_p0 }
 0x1a0   : > { %vm663_vm0 = vcmask 261120   ;;  %v3001_v0 = vld [vmem:[%s548_s1] sm:$0xff]  ;;  %v1991_v7 = vld [vmem:[#allocation14] sm:$0xff]   ;;  %v2494_v8 = vmov 0.0   ;;  %vm2495_vm1 = vmmov 0   ;;  %vm901_vm2 = vcmask 64512  }
 0x1a1   : > { %2458 = vsyncadd (%p3231_p3), [#allocation21], 4294967024  ;;  %v664_v1 = vsel %vm663_vm0, %v3001_v0, 0.0  ;;  %1751 = vmatprep.subr.bf16.mxu1 %v2494_v8  ;;  %1755 = vmatprep.mubr.msk.bf16.mxu1 %vm2495_vm1, %v2494_v8  ;;  %v1993_v9 = vld [vmem:[#allocation11] sm:$0xff]   ;;  %v692_v11 = vld [vmem:[%s557_s24] sm:$0xff]  ;;  %s2496_s2 = smov 120   ;;  %v952_v54 = vlaneseq }
 0x1a2   : > { %665 = vadd.xlane.f32.xlu0 %v664_v1  ;;  %1752 = vmatpush3.bf16.msra.mxu1 %v1991_v7  ;;  %v1992_v10 = vld [vmem:[#allocation14 + $0x8] sm:$0xff]   ;;  %v1994_v12 = vld [vmem:[#allocation11 + $0x8] sm:$0xff]   ;;  %v715_v13 = vpack.c.bf16 %v692_v11, %v692_v11  ;;  %v1691_v24 = vld [vmem:[#allocation16] ss:$0 sm:$0xff]  ;;  %s2497_s27 = smov 112   ;;  %s2498_s9 = smov 104  }
 0x1a3   : > { %1743 = vmatprep.subr.bf16.mxu0 %v2494_v8  ;;  %1753 = vmatprep.subr.bf16.mxu1 %v2494_v8  ;;  %v1685_v18 = vld [vmem:[#allocation8] ss:$0 sm:$0xff]  ;;  %v1686_v20 = vld [vmem:[#allocation10] ss:$0 sm:$0xff]  ;;  %v1687_v32 = vld [vmem:[#allocation13] ss:$0 sm:$0xff] }
 0x1a4   : > { %1744 = vmatpush3.bf16.msra.mxu0 %v1993_v9  ;;  %1747 = vmatprep.mubr.msk.bf16.mxu0 %vm2495_vm1, %v2494_v8  ;;  %v1995_v42 = vld [vmem:[#allocation17] sm:$0xff]   ;;  %v1996_v43 = vld [vmem:[#allocation17 + $0x8] sm:$0xff]   ;;  %v693_v51 = vld [vmem:[%s565_s13] sm:$0x1]  ;;  %v2499_v52 = vmov 0   ;;  %v953_v56 = vshrl.u32 %v952_v54, 7 }
 0x1a5   : > { %1745 = vmatprep.subr.bf16.mxu0 %v2494_v8  ;;  %vm900_vm3 = vnez %v693_v51  ;;  %vm973_vm6 = vcmask 1043456   ;;  %s2500_s16 = smov 8   ;;  %s2501_s5 = smov 16   ;;  %vm1366_vm7 = vcmask 130048   ;;  %vm1368_vm8 = vcmask 195584  }
 0x1a6   : > { %1754 = vmatpush3.bf16.msra.mxu1 %v1992_v10  ;;  %v948_v53 = vsel %vm900_vm3, 16843009, %v2499_v52  ;;  %v954_v57 = vsub.s32 0, %v953_v56  ;;  %s2502_s20 = smov 24   ;;  %s1712_s0 = sshll.u32 %s2595_s14, 7 }
 0x1a7   : > { %1767 = vmatprep.subr.bf16.mxu1 %v2494_v8  ;;  %v949_v55 = vunpack.c.0.s8 %v948_v53  ;;  %s656_s19 = scalar_lea.vmem [#allocation23], %s2966_s3  ;;  %s3232_s4 = sld [smem:[#allocation45_spill]] }
 0x1a8   : > { %1746 = vmatpush3.bf16.msra.mxu0 %v1994_v12  ;;  %s1448_s30 = sshll.u32 %s656_s19, 4  ;;  %s1435_s14 = scalar_lea.sflag [#allocation4], %s2963_s11  ;;  %s3101_s30 = int_to_ptr.vmem [resolvable:$true] %s1448_s30 }
 0x1a9   : > { %1759 = vmatprep.subr.bf16.mxu0 %v2494_v8  ;;  %1756 = vmatmul.mubr.msk.bf16.vlgmr.msra.gmra.mrb[0].mxu1 %vm663_vm0, %v715_v13  ;;  %vm950_vm4 = vcmp.ne.s32.totalorder %v949_v55, 0  ;;  %s2387_s3 = scalar_lea.vmem %s3101_s30, 128  ;;  %p3233_p12 = scmp.ne.s32.totalorder %s3204_s15, 0 }
 0x1aa   : > { %1769 = vmatprep.mubr.msk.bf16.mxu1 %vm2495_vm1, %v2494_v8  ;;  %v951_v58 = vsel %vm950_vm4, 1, %v2499_v52  ;;  %p2388_p11 = scmp.ne.s32.totalorder %s3101_s30, %s2387_s3  ;;  %s2503_s1 = smov [#allocation23]  }
 0x1ab   : > { %v955_v59 = vrot.slane %v951_v58, %v954_v57  ;;  %s2391_s7 = sshll.u32 %s2503_s1, 4  ;;  %s2392_s7 = int_to_ptr.vmem [resolvable:$false] %s2391_s7 }
 0x1ac   : > { %p2389_p2 = pnand %p2388_p11, %p3233_p12  ;;  %s2393_s17 = scalar_lea.vmem %s2392_s7, 256 }
 0x1ad   : > { %vm956_vm5 = vcmp.eq.s32.totalorder %v955_v59, 1  ;;  %s3099_s18 = scalar_lea.hbm %s3232_s4, %s1712_s0  ;;  %p2394_p10 = scmp.lt.s32.totalorder %s3101_s30, %s2392_s7 }
 0x1ae   : > { %p2390_p13 = pneg %p2389_p2  ;;  %p2395_p1 = scmp.lt.s32.totalorder %s2393_s17, %s2387_s3 }
 0x1b0   : > { %p2396_p0 = por %p2395_p1, %p2394_p10 }
 0x1b2   : > { %p2397_p5 = pnand %p2396_p0, %p2390_p13 }
 0x22f   : > { %v666_v2 = vpop.xlane.xlu0 %665 }
 0x230   : > { %v668_v3 = vmul.f32 0.03125, %v666_v2 }
 0x232   : > { %v669_v4 = vsub.f32 %v3001_v0, %v668_v3 }
 0x234   : > { %v670_v5 = vmul.f32 %v669_v4, %v669_v4 }
 0x236   : > { %v671_v6 = vsel %vm663_vm0, %v670_v5, 0.0 }
 0x237   : > { %672 = vadd.xlane.f32.xlu0 %v671_v6 }
 0x27c   : > { %v833_v25 = vpop.f32.mrb[0].mxu1 }
 0x27d   : > { %v834_v26 = vadd.f32 %v1691_v24, %v833_v25  ;;  %v1757_v27 = vpop.f32.mrb[1].mxu1  ;;  %v1695_v25 = vld [vmem:[#allocation19] ss:$0 sm:$0xff] }
 0x27e   : > { %v836_v28 = vpop.f32.mrb[2].mxu1 }
 0x27f   : > { %v898_v29 = vpack.c.bf16 %v834_v26, %v834_v26  ;;  %v1758_v30 = vpop.f32.mrb[3].mxu1 }
 0x281   : > { %1021 = vrot.lane.b32.xlu1 %v898_v29, %s2496_s2  ;;  %1133 = vrot.lane.b32.xlu0 %v898_v29, %s2497_s27  ;;  %v906_v31 = vsel %vm901_vm2, %v898_v29, 0 }
 0x282   : > { %1768 = vmatpush3.bf16.xpose.msra.mxu1 %v906_v31 }
 0x283   : > { %1779 = vmatprep.subr.bf16.mxu1 %v2494_v8 }
 0x2c4   : > { %v673_v14 = vpop.xlane.xlu0 %672 }
 0x2c5   : > { %v674_v15 = vmul.f32 0.03125, %v673_v14 }
 0x2c7   : > { %v675_v16 = vadd.f32 1e-06, %v674_v15 }
 0x2c9   : > { %1999 = vrsqrt.f32 %v675_v16 }
 0x2d3   : > { %v2000_v17 = vpop.eup %1999 }
 0x2d4   : > { %v677_v19 = vmul.f32 %v2000_v17, %v669_v4 }
 0x2d6   : > { %v684_v21 = vmul.f32 %v1685_v18, %v677_v19 }
 0x2d8   : > { %v691_v22 = vadd.f32 %v1686_v20, %v684_v21 }
 0x2da   : > { %v714_v23 = vpack.c.bf16 %v691_v22, %v691_v22 }
 0x2dc   : > { %1748 = vmatmul.mubr.msk.bf16.vlgmr.msra.gmra.mrb[0].mxu0 %vm663_vm0, %v714_v23 }
 0x2dd   : > { %1763 = vmatprep.mubr.msk.bf16.mxu0 %vm2495_vm1, %v2494_v8  ;;  %1760 = vmatpush3.bf16.msra.mxu0 %v1995_v42 }
 0x2de   : > { %1761 = vmatprep.subr.bf16.mxu0 %v2494_v8 }
 0x2e1   : > { %1762 = vmatpush3.bf16.msra.mxu0 %v1996_v43 }
 0x2e2   : > { %1773 = vmatprep.subr.bf16.mxu0 %v2494_v8 }
 0x2e4   : > { %1764 = vmatmul.mubr.msk.bf16.vlgmr.msra.gmra.mrb[4].mxu0 %vm663_vm0, %v715_v13 }
 0x2e5   : > { %1775 = vmatprep.mubr.msk.bf16.mxu0 %vm2495_vm1, %v2494_v8 }
 0x2f3   : > { %v1022_v37 = vpop.permute.xlu1 %1021  ;;  %v1134_v44 = vpop.permute.xlu0 %1133 }
 0x2f4   : > { %v1027_v41 = vsel %vm901_vm2, %v1022_v37, 0  ;;  %v1139_v46 = vsel %vm901_vm2, %v1134_v44, 0 }
 0x3af   : > { %v771_v33 = vpop.f32.mrb[0].mxu0 }
 0x3b0   : > { %v772_v34 = vadd.f32 %v1687_v32, %v771_v33  ;;  %v1749_v35 = vpop.f32.mrb[1].mxu0 }
 0x3b1   : > { %v774_v36 = vpop.f32.mrb[2].mxu0 }
 0x3b2   : > { %v777_v38 = vmul.f32 0.35355338, %v772_v34  ;;  %v1750_v39 = vpop.f32.mrb[3].mxu0 }
 0x3b4   : > { %v897_v40 = vpack.c.bf16 %v777_v38, %v777_v38 }
 0x3b6   : > { %1018 = vrot.lane.b32.xlu1 %v897_v40, %s2496_s2  ;;  %1770 = vmatmul.mubr.msk.bf16.vlgmr.msra.gmra.mrb[4].mxu1 %vm901_vm2, %v897_v40 }
 0x3b7   : > { %1780 = vmatpush3.bf16.xpose.msra.mxu1 %v1027_v41  ;;  %1781 = vmatprep.mubr.msk.bf16.mxu1 %vm2495_vm1, %v2494_v8  ;;  %v891_v26 = vpop.f32.mrb[4].mxu0 }
 0x3b8   : > { %1791 = vmatprep.subr.bf16.mxu1 %v2494_v8  ;;  %v1765_v27 = vpop.f32.mrb[5].mxu0  ;;  %v892_v28 = vadd.f32 %v1695_v25, %v891_v26 }
 0x3ba   : > { %1131 = vrot.lane.b32.xlu1 %v897_v40, %s2497_s27  ;;  %v899_v33 = vpack.c.bf16 %v892_v28, %v892_v28 }
 0x3bc   : > { %v975_v34 = vsel %vm973_vm6, %v899_v33, 0 }
 0x3bd   : > { %1774 = vmatpush3.bf16.msra.mxu0 %v975_v34  ;;  %v1707_v34 = vld [vmem:[#allocation22] ss:$0 sm:$0xff] }
 0x3be   : > { %1244 = vrot.lane.b32.xlu1 %v898_v29, %s2498_s9  ;;  %v894_v29 = vpop.f32.mrb[6].mxu0  ;;  %1785 = vmatprep.subr.bf16.mxu0 %v2494_v8 }
 0x3bf   : > { %v1766_v31 = vpop.f32.mrb[7].mxu0 }
 0x3c2   : > { %1242 = vrot.lane.b32.xlu1 %v897_v40, %s2498_s9 }
 0x428   : > { %v1019_v45 = vpop.permute.xlu1 %1018 }
 0x429   : > { %1782 = vmatmul.mubr.msk.bf16.vlgmr.msra.gmra.mrb[8].mxu1 %vm901_vm2, %v1019_v45 }
 0x42a   : > { %1792 = vmatpush3.bf16.xpose.msra.mxu1 %v1139_v46  ;;  %1793 = vmatprep.mubr.msk.bf16.mxu1 %vm2495_vm1, %v2494_v8 }
 0x42b   : > { %1803 = vmatprep.subr.bf16.mxu1 %v2494_v8 }
 0x42c   : > { %v1132_v47 = vpop.permute.xlu1 %1131 }
 0x430   : > { %v1245_v48 = vpop.permute.xlu1 %1244 }
 0x431   : > { %v1250_v49 = vsel %vm901_vm2, %v1245_v48, 0  ;;  %1794 = vmatmul.mubr.msk.bf16.vlgmr.msra.gmra.mrb[12].mxu1 %vm901_vm2, %v1132_v47 }
 0x432   : > { %1804 = vmatpush3.bf16.xpose.msra.mxu1 %v1250_v49  ;;  %1805 = vmatprep.mubr.msk.bf16.mxu1 %vm2495_vm1, %v2494_v8 }
 0x433   : > { %1815 = vmatprep.subr.bf16.mxu1 %v2494_v8 }
 0x434   : > { %v1243_v50 = vpop.permute.xlu1 %1242 }
 0x439   : > { %1806 = vmatmul.mubr.msk.bf16.vlgmr.msra.gmra.mrb[16].mxu1 %vm901_vm2, %v1243_v50 }
 0x43a   : > { %1819 = vmatprep.mubr.msk.bf16.mxu1 %vm2495_vm1, %v2494_v8 }
 0x489   : > { %v942_v60 = vpop.f32.mrb[4].mxu1 }
 0x48a   : > { %v957_v61 = vsel %vm956_vm5, -1e+30, %v942_v60  ;;  %v1771_v62 = vpop.f32.mrb[5].mxu1 }
 0x48b   : > { %v945_v63 = vpop.f32.mrb[6].mxu1  ;;  %v958_v1 = vsel %vm901_vm2, %v957_v61, -inf }
 0x48c   : > { %959 = vmax.xlane.f32.xlu1 %v958_v1  ;;  %v1772_v2 = vpop.f32.mrb[7].mxu1 }
 0x4fc   : > { %v1063_v3 = vpop.f32.mrb[8].mxu1 }
 0x4fd   : > { %v1069_v4 = vsel %vm956_vm5, -1e+30, %v1063_v3  ;;  %v1783_v5 = vpop.f32.mrb[9].mxu1 }
 0x4fe   : > { %v1066_v6 = vpop.f32.mrb[10].mxu1  ;;  %v1070_v7 = vsel %vm901_vm2, %v1069_v4, -inf }
 0x4ff   : > { %1071 = vmax.xlane.f32.xlu0 %v1070_v7  ;;  %v1784_v9 = vpop.f32.mrb[11].mxu1 }
 0x504   : > { %v1175_v10 = vpop.f32.mrb[12].mxu1 }
 0x505   : > { %v1181_v11 = vsel %vm956_vm5, -1e+30, %v1175_v10  ;;  %v1795_v12 = vpop.f32.mrb[13].mxu1 }
 0x506   : > { %v1178_v13 = vpop.f32.mrb[14].mxu1  ;;  %v1182_v14 = vsel %vm901_vm2, %v1181_v11, -inf }
 0x507   : > { %1183 = vmax.xlane.f32.xlu1 %v1182_v14  ;;  %v1796_v15 = vpop.f32.mrb[15].mxu1  ;;  %v1997_v14 = vld [vmem:[#allocation20] sm:$0xff]  }
 0x508   : > { %1816 = vmatpush3.bf16.msra.mxu1 %v1997_v14  ;;  %v1998_v15 = vld [vmem:[#allocation20 + $0x8] sm:$0xff]  }
 0x509   : > { %1817 = vmatprep.subr.bf16.mxu1 %v2494_v8 }
 0x50c   : > { %v1286_v16 = vpop.f32.mrb[16].mxu1  ;;  %1818 = vmatpush3.bf16.msra.mxu1 %v1998_v15 }
 0x50d   : > { %v1292_v17 = vsel %vm956_vm5, -1e+30, %v1286_v16  ;;  %v1807_v18 = vpop.f32.mrb[17].mxu1 }
 0x50e   : > { %v1289_v19 = vpop.f32.mrb[18].mxu1  ;;  %v1293_v20 = vsel %vm901_vm2, %v1292_v17, -inf }
 0x50f   : > { %1294 = vmax.xlane.f32.xlu1 %v1293_v20  ;;  %v1808_v21 = vpop.f32.mrb[19].mxu1 }
 0x519   : > { %v960_v22 = vpop.xlane.xlu1 %959 }
 0x51a   : > { %v961_v23 = vsub.f32 %v957_v61, %v960_v22 }
 0x51c   : > { %v962_v24 = vmul.f32 1.442695, %v961_v23 }
 0x51e   : > { %2001 = vpow2.f32 %v962_v24 }
 0x528   : > { %v2002_v30 = vpop.eup %2001 }
 0x529   : > { %v964_v32 = vsel %vm901_vm2, %v2002_v30, 0.0 }
 0x52a   : > { %965 = vadd.xlane.f32.xlu0 %v964_v32 }
 0x58c   : > { %v1072_v35 = vpop.xlane.xlu0 %1071 }
 0x58d   : > { %v1073_v36 = vsub.f32 %v1069_v4, %v1072_v35 }
 0x58f   : > { %v1074_v37 = vmul.f32 1.442695, %v1073_v36 }
 0x591   : > { %2003 = vpow2.f32 %v1074_v37 }
 0x594   : > { %v1184_v38 = vpop.xlane.xlu1 %1183 }
 0x595   : > { %v1185_v39 = vsub.f32 %v1181_v11, %v1184_v38 }
 0x597   : > { %v1186_v40 = vmul.f32 1.442695, %v1185_v39 }
 0x599   : > { %2005 = vpow2.f32 %v1186_v40 }
 0x59b   : > { %v2004_v41 = vpop.eup %2003 }
 0x59c   : > { %v1076_v42 = vsel %vm901_vm2, %v2004_v41, 0.0  ;;  %v1295_v46 = vpop.xlane.xlu1 %1294 }
 0x59d   : > { %1077 = vadd.xlane.f32.xlu1 %v1076_v42  ;;  %v1296_v47 = vsub.f32 %v1292_v17, %v1295_v46 }
 0x59f   : > { %v1297_v48 = vmul.f32 1.442695, %v1296_v47 }
 0x5a3   : > { %v2006_v43 = vpop.eup %2005 }
 0x5a4   : > { %v1188_v44 = vsel %vm901_vm2, %v2006_v43, 0.0 }
 0x5a5   : > { %1189 = vadd.xlane.f32.xlu0 %v1188_v44 }
 0x5ae   : > { %1194 = vrot.lane.b32.xlu1 %v899_v33, %s2497_s27 }
 0x5b7   : > { %v966_v45 = vpop.xlane.xlu0 %965 }
 0x5b8   : > { %2007 = vrcp.f32 %v966_v45 }
 0x5b9   : > { %2009 = vpow2.f32 %v1297_v48 }
 0x5bb   : > { %1083 = vrot.lane.b32.xlu0 %v899_v33, %s2496_s2 }
 0x5c2   : > { %v2008_v49 = vpop.eup %2007 }
 0x5c3   : > { %v968_v50 = vmul.f32 %v2008_v49, %v2002_v30  ;;  %v2010_v52 = vpop.eup %2009 }
 0x5c4   : > { %v1299_v53 = vsel %vm901_vm2, %v2010_v52, 0.0 }
 0x5c5   : > { %v969_v51 = vpack.c.bf16 %v968_v50, %v968_v50 }
 0x5c7   : > { %1776 = vmatmul.mubr.msk.bf16.vlgmr.msra.gmra.mrb[8].mxu0 %vm901_vm2, %v969_v51 }
 0x5c8   : > { %1787 = vmatprep.mubr.msk.bf16.mxu0 %vm2495_vm1, %v2494_v8 }
 0x5d2   : > { %1300 = vadd.xlane.f32.xlu1 %v1299_v53 }
 0x5e3   : > { %1305 = vrot.lane.b32.xlu1 %v899_v33, %s2498_s9 }
 0x62a   : > { %v1078_v54 = vpop.xlane.xlu1 %1077 }
 0x62b   : > { %2011 = vrcp.f32 %v1078_v54 }
 0x62e   : > { %v1195_v60 = vpop.permute.xlu1 %1194 }
 0x62f   : > { %v1200_v62 = vsel %vm973_vm6, %v1195_v60, 0 }
 0x632   : > { %v1190_v55 = vpop.xlane.xlu0 %1189 }
 0x633   : > { %2013 = vrcp.f32 %v1190_v55 }
 0x635   : > { %v2012_v56 = vpop.eup %2011 }
 0x636   : > { %v1080_v57 = vmul.f32 %v2012_v56, %v2004_v41  ;;  %v1084_v58 = vpop.permute.xlu0 %1083 }
 0x637   : > { %v1089_v59 = vsel %vm973_vm6, %v1084_v58, 0 }
 0x638   : > { %1786 = vmatpush3.bf16.msra.mxu0 %v1089_v59  ;;  %v1081_v61 = vpack.c.bf16 %v1080_v57, %v1080_v57 }
 0x639   : > { %1797 = vmatprep.subr.bf16.mxu0 %v2494_v8 }
 0x63b   : > { %1788 = vmatmul.mubr.msk.bf16.vlgmr.msra.gmra.mrb[12].mxu0 %vm901_vm2, %v1081_v61 }
 0x63c   : > { %1798 = vmatpush3.bf16.msra.mxu0 %v1200_v62  ;;  %1799 = vmatprep.mubr.msk.bf16.mxu0 %vm2495_vm1, %v2494_v8 }
 0x63d   : > { %v2014_v63 = vpop.eup %2013  ;;  %1809 = vmatprep.subr.bf16.mxu0 %v2494_v8 }
 0x63e   : > { %v1192_v1 = vmul.f32 %v2014_v63, %v2006_v43 }
 0x640   : > { %v1193_v2 = vpack.c.bf16 %v1192_v1, %v1192_v1 }
 0x643   : > { %1800 = vmatmul.mubr.msk.bf16.vlgmr.msra.gmra.mrb[16].mxu0 %vm901_vm2, %v1193_v2 }
 0x644   : > { %1811 = vmatprep.mubr.msk.bf16.mxu0 %vm2495_vm1, %v2494_v8 }
 0x65f   : > { %v1301_v3 = vpop.xlane.xlu1 %1300 }
 0x660   : > { %2015 = vrcp.f32 %v1301_v3 }
 0x663   : > { %v1306_v4 = vpop.permute.xlu1 %1305 }
 0x664   : > { %v1311_v5 = vsel %vm973_vm6, %v1306_v4, 0 }
 0x665   : > { %1810 = vmatpush3.bf16.msra.mxu0 %v1311_v5 }
 0x66a   : > { %v2016_v6 = vpop.eup %2015 }
 0x66b   : > { %v1303_v7 = vmul.f32 %v2016_v6, %v2010_v52 }
 0x66d   : > { %v1304_v9 = vpack.c.bf16 %v1303_v7, %v1303_v7 }
 0x66f   : > { %1812 = vmatmul.mubr.msk.bf16.vlgmr.msra.gmra.mrb[20].mxu0 %vm901_vm2, %v1304_v9 }
 0x69a   : > { %v1011_v10 = vpop.f32.mrb[8].mxu0 }
 0x69b   : > { %v1777_v11 = vpop.f32.mrb[9].mxu0 }
 0x69c   : > { %v1014_v12 = vpop.f32.mrb[10].mxu0 }
 0x69d   : > { %v1778_v13 = vpop.f32.mrb[11].mxu0 }
 0x70e   : > { %v1125_v16 = vpop.f32.mrb[12].mxu0 }
 0x70f   : > { %1354 = vrot.lane.b32.xlu0 %v1125_v16, %s2500_s16  ;;  %v1789_v17 = vpop.f32.mrb[13].mxu0 }
 0x710   : > { %v1128_v18 = vpop.f32.mrb[14].mxu0 }
 0x711   : > { %v1790_v19 = vpop.f32.mrb[15].mxu0 }
 0x716   : > { %v1236_v20 = vpop.f32.mrb[16].mxu0 }
 0x717   : > { %1358 = vrot.lane.b32.xlu1 %v1236_v20, %s2501_s5  ;;  %v1801_v21 = vpop.f32.mrb[17].mxu0 }
 0x718   : > { %v1239_v22 = vpop.f32.mrb[18].mxu0 }
 0x719   : > { %v1802_v23 = vpop.f32.mrb[19].mxu0 }
 0x742   : > { %v1347_v24 = vpop.f32.mrb[20].mxu0 }
 0x743   : > { %1362 = vrot.lane.b32.xlu0 %v1347_v24, %s2502_s20  ;;  %v1813_v25 = vpop.f32.mrb[21].mxu0 }
 0x744   : > { %v1350_v8 = vpop.f32.mrb[22].mxu0 }
 0x745   : > { %v1814_v26 = vpop.f32.mrb[23].mxu0 }
 0x781   : > { %v1355_v27 = vpop.permute.xlu0 %1354 }
 0x782   : > { %v1365_v29 = vsel %vm901_vm2, %v1011_v10, %v1355_v27 }
 0x789   : > { %v1359_v28 = vpop.permute.xlu1 %1358 }
 0x78a   : > { %v1367_v30 = vsel %vm1366_vm7, %v1365_v29, %v1359_v28 }
 0x7b5   : > { %v1363_v31 = vpop.permute.xlu0 %1362 }
 0x7b6   : > { %v1369_v32 = vsel %vm1368_vm8, %v1367_v30, %v1363_v31 }
 0x7b7   : > { %v1370_v33 = vpack.c.bf16 %v1369_v32, %v1369_v32 }
 0x7b9   : > { %1820 = vmatmul.mubr.msk.bf16.vlgmr.msra.gmra.mrb[20].mxu1 %vm663_vm0, %v1370_v33 }
 0x88c   : > { %v1426_v35 = vpop.f32.mrb[20].mxu1 }
 0x88d   : > { %v1427_v36 = vadd.f32 %v1707_v34, %v1426_v35  ;;  %v1821_v37 = vpop.f32.mrb[21].mxu1 }
 0x88e   : > { %v1429_v38 = vpop.f32.mrb[22].mxu1 }
 0x88f   : > { %v1432_v39 = vadd.f32 %v1427_v36, %v3001_v0  ;;  %v1822_v40 = vpop.f32.mrb[23].mxu1 }
 0x891   : > { %1433 = vst.msk [vmem:[%s656_s19] sm:$0xff] %vm663_vm0, %v1432_v39 }
 0x892   : > { %2400 = shalt.err (!%p2397_p5)
}
 0x893   : > { %s2401_s11 = scalar_lea.hbm %s3099_s18, 128  ;;  %s2405_s2 = scalar_lea.hbm %s3232_s4, 256 }
 0x894   : > { %p2402_p7 = scmp.ne.s32.totalorder %s3099_s18, %s2401_s11  ;;  %p2406_p4 = scmp.lt.u32.totalorder %s3099_s18, %s3232_s4 }
 0x895   : > { %p2407_p6 = scmp.lt.u32.totalorder %s2405_s2, %s2401_s11  ;;  %p2409_p11 = scmp.lt.u32.totalorder %s2401_s11, %s3099_s18 }
 0x896   : > { %p2403_p8 = pnand %p2402_p7, %p3233_p12 }
 0x897   : > { %p2408_p3 = por %p2407_p6, %p2406_p4 }
 0x898   : > { %p2404_p9 = pneg %p2403_p8 }
 0x899   : > { %p2410_p2 = por %p2409_p11, %p2408_p3 }
 0x89b   : > { %p2411_p13 = pnand %p2410_p2, %p2404_p9 }
 0x89d   : > { %2414 = shalt.err (!%p2411_p13)
}
 0x89e   : > { %1869 = dma.vmem_to_hbm [thread:$0]  (%p3233_p12), %s3101_s30, 128, %s3099_s18, %s1435_s14  }
 0x89f PF: > { %s1460_s16 = sand.u32 1, %s2465_s25   ;;  %p3234_p10 = scmp.ne.s32.totalorder %s3205_s21, 0 }
 0x8a0   : > { %p3235_p1 = scmp.ge.s32.totalorder %s2477_s28, 2  ;;  %s1461_s5 = scalar_lea.sflag [#allocation4], %s1460_s16 }
 0x8a2   : > { %p1913_p0 = pnand %p3235_p1, %p3234_p10 }
 0x8a4   : > { %2460 = dma.done.wait (!%p1913_p0), %s1461_s5, 128  }
 0x8a5   : > { %2462 = vsyncadd (!%p1913_p0), %s1461_s5, 4294967168  ;;  %s3236_s28 = sld [smem:[#allocation34_spill]]  ;;  %s3237_s20 = sld [smem:[#allocation32_spill]] }
 0x8a6   : > { %s3238_s27 = sld [smem:[#allocation35_spill]]  ;;  %s3239_s25 = smov %s2469_s26 }
 0x8ab   : > { %p34_p5 = scmp.ge.s32.totalorder %s3236_s28, 4   ;;  %s3240_s26 = smov %s3237_s20 }
 0x8ad   :  { %36 = sbr.rel (!%p34_p5) target bundleno = 23 (0x17), region = 181 }
 0x8b4   :  { %1466 = vsyncpa [#allocation3], 1 }
 0x8b5   :  { %1468 = vsyncpa [#allocation3 + $0x1], 1 }
 0x8b6   :  { %1469 = vsyncpa [#allocation6], 1 }
 0x8b7   :  { %1471 = vsyncpa [#allocation6 + $0x1], 1 }
 0x8b8   :  { %1472 = vsyncpa [#allocation9], 1 }
 0x8b9   :  { %1473 = vsyncpa [#allocation12], 1 }
 0x8ba   :  { %1474 = vsyncpa [#allocation15], 1 }
 0x8bb   :  { %1475 = vsyncpa [#allocation18], 1 }
 0x8bc   :  { %1476 = vsyncpa [#allocation21], 1 }
 0x8bd   :  { %1477 = vsyncpa [#allocation4], 1 }
 0x8be   :  { %1479 = vsyncpa [#allocation4 + $0x1], 1 }

// kernel: decoder_forward.15
= control target key start
LH: loop header
LB: loop body
LE: loop exit
PB: predicated region body
PF: predicated region fallthrough
CT: control target
= control target key end

     0   :  { %7 = vsyncpa [#allocation3], 0  ;;  %s229_s0 = inlined_call_operand.hbm [shape: bf16[16,64], index: 0, kind: input, shape index: {}]   ;;  %s230_s1 = inlined_call_operand.hbm [shape: f32[16,1], index: 1, kind: input, shape index: {}]   ;;  %s231_s2 = inlined_call_operand.hbm [shape: f32[16,64], index: 2, kind: output, shape index: {}]  }
   0x1   :  { %8 = vsyncpa [#allocation6], 0 }
   0x2   :  { %9 = vsyncpa [#allocation4], 0  ;;  %s164_s9 = smov [#allocation2]   ;;  %s92_s13 = scalar_lea.hbm %s229_s0, 128 }
   0x3   :  { %s15_s10 = sshll.u32 %s164_s9, 4  ;;  %p93_p0 = scmp.ne.s32.totalorder %s229_s0, %s92_s13  ;;  %s16_s10 = int_to_ptr.vmem [resolvable:$true] %s15_s10 }
   0x4   :  { %p96_p1 = scmp.lt.u32.totalorder %s92_s13, %s229_s0 }
   0x6   :  { %p98_p2 = pnand %p96_p1, %p93_p0 }
   0x8   :  { %101 = shalt.err (!%p98_p2)
}
   0x9   :  { %s102_s18 = scalar_lea.vmem %s16_s10, 128  ;;  %p107_p4 = scmp.lt.s32.totalorder %s16_s10, %s16_s10 }
   0xa   :  { %p103_p3 = scmp.ne.s32.totalorder %s16_s10, %s102_s18  ;;  %p108_p5 = scmp.lt.s32.totalorder %s102_s18, %s102_s18 }
   0xc   :  { %p109_p6 = por %p108_p5, %p107_p4 }
   0xe   :  { %p110_p7 = pnand %p109_p6, %p103_p3 }
  0x10   :  { %113 = shalt.err (!%p110_p7)
}
  0x11   :  { %s165_s19 = smov 64   ;;  %s166_s20 = smov 4  }
  0x12   :  { %21 = dma.hbm_to_vmem [thread:$0]  %s229_s0, 128, %s16_s10, [#allocation3], %s165_s19, %s165_s19, %s166_s20  }
  0x13   :  { %s167_s23 = smov [#allocation5]   ;;  %s114_s27 = scalar_lea.hbm %s230_s1, 256 }
  0x14   :  { %s27_s24 = sshll.u32 %s167_s23, 4  ;;  %p115_p8 = scmp.ne.s32.totalorder %s230_s1, %s114_s27  ;;  %s28_s24 = int_to_ptr.vmem [resolvable:$true] %s27_s24 }
  0x15   :  { %p118_p9 = scmp.lt.u32.totalorder %s114_s27, %s230_s1 }
  0x17   :  { %p120_p10 = pnand %p118_p9, %p115_p8 }
  0x19   :  { %123 = shalt.err (!%p120_p10)
}
  0x1a   :  { %s124_s4 = scalar_lea.vmem %s28_s24, 256  ;;  %p129_p12 = scmp.lt.s32.totalorder %s28_s24, %s28_s24 }
  0x1b   :  { %p125_p11 = scmp.ne.s32.totalorder %s28_s24, %s124_s4  ;;  %p130_p13 = scmp.lt.s32.totalorder %s124_s4, %s124_s4 }
  0x1d   :  { %p131_p0 = por %p130_p13, %p129_p12 }
  0x1f   :  { %p132_p1 = pnand %p131_p0, %p125_p11 }
  0x21   :  { %135 = shalt.err (!%p132_p1)
}
  0x22   :  { %s168_s0 = smov 128   ;;  %s169_s5 = smov 8  }
  0x23   :  { %33 = dma.hbm_to_vmem [thread:$0]  %s230_s1, 256, %s28_s24, [#allocation6], %s168_s0, %s168_s0, %s169_s5  }
  0x24   :  { %158 = dma.done.wait [#allocation3], 128  }
  0x25   :  { %159 = vsyncadd [#allocation3], 4294967168 }
  0x26   :  { %160 = dma.done.wait [#allocation6], 256  }
  0x27   :  { %161 = vsyncadd [#allocation6], 4294967040  ;;  %v170_v0 = vmov 0   ;;  %v44_v1 = vld [vmem:[#allocation5] sm:$0xff]  ;;  %v45_v2 = vld [vmem:[#allocation5 + $0x8] sm:$0xff]  ;;  %vm58_vm0 = vcmask 523264  }
  0x28   :  { %91 = vset.pattern.permute.xlu0 %v170_v0  ;;  %v80_v3 = vld [vmem:[#allocation2] sm:$0xff]   ;;  %s171_s8 = smov [#allocation7]  }
  0x29   :  { %48 = vperm.xlu0 %91, %v44_v1   ;;  %v81_v4 = vunpack.c.l.bf16 %v80_v3  ;;  %v82_v7 = vunpack.c.h.bf16 %v80_v3  ;;  %s66_s9 = sshll.u32 %s171_s8, 4  ;;  %s67_s9 = int_to_ptr.vmem [resolvable:$true] %s66_s9 }
  0x2a   :  { %s136_s1 = scalar_lea.vmem %s67_s9, 256  ;;  %p141_p3 = scmp.lt.s32.totalorder %s67_s9, %s67_s9 }
  0x2b   :  { %p137_p2 = scmp.ne.s32.totalorder %s67_s9, %s136_s1  ;;  %p142_p4 = scmp.lt.s32.totalorder %s136_s1, %s136_s1 }
  0x2d   :  { %53 = vperm.xlu0 %91, %v45_v2   ;;  %p143_p5 = por %p142_p4, %p141_p3 }
  0x2f   :  { %p144_p6 = pnand %p143_p5, %p137_p2 }
  0xa8   :  { %v49_v5 = vpop.permute.xlu0 %48 }
  0xa9   :  { %v56_v6 = vsub.f32 %v81_v4, %v49_v5 }
  0xab   :  { %59 = vst.msk [vmem:[#allocation7] sm:$0xff] %vm58_vm0, %v56_v6 }
  0xac   :  { %v54_v8 = vpop.permute.xlu0 %53 }
  0xad   :  { %v57_v9 = vsub.f32 %v82_v7, %v54_v8 }
  0xaf   :  { %60 = vst.msk [vmem:[#allocation7 + $0x8] sm:$0xff] %vm58_vm0, %v57_v9 }
  0xb0   :  { %147 = shalt.err (!%p144_p6)
}
  0xb1   :  { %s148_s12 = scalar_lea.hbm %s231_s2, 256 }
  0xb2   :  { %p149_p7 = scmp.ne.s32.totalorder %s231_s2, %s148_s12  ;;  %p152_p8 = scmp.lt.u32.totalorder %s148_s12, %s231_s2 }
  0xb4   :  { %p154_p9 = pnand %p152_p8, %p149_p7 }
  0xb6   :  { %157 = shalt.err (!%p154_p9)
}
  0xb7   :  { %72 = dma.vmem_to_hbm [thread:$0]  %s67_s9, 256, %s231_s2, [#allocation4], %s168_s0, %s168_s0, %s169_s5  }
  0xb8   :  { %162 = dma.done.wait [#allocation4], 256  }
  0xb9   :  { %163 = vsyncadd [#allocation4], 4294967040 }
  0xba   :  { %76 = vsyncpa [#allocation3], 1 }
  0xbb   :  { %77 = vsyncpa [#allocation6], 1 }
  0xbc   :  { %78 = vsyncpa [#allocation4], 1 }

</bundles_post_ra>
